<compile_context>
chip_gen: v5e
topology: v5e:2x2
jax: 0.10.0
libtpu: 0.0.40
codegen_flags: <defaults>
</compile_context>

<pallas_src>
import functools

import jax
import jax.numpy as jnp
from jax.experimental import pallas as pl
from jax.experimental.pallas import tpu as pltpu

N_ACTIONS = 36
H_IN = 8            # input spatial size implied by the conv stack
PAD_OUT = 128       # fc4 output padded to lane-dense 128 columns
S2 = 36             # per-image slot stride after conv1 (6x6 grid, row-major)
ROW_PAD = 8         # junk rows appended to the conv1 patch matrix
K3 = S2 * 64        # contraction depth of the zero-padded conv3 GEMM (2304)


# ---------------------------------------------------------------------------
# Fused kernel
# ---------------------------------------------------------------------------
def _convdqn_kernel(use_reshape_flatten,
                    p1_ref, w1_ref, w2_ref, bias_ref,
                    w3_hbm, wf3_hbm, wf4_hbm,
                    o_ref,
                    w3_v, wf3_v, wf4_v, dma_sem):
    """Whole ConvDQN forward; intermediates never leave VMEM/vregs.

    p1_ref  : (B*36+8, 32)  conv1 im2col patches (built by wrapper), rows
                            ordered (b, ho, wo) over the 6x6 conv1 output,
                            cols (kh, kw, cin) zero-padded 27->32.
    w1_ref  : (32, 32)      conv1 weight, rows zero-padded 27->32
    w2_ref  : (128, 64)     conv2 weight, 4 taps of 32 rows each
    bias_ref: (1, 1024)     packed biases [b1|b2|b3|bf3|bf4], 128-lane aligned
    w3_hbm  : (2304, 128)   conv3 weight on a zero-padded 6x6 window (HBM)
    wf3_hbm : (128, 512)    fc3 weight (HBM)
    wf4_hbm : (512, 128)    fc4 weight zero-padded 36->128 cols (HBM)
    o_ref   : (Bp, 128)     padded logits; wrapper slices [:B, :36]
    """
    # Start the big weight DMAs now; they overlap with conv1/conv2 compute.
    cp_w3 = pltpu.make_async_copy(w3_hbm, w3_v, dma_sem.at[0])
    cp_f3 = pltpu.make_async_copy(wf3_hbm, wf3_v, dma_sem.at[1])
    cp_f4 = pltpu.make_async_copy(wf4_hbm, wf4_v, dma_sem.at[2])
    cp_w3.start()
    cp_f3.start()
    cp_f4.start()

    # Lane-aligned slices of the packed bias buffer.
    b1 = bias_ref[:, 0:32]
    b2 = bias_ref[:, 128:192]
    b3 = bias_ref[:, 256:384]
    bf3 = bias_ref[:, 384:896]
    bf4 = bias_ref[:, 896:1024]

    n_rows = p1_ref.shape[0] - ROW_PAD          # B * 36
    B = n_rows // S2

    # conv1 (3x3, 3->32): one GEMM on the pre-built patch matrix.
    y1 = jnp.maximum(
        jnp.dot(p1_ref[...], w1_ref[...], preferred_element_type=jnp.float32)
        + b1, 0.0)                                            # (B*36+8, 32)

    # conv2 (2x2, 32->64) as a 4-tap sum.  Each tap is one contiguous row
    # window of y1 (whole batch at once) x one 32-row weight slice.
    s_acc = None
    for kh in range(2):
        for kw in range(2):
            off = kh * 6 + kw
            tap = kh * 2 + kw
            contrib = jnp.dot(y1[off:off + n_rows, :],
                              w2_ref[tap * 32:(tap + 1) * 32, :],
                              preferred_element_type=jnp.float32)
            s_acc = contrib if s_acc is None else s_acc + contrib
    a2 = jnp.maximum(s_acc + b2, 0.0)                         # (B*36, 64)
    # Row b*36 + s holds the conv2 output at spatial slot s = kh3*6+kw3 when
    # kh3, kw3 < 5; the other 11 slots per image are junk but are matched by
    # zero rows in the padded conv3 weight.

    # conv3 (5x5, 64->128 -> 1x1): flatten each image's 36-slot block and do
    # one GEMM against the (2304, 128) zero-padded weight.
    if use_reshape_flatten:
        p3 = a2.reshape(B, K3)                                # (B, 2304)
    else:
        # Fallback flatten using only row slices + concats (proven-safe ops).
        p3 = jnp.concatenate(
            [jnp.concatenate([a2[b * S2 + s:b * S2 + s + 1, :]
                              for s in range(S2)], axis=1)
             for b in range(B)], axis=0)                      # (B, 2304)

    cp_w3.wait()
    y3 = jnp.maximum(
        jnp.dot(p3, w3_v[...], preferred_element_type=jnp.float32) + b3, 0.0)

    # Pad batch rows up to the 8-sublane output height -> full-tile fc GEMMs
    # and an unmasked final store.
    pad_rows = o_ref.shape[0] - B
    if pad_rows > 0:
        y3 = jnp.concatenate(
            [y3, jnp.zeros((pad_rows, 128), jnp.float32)], axis=0)

    cp_f3.wait()
    h = jnp.maximum(
        jnp.dot(y3, wf3_v[...], preferred_element_type=jnp.float32) + bf3, 0.0)

    cp_f4.wait()
    o_ref[...] = (jnp.dot(h, wf4_v[...], preferred_element_type=jnp.float32)
                  + bf4)


# ---------------------------------------------------------------------------
# Wrapper
# ---------------------------------------------------------------------------
def conv_dqn_forward(x_nchw, params, flatten_mode="reshape"):
    B = x_nchw.shape[0]
    Bp = max(8, ((B + 7) // 8) * 8)

    # NCHW -> NHWC, then build conv1's im2col patches in XLA (item 1 of the
    # review): rows (b, ho, wo), cols (kh, kw, cin); pad cols 27->32 and
    # append 8 junk rows so conv2's tap windows stay in-bounds.
    x = jnp.transpose(x_nchw, (0, 2, 3, 1)).astype(jnp.float32)   # (B,8,8,3)
    cols = [x[:, kh:kh + 6, kw:kw + 6, :]
            for kh in range(3) for kw in range(3)]
    p1 = jnp.concatenate(cols, axis=-1).reshape(B * S2, 27)
    p1 = jnp.pad(p1, ((0, ROW_PAD), (0, 32 - 27)))                # (B*36+8, 32)

    w1 = jnp.pad(params["w_c1"].reshape(27, 32), ((0, 5), (0, 0)))  # (32, 32)
    w2 = params["w_c2"].reshape(128, 64)                            # (128, 64)

    # conv3 weight scattered into a zero-padded 6x6 spatial window so the
    # kernel can use the 36-slot flattened conv2 block directly: (2304, 128).
    w3 = jnp.zeros((6, 6, 64, 128), jnp.float32)
    w3 = w3.at[:5, :5, :, :].set(params["w_c3"])
    w3 = w3.reshape(K3, 128)

    wf3 = params["w_fc3"]                                           # (128, 512)
    wf4 = jnp.pad(params["w_fc4"],
                  ((0, 0), (0, PAD_OUT - N_ACTIONS)))               # (512, 128)

    # Pack all biases into one lane-aligned buffer: 1 small DMA instead of 5.
    bias_pack = jnp.concatenate([
        jnp.pad(params["b_c1"], (0, 128 - 32)),
        jnp.pad(params["b_c2"], (0, 128 - 64)),
        params["b_c3"],
        params["b_fc3"],
        jnp.pad(params["b_fc4"], (0, PAD_OUT - N_ACTIONS)),
    ]).reshape(1, 1024)

    vmem = pl.BlockSpec(memory_space=pltpu.MemorySpace.VMEM)
    anym = pl.BlockSpec(memory_space=pl.ANY)   # big weights stay in HBM; the
                                               # kernel DMAs them itself.

    kernel = functools.partial(_convdqn_kernel, flatten_mode == "reshape")
    out_padded = pl.pallas_call(
        kernel,
        out_shape=jax.ShapeDtypeStruct((Bp, PAD_OUT), jnp.float32),
        in_specs=[vmem, vmem, vmem, vmem, anym, anym, anym],
        out_specs=vmem,
        scratch_shapes=[
            pltpu.VMEM((K3, 128), jnp.float32),      # conv3 weight landing pad
            pltpu.VMEM((128, 512), jnp.float32),     # fc3 weight landing pad
            pltpu.VMEM((512, 128), jnp.float32),     # fc4 weight landing pad
            pltpu.SemaphoreType.DMA((3,)),
        ],
    )(p1, w1, w2, bias_pack, w3, wf3, wf4)
    return out_padded[:B, :N_ACTIONS]


# ---------------------------------------------------------------------------
# Pure-JAX reference (correctness check)
# ---------------------------------------------------------------------------
def reference_forward(x_nchw, params):
    x = jnp.transpose(x_nchw, (0, 2, 3, 1)).astype(jnp.float32)

    def conv(h, w, b):
        y = jax.lax.conv_general_dilated(
            h, w, window_strides=(1, 1), padding="VALID",
            dimension_numbers=("NHWC", "HWIO", "NHWC"))
        return jax.nn.relu(y + b.reshape(1, 1, 1, -1))

    x = conv(x, params["w_c1"], params["b_c1"])
    x = conv(x, params["w_c2"], params["b_c2"])
    x = conv(x, params["w_c3"], params["b_c3"])
    x = x.reshape(x.shape[0], -1)
    x = jax.nn.relu(x @ params["w_fc3"] + params["b_fc3"])
    return x @ params["w_fc4"] + params["b_fc4"]


# ---------------------------------------------------------------------------
# Deterministic parameter init
# ---------------------------------------------------------------------------
def init_params(key):
    ks = jax.random.split(key, 10)
    s = 0.1
    return {
        # conv weights in HWIO layout (K, K, Cin, Cout)
        "w_c1": s * jax.random.normal(ks[0], (3, 3, 3, 32), jnp.float32),
        "b_c1": s * jax.random.normal(ks[1], (32,), jnp.float32),
        "w_c2": s * jax.random.normal(ks[2], (2, 2, 32, 64), jnp.float32),
        "b_c2": s * jax.random.normal(ks[3], (64,), jnp.float32),
        "w_c3": s * jax.random.normal(ks[4], (5, 5, 64, 128), jnp.float32),
        "b_c3": s * jax.random.normal(ks[5], (128,), jnp.float32),
        # fc weights as (in, out)
        "w_fc3": s * jax.random.normal(ks[6], (128, 512), jnp.float32),
        "b_fc3": s * jax.random.normal(ks[7], (512,), jnp.float32),
        "w_fc4": s * jax.random.normal(ks[8], (512, N_ACTIONS), jnp.float32),
        "b_fc4": s * jax.random.normal(ks[9], (N_ACTIONS,), jnp.float32),
    }


if __name__ == "__main__":
    key = jax.random.PRNGKey(0)
    k_param, k_x = jax.random.split(key)
    params = init_params(k_param)

    # PyTorch NCHW convention: batch=2, channels=3, spatial=8x8.
    x = jax.random.normal(k_x, (2, 3, H_IN, H_IN), jnp.float32)

    ref = jax.block_until_ready(reference_forward(x, params))

    def run(mode):
        fwd = jax.jit(functools.partial(conv_dqn_forward, flatten_mode=mode))
        out = jax.block_until_ready(fwd(x, params))
        assert out.shape == (2, N_ACTIONS), out.shape
        assert jnp.allclose(out, ref, atol=1e-4, rtol=1e-4), \
            float(jnp.max(jnp.abs(out - ref)))
        return out

    try:
        run("reshape")         # primary path: single in-kernel flatten reshape
    except Exception:
        run("concat")          # safe fallback flatten (slices + concats only)

    print("KERNEL_OK")
</pallas_src>

<mosaic_0001>
module attributes {stable_mosaic.version = 11 : i64} {
  func.func @_convdqn_kernel(%arg0: memref<80x32xf32, #tpu.memory_space<vmem>>, %arg1: memref<32x32xf32, #tpu.memory_space<vmem>>, %arg2: memref<128x64xf32, #tpu.memory_space<vmem>>, %arg3: memref<1x1024xf32, #tpu.memory_space<vmem>>, %arg4: memref<2304x128xf32, #tpu.memory_space<any>>, %arg5: memref<128x512xf32, #tpu.memory_space<any>>, %arg6: memref<512x128xf32, #tpu.memory_space<any>>, %arg7: memref<8x128xf32, #tpu.memory_space<vmem>>, %arg8: memref<2304x128xf32, #tpu.memory_space<vmem>>, %arg9: memref<128x512xf32, #tpu.memory_space<vmem>>, %arg10: memref<512x128xf32, #tpu.memory_space<vmem>>, %arg11: memref<3x!tpu.dma_semaphore, #tpu.memory_space<semaphore_mem>>) attributes {dimension_semantics = [], scalar_prefetch = 0 : i64, scratch_operands = 4 : i64, tpu.core_type = #tpu.core_type<tc>} {
    %c0_i32 = arith.constant 0 : i32
    %0 = tpu.memref_slice %arg11[%c0_i32] : memref<3x!tpu.dma_semaphore, #tpu.memory_space<semaphore_mem>> -> memref<1x!tpu.dma_semaphore, #tpu.memory_space<semaphore_mem>>
    %1 = tpu.memref_squeeze %0 : memref<1x!tpu.dma_semaphore, #tpu.memory_space<semaphore_mem>> -> memref<!tpu.dma_semaphore, #tpu.memory_space<semaphore_mem>>
    tpu.enqueue_dma source(%arg4 : memref<2304x128xf32, #tpu.memory_space<any>>) target(%arg8 : memref<2304x128xf32, #tpu.memory_space<vmem>>) target_semaphore(%1 : memref<!tpu.dma_semaphore, #tpu.memory_space<semaphore_mem>>)
    %c1_i32 = arith.constant 1 : i32
    %2 = tpu.memref_slice %arg11[%c1_i32] : memref<3x!tpu.dma_semaphore, #tpu.memory_space<semaphore_mem>> -> memref<1x!tpu.dma_semaphore, #tpu.memory_space<semaphore_mem>>
    %3 = tpu.memref_squeeze %2 : memref<1x!tpu.dma_semaphore, #tpu.memory_space<semaphore_mem>> -> memref<!tpu.dma_semaphore, #tpu.memory_space<semaphore_mem>>
    tpu.enqueue_dma source(%arg5 : memref<128x512xf32, #tpu.memory_space<any>>) target(%arg9 : memref<128x512xf32, #tpu.memory_space<vmem>>) target_semaphore(%3 : memref<!tpu.dma_semaphore, #tpu.memory_space<semaphore_mem>>)
    %c2_i32 = arith.constant 2 : i32
    %4 = tpu.memref_slice %arg11[%c2_i32] : memref<3x!tpu.dma_semaphore, #tpu.memory_space<semaphore_mem>> -> memref<1x!tpu.dma_semaphore, #tpu.memory_space<semaphore_mem>>
    %5 = tpu.memref_squeeze %4 : memref<1x!tpu.dma_semaphore, #tpu.memory_space<semaphore_mem>> -> memref<!tpu.dma_semaphore, #tpu.memory_space<semaphore_mem>>
    tpu.enqueue_dma source(%arg6 : memref<512x128xf32, #tpu.memory_space<any>>) target(%arg10 : memref<512x128xf32, #tpu.memory_space<vmem>>) target_semaphore(%5 : memref<!tpu.dma_semaphore, #tpu.memory_space<semaphore_mem>>)
    %c0 = arith.constant 0 : index
    %c0_0 = arith.constant 0 : index
    %6 = vector.load %arg3[%c0, %c0_0] : memref<1x1024xf32, #tpu.memory_space<vmem>>, vector<1x32xf32>
    %c0_1 = arith.constant 0 : index
    %c128 = arith.constant 128 : index
    %7 = vector.load %arg3[%c0_1, %c128] : memref<1x1024xf32, #tpu.memory_space<vmem>>, vector<1x64xf32>
    %c0_2 = arith.constant 0 : index
    %c256 = arith.constant 256 : index
    %8 = vector.load %arg3[%c0_2, %c256] : memref<1x1024xf32, #tpu.memory_space<vmem>>, vector<1x128xf32>
    %c0_3 = arith.constant 0 : index
    %c384 = arith.constant 384 : index
    %9 = vector.load %arg3[%c0_3, %c384] : memref<1x1024xf32, #tpu.memory_space<vmem>>, vector<1x512xf32>
    %c0_4 = arith.constant 0 : index
    %c896 = arith.constant 896 : index
    %10 = vector.load %arg3[%c0_4, %c896] : memref<1x1024xf32, #tpu.memory_space<vmem>>, vector<1x128xf32>
    %c0_5 = arith.constant 0 : index
    %c0_6 = arith.constant 0 : index
    %11 = vector.load %arg0[%c0_5, %c0_6] : memref<80x32xf32, #tpu.memory_space<vmem>>, vector<80x32xf32>
    %c0_7 = arith.constant 0 : index
    %c0_8 = arith.constant 0 : index
    %12 = vector.load %arg1[%c0_7, %c0_8] : memref<32x32xf32, #tpu.memory_space<vmem>>, vector<32x32xf32>
    %cst = arith.constant dense<0.000000e+00> : vector<80x32xf32>
    %13 = tpu.matmul %11, %12, %cst {dimension_numbers = #tpu.dot_dimension_numbers<[1], [0], [0], [1], [0, 0, 1, 1], [], []>} : vector<80x32xf32>, vector<32x32xf32>, vector<80x32xf32> -> vector<80x32xf32>
    %14 = vector.broadcast %6 : vector<1x32xf32> to vector<80x32xf32>
    %15 = arith.addf %13, %14 : vector<80x32xf32>
    %cst_9 = arith.constant 0.000000e+00 : f32
    %16 = vector.broadcast %cst_9 : f32 to vector<80x32xf32>
    %17 = arith.maximumf %15, %16 : vector<80x32xf32>
    %18 = vector.extract_strided_slice %17 {offsets = [0, 0], sizes = [72, 32], strides = [1, 1]} : vector<80x32xf32> to vector<72x32xf32>
    %c0_10 = arith.constant 0 : index
    %c0_11 = arith.constant 0 : index
    %19 = vector.load %arg2[%c0_10, %c0_11] : memref<128x64xf32, #tpu.memory_space<vmem>>, vector<32x64xf32>
    %cst_12 = arith.constant dense<0.000000e+00> : vector<72x64xf32>
    %20 = tpu.matmul %18, %19, %cst_12 {dimension_numbers = #tpu.dot_dimension_numbers<[1], [0], [0], [1], [0, 0, 1, 1], [], []>} : vector<72x32xf32>, vector<32x64xf32>, vector<72x64xf32> -> vector<72x64xf32>
    %21 = vector.extract_strided_slice %17 {offsets = [1, 0], sizes = [72, 32], strides = [1, 1]} : vector<80x32xf32> to vector<72x32xf32>
    %c32 = arith.constant 32 : index
    %c0_13 = arith.constant 0 : index
    %22 = vector.load %arg2[%c32, %c0_13] : memref<128x64xf32, #tpu.memory_space<vmem>>, vector<32x64xf32>
    %cst_14 = arith.constant dense<0.000000e+00> : vector<72x64xf32>
    %23 = tpu.matmul %21, %22, %cst_14 {dimension_numbers = #tpu.dot_dimension_numbers<[1], [0], [0], [1], [0, 0, 1, 1], [], []>} : vector<72x32xf32>, vector<32x64xf32>, vector<72x64xf32> -> vector<72x64xf32>
    %24 = arith.addf %20, %23 : vector<72x64xf32>
    %25 = vector.extract_strided_slice %17 {offsets = [6, 0], sizes = [72, 32], strides = [1, 1]} : vector<80x32xf32> to vector<72x32xf32>
    %c64 = arith.constant 64 : index
    %c0_15 = arith.constant 0 : index
    %26 = vector.load %arg2[%c64, %c0_15] : memref<128x64xf32, #tpu.memory_space<vmem>>, vector<32x64xf32>
    %cst_16 = arith.constant dense<0.000000e+00> : vector<72x64xf32>
    %27 = tpu.matmul %25, %26, %cst_16 {dimension_numbers = #tpu.dot_dimension_numbers<[1], [0], [0], [1], [0, 0, 1, 1], [], []>} : vector<72x32xf32>, vector<32x64xf32>, vector<72x64xf32> -> vector<72x64xf32>
    %28 = arith.addf %24, %27 : vector<72x64xf32>
    %29 = vector.extract_strided_slice %17 {offsets = [7, 0], sizes = [72, 32], strides = [1, 1]} : vector<80x32xf32> to vector<72x32xf32>
    %c96 = arith.constant 96 : index
    %c0_17 = arith.constant 0 : index
    %30 = vector.load %arg2[%c96, %c0_17] : memref<128x64xf32, #tpu.memory_space<vmem>>, vector<32x64xf32>
    %cst_18 = arith.constant dense<0.000000e+00> : vector<72x64xf32>
    %31 = tpu.matmul %29, %30, %cst_18 {dimension_numbers = #tpu.dot_dimension_numbers<[1], [0], [0], [1], [0, 0, 1, 1], [], []>} : vector<72x32xf32>, vector<32x64xf32>, vector<72x64xf32> -> vector<72x64xf32>
    %32 = arith.addf %28, %31 : vector<72x64xf32>
    %33 = vector.broadcast %7 : vector<1x64xf32> to vector<72x64xf32>
    %34 = arith.addf %32, %33 : vector<72x64xf32>
    %cst_19 = arith.constant 0.000000e+00 : f32
    %35 = vector.broadcast %cst_19 : f32 to vector<72x64xf32>
    %36 = arith.maximumf %34, %35 : vector<72x64xf32>
    %37 = vector.shape_cast %36 : vector<72x64xf32> to vector<2x2304xf32>
    %c0_i32_20 = arith.constant 0 : i32
    %38 = tpu.memref_slice %arg11[%c0_i32_20] : memref<3x!tpu.dma_semaphore, #tpu.memory_space<semaphore_mem>> -> memref<1x!tpu.dma_semaphore, #tpu.memory_space<semaphore_mem>>
    %39 = tpu.memref_squeeze %38 : memref<1x!tpu.dma_semaphore, #tpu.memory_space<semaphore_mem>> -> memref<!tpu.dma_semaphore, #tpu.memory_space<semaphore_mem>>
    tpu.wait_dma2 semaphore(%39 : memref<!tpu.dma_semaphore, #tpu.memory_space<semaphore_mem>>) src(%arg4 : memref<2304x128xf32, #tpu.memory_space<any>>) dst(%arg8 : memref<2304x128xf32, #tpu.memory_space<vmem>>)
    %c0_21 = arith.constant 0 : index
    %c0_22 = arith.constant 0 : index
    %40 = vector.load %arg8[%c0_21, %c0_22] : memref<2304x128xf32, #tpu.memory_space<vmem>>, vector<2304x128xf32>
    %cst_23 = arith.constant dense<0.000000e+00> : vector<2x128xf32>
    %41 = tpu.matmul %37, %40, %cst_23 {dimension_numbers = #tpu.dot_dimension_numbers<[1], [0], [0], [1], [0, 0, 1, 1], [], []>} : vector<2x2304xf32>, vector<2304x128xf32>, vector<2x128xf32> -> vector<2x128xf32>
    %42 = vector.broadcast %8 : vector<1x128xf32> to vector<2x128xf32>
    %43 = arith.addf %41, %42 : vector<2x128xf32>
    %cst_24 = arith.constant 0.000000e+00 : f32
    %44 = vector.broadcast %cst_24 : f32 to vector<2x128xf32>
    %45 = arith.maximumf %43, %44 : vector<2x128xf32>
    %cst_25 = arith.constant 0.000000e+00 : f32
    %46 = vector.broadcast %cst_25 : f32 to vector<6x128xf32>
    %47 = tpu.concatenate %45, %46 in 0 : vector<2x128xf32>, vector<6x128xf32> -> vector<8x128xf32>
    %c1_i32_26 = arith.constant 1 : i32
    %48 = tpu.memref_slice %arg11[%c1_i32_26] : memref<3x!tpu.dma_semaphore, #tpu.memory_space<semaphore_mem>> -> memref<1x!tpu.dma_semaphore, #tpu.memory_space<semaphore_mem>>
    %49 = tpu.memref_squeeze %48 : memref<1x!tpu.dma_semaphore, #tpu.memory_space<semaphore_mem>> -> memref<!tpu.dma_semaphore, #tpu.memory_space<semaphore_mem>>
    tpu.wait_dma2 semaphore(%49 : memref<!tpu.dma_semaphore, #tpu.memory_space<semaphore_mem>>) src(%arg5 : memref<128x512xf32, #tpu.memory_space<any>>) dst(%arg9 : memref<128x512xf32, #tpu.memory_space<vmem>>)
    %c0_27 = arith.constant 0 : index
    %c0_28 = arith.constant 0 : index
    %50 = vector.load %arg9[%c0_27, %c0_28] : memref<128x512xf32, #tpu.memory_space<vmem>>, vector<128x512xf32>
    %cst_29 = arith.constant dense<0.000000e+00> : vector<8x512xf32>
    %51 = tpu.matmul %47, %50, %cst_29 {dimension_numbers = #tpu.dot_dimension_numbers<[1], [0], [0], [1], [0, 0, 1, 1], [], []>} : vector<8x128xf32>, vector<128x512xf32>, vector<8x512xf32> -> vector<8x512xf32>
    %52 = vector.broadcast %9 : vector<1x512xf32> to vector<8x512xf32>
    %53 = arith.addf %51, %52 : vector<8x512xf32>
    %cst_30 = arith.constant 0.000000e+00 : f32
    %54 = vector.broadcast %cst_30 : f32 to vector<8x512xf32>
    %55 = arith.maximumf %53, %54 : vector<8x512xf32>
    %c2_i32_31 = arith.constant 2 : i32
    %56 = tpu.memref_slice %arg11[%c2_i32_31] : memref<3x!tpu.dma_semaphore, #tpu.memory_space<semaphore_mem>> -> memref<1x!tpu.dma_semaphore, #tpu.memory_space<semaphore_mem>>
    %57 = tpu.memref_squeeze %56 : memref<1x!tpu.dma_semaphore, #tpu.memory_space<semaphore_mem>> -> memref<!tpu.dma_semaphore, #tpu.memory_space<semaphore_mem>>
    tpu.wait_dma2 semaphore(%57 : memref<!tpu.dma_semaphore, #tpu.memory_space<semaphore_mem>>) src(%arg6 : memref<512x128xf32, #tpu.memory_space<any>>) dst(%arg10 : memref<512x128xf32, #tpu.memory_space<vmem>>)
    %c0_32 = arith.constant 0 : index
    %c0_33 = arith.constant 0 : index
    %58 = vector.load %arg10[%c0_32, %c0_33] : memref<512x128xf32, #tpu.memory_space<vmem>>, vector<512x128xf32>
    %cst_34 = arith.constant dense<0.000000e+00> : vector<8x128xf32>
    %59 = tpu.matmul %55, %58, %cst_34 {dimension_numbers = #tpu.dot_dimension_numbers<[1], [0], [0], [1], [0, 0, 1, 1], [], []>} : vector<8x512xf32>, vector<512x128xf32>, vector<8x128xf32> -> vector<8x128xf32>
    %60 = vector.broadcast %10 : vector<1x128xf32> to vector<8x128xf32>
    %61 = arith.addf %59, %60 : vector<8x128xf32>
    %c0_35 = arith.constant 0 : index
    %c0_36 = arith.constant 0 : index
    %62 = vector.load %arg7[%c0_35, %c0_36] : memref<8x128xf32, #tpu.memory_space<vmem>>, vector<8x128xf32>
    tpu.vector_store %arg7[%c0_35, %c0_36], %61 {strides = array<i32>} : memref<8x128xf32, #tpu.memory_space<vmem>>, vector<8x128xf32>,
    return
  }
}

module attributes {stable_mosaic.version = 11 : i64} {
  func.func @_convdqn_kernel(%arg0: memref<80x32xf32, #tpu.memory_space<vmem>>, %arg1: memref<32x32xf32, #tpu.memory_space<vmem>>, %arg2: memref<128x64xf32, #tpu.memory_space<vmem>>, %arg3: memref<1x1024xf32, #tpu.memory_space<vmem>>, %arg4: memref<2304x128xf32, #tpu.memory_space<any>>, %arg5: memref<128x512xf32, #tpu.memory_space<any>>, %arg6: memref<512x128xf32, #tpu.memory_space<any>>, %arg7: memref<8x128xf32, #tpu.memory_space<vmem>>, %arg8: memref<2304x128xf32, #tpu.memory_space<vmem>>, %arg9: memref<128x512xf32, #tpu.memory_space<vmem>>, %arg10: memref<512x128xf32, #tpu.memory_space<vmem>>, %arg11: memref<3x!tpu.dma_semaphore, #tpu.memory_space<semaphore_mem>>) attributes {dimension_semantics = [], scalar_prefetch = 0 : i64, scratch_operands = 4 : i64, tpu.core_type = #tpu.core_type<tc>} {
    %c0_i32 = arith.constant 0 : i32
    %0 = tpu.memref_slice %arg11[%c0_i32] : memref<3x!tpu.dma_semaphore, #tpu.memory_space<semaphore_mem>> -> memref<1x!tpu.dma_semaphore, #tpu.memory_space<semaphore_mem>>
    %1 = tpu.memref_squeeze %0 : memref<1x!tpu.dma_semaphore, #tpu.memory_space<semaphore_mem>> -> memref<!tpu.dma_semaphore, #tpu.memory_space<semaphore_mem>>
    tpu.enqueue_dma source(%arg4 : memref<2304x128xf32, #tpu.memory_space<any>>) target(%arg8 : memref<2304x128xf32, #tpu.memory_space<vmem>>) target_semaphore(%1 : memref<!tpu.dma_semaphore, #tpu.memory_space<semaphore_mem>>)
    %c1_i32 = arith.constant 1 : i32
    %2 = tpu.memref_slice %arg11[%c1_i32] : memref<3x!tpu.dma_semaphore, #tpu.memory_space<semaphore_mem>> -> memref<1x!tpu.dma_semaphore, #tpu.memory_space<semaphore_mem>>
    %3 = tpu.memref_squeeze %2 : memref<1x!tpu.dma_semaphore, #tpu.memory_space<semaphore_mem>> -> memref<!tpu.dma_semaphore, #tpu.memory_space<semaphore_mem>>
    tpu.enqueue_dma source(%arg5 : memref<128x512xf32, #tpu.memory_space<any>>) target(%arg9 : memref<128x512xf32, #tpu.memory_space<vmem>>) target_semaphore(%3 : memref<!tpu.dma_semaphore, #tpu.memory_space<semaphore_mem>>)
    %c2_i32 = arith.constant 2 : i32
    %4 = tpu.memref_slice %arg11[%c2_i32] : memref<3x!tpu.dma_semaphore, #tpu.memory_space<semaphore_mem>> -> memref<1x!tpu.dma_semaphore, #tpu.memory_space<semaphore_mem>>
    %5 = tpu.memref_squeeze %4 : memref<1x!tpu.dma_semaphore, #tpu.memory_space<semaphore_mem>> -> memref<!tpu.dma_semaphore, #tpu.memory_space<semaphore_mem>>
    tpu.enqueue_dma source(%arg6 : memref<512x128xf32, #tpu.memory_space<any>>) target(%arg10 : memref<512x128xf32, #tpu.memory_space<vmem>>) target_semaphore(%5 : memref<!tpu.dma_semaphore, #tpu.memory_space<semaphore_mem>>)
    %c0 = arith.constant 0 : index
    %c0_0 = arith.constant 0 : index
    %6 = vector.load %arg3[%c0, %c0_0] : memref<1x1024xf32, #tpu.memory_space<vmem>>, vector<1x32xf32>
    %c0_1 = arith.constant 0 : index
    %c128 = arith.constant 128 : index
    %7 = vector.load %arg3[%c0_1, %c128] : memref<1x1024xf32, #tpu.memory_space<vmem>>, vector<1x64xf32>
    %c0_2 = arith.constant 0 : index
    %c256 = arith.constant 256 : index
    %8 = vector.load %arg3[%c0_2, %c256] : memref<1x1024xf32, #tpu.memory_space<vmem>>, vector<1x128xf32>
    %c0_3 = arith.constant 0 : index
    %c384 = arith.constant 384 : index
    %9 = vector.load %arg3[%c0_3, %c384] : memref<1x1024xf32, #tpu.memory_space<vmem>>, vector<1x512xf32>
    %c0_4 = arith.constant 0 : index
    %c896 = arith.constant 896 : index
    %10 = vector.load %arg3[%c0_4, %c896] : memref<1x1024xf32, #tpu.memory_space<vmem>>, vector<1x128xf32>
    %c0_5 = arith.constant 0 : index
    %c0_6 = arith.constant 0 : index
    %11 = vector.load %arg0[%c0_5, %c0_6] : memref<80x32xf32, #tpu.memory_space<vmem>>, vector<80x32xf32>
    %c0_7 = arith.constant 0 : index
    %c0_8 = arith.constant 0 : index
    %12 = vector.load %arg1[%c0_7, %c0_8] : memref<32x32xf32, #tpu.memory_space<vmem>>, vector<32x32xf32>
    %cst = arith.constant dense<0.000000e+00> : vector<80x32xf32>
    %13 = tpu.matmul %11, %12, %cst {dimension_numbers = #tpu.dot_dimension_numbers<[1], [0], [0], [1], [0, 0, 1, 1], [], []>} : vector<80x32xf32>, vector<32x32xf32>, vector<80x32xf32> -> vector<80x32xf32>
    %14 = vector.broadcast %6 : vector<1x32xf32> to vector<80x32xf32>
    %15 = arith.addf %13, %14 : vector<80x32xf32>
    %cst_9 = arith.constant 0.000000e+00 : f32
    %16 = vector.broadcast %cst_9 : f32 to vector<80x32xf32>
    %17 = arith.maximumf %15, %16 : vector<80x32xf32>
    %18 = vector.extract_strided_slice %17 {offsets = [0, 0], sizes = [72, 32], strides = [1, 1]} : vector<80x32xf32> to vector<72x32xf32>
    %c0_10 = arith.constant 0 : index
    %c0_11 = arith.constant 0 : index
    %19 = vector.load %arg2[%c0_10, %c0_11] : memref<128x64xf32, #tpu.memory_space<vmem>>, vector<32x64xf32>
    %cst_12 = arith.constant dense<0.000000e+00> : vector<72x64xf32>
    %20 = tpu.matmul %18, %19, %cst_12 {dimension_numbers = #tpu.dot_dimension_numbers<[1], [0], [0], [1], [0, 0, 1, 1], [], []>} : vector<72x32xf32>, vector<32x64xf32>, vector<72x64xf32> -> vector<72x64xf32>
    %21 = vector.extract_strided_slice %17 {offsets = [1, 0], sizes = [72, 32], strides = [1, 1]} : vector<80x32xf32> to vector<72x32xf32>
    %c32 = arith.constant 32 : index
    %c0_13 = arith.constant 0 : index
    %22 = vector.load %arg2[%c32, %c0_13] : memref<128x64xf32, #tpu.memory_space<vmem>>, vector<32x64xf32>
    %cst_14 = arith.constant dense<0.000000e+00> : vector<72x64xf32>
    %23 = tpu.matmul %21, %22, %cst_14 {dimension_numbers = #tpu.dot_dimension_numbers<[1], [0], [0], [1], [0, 0, 1, 1], [], []>} : vector<72x32xf32>, vector<32x64xf32>, vector<72x64xf32> -> vector<72x64xf32>
    %24 = arith.addf %20, %23 : vector<72x64xf32>
    %25 = vector.extract_strided_slice %17 {offsets = [6, 0], sizes = [72, 32], strides = [1, 1]} : vector<80x32xf32> to vector<72x32xf32>
    %c64 = arith.constant 64 : index
    %c0_15 = arith.constant 0 : index
    %26 = vector.load %arg2[%c64, %c0_15] : memref<128x64xf32, #tpu.memory_space<vmem>>, vector<32x64xf32>
    %cst_16 = arith.constant dense<0.000000e+00> : vector<72x64xf32>
    %27 = tpu.matmul %25, %26, %cst_16 {dimension_numbers = #tpu.dot_dimension_numbers<[1], [0], [0], [1], [0, 0, 1, 1], [], []>} : vector<72x32xf32>, vector<32x64xf32>, vector<72x64xf32> -> vector<72x64xf32>
    %28 = arith.addf %24, %27 : vector<72x64xf32>
    %29 = vector.extract_strided_slice %17 {offsets = [7, 0], sizes = [72, 32], strides = [1, 1]} : vector<80x32xf32> to vector<72x32xf32>
    %c96 = arith.constant 96 : index
    %c0_17 = arith.constant 0 : index
    %30 = vector.load %arg2[%c96, %c0_17] : memref<128x64xf32, #tpu.memory_space<vmem>>, vector<32x64xf32>
    %cst_18 = arith.constant dense<0.000000e+00> : vector<72x64xf32>
    %31 = tpu.matmul %29, %30, %cst_18 {dimension_numbers = #tpu.dot_dimension_numbers<[1], [0], [0], [1], [0, 0, 1, 1], [], []>} : vector<72x32xf32>, vector<32x64xf32>, vector<72x64xf32> -> vector<72x64xf32>
    %32 = arith.addf %28, %31 : vector<72x64xf32>
    %33 = vector.broadcast %7 : vector<1x64xf32> to vector<72x64xf32>
    %34 = arith.addf %32, %33 : vector<72x64xf32>
    %cst_19 = arith.constant 0.000000e+00 : f32
    %35 = vector.broadcast %cst_19 : f32 to vector<72x64xf32>
    %36 = arith.maximumf %34, %35 : vector<72x64xf32>
    %37 = vector.extract_strided_slice %36 {offsets = [0, 0], sizes = [1, 64], strides = [1, 1]} : vector<72x64xf32> to vector<1x64xf32>
    %38 = vector.extract_strided_slice %36 {offsets = [1, 0], sizes = [1, 64], strides = [1, 1]} : vector<72x64xf32> to vector<1x64xf32>
    %39 = vector.extract_strided_slice %36 {offsets = [2, 0], sizes = [1, 64], strides = [1, 1]} : vector<72x64xf32> to vector<1x64xf32>
    %40 = vector.extract_strided_slice %36 {offsets = [3, 0], sizes = [1, 64], strides = [1, 1]} : vector<72x64xf32> to vector<1x64xf32>
    %41 = vector.extract_strided_slice %36 {offsets = [4, 0], sizes = [1, 64], strides = [1, 1]} : vector<72x64xf32> to vector<1x64xf32>
    %42 = vector.extract_strided_slice %36 {offsets = [5, 0], sizes = [1, 64], strides = [1, 1]} : vector<72x64xf32> to vector<1x64xf32>
    %43 = vector.extract_strided_slice %36 {offsets = [6, 0], sizes = [1, 64], strides = [1, 1]} : vector<72x64xf32> to vector<1x64xf32>
    %44 = vector.extract_strided_slice %36 {offsets = [7, 0], sizes = [1, 64], strides = [1, 1]} : vector<72x64xf32> to vector<1x64xf32>
    %45 = vector.extract_strided_slice %36 {offsets = [8, 0], sizes = [1, 64], strides = [1, 1]} : vector<72x64xf32> to vector<1x64xf32>
    %46 = vector.extract_strided_slice %36 {offsets = [9, 0], sizes = [1, 64], strides = [1, 1]} : vector<72x64xf32> to vector<1x64xf32>
    %47 = vector.extract_strided_slice %36 {offsets = [10, 0], sizes = [1, 64], strides = [1, 1]} : vector<72x64xf32> to vector<1x64xf32>
    %48 = vector.extract_strided_slice %36 {offsets = [11, 0], sizes = [1, 64], strides = [1, 1]} : vector<72x64xf32> to vector<1x64xf32>
    %49 = vector.extract_strided_slice %36 {offsets = [12, 0], sizes = [1, 64], strides = [1, 1]} : vector<72x64xf32> to vector<1x64xf32>
    %50 = vector.extract_strided_slice %36 {offsets = [13, 0], sizes = [1, 64], strides = [1, 1]} : vector<72x64xf32> to vector<1x64xf32>
    %51 = vector.extract_strided_slice %36 {offsets = [14, 0], sizes = [1, 64], strides = [1, 1]} : vector<72x64xf32> to vector<1x64xf32>
    %52 = vector.extract_strided_slice %36 {offsets = [15, 0], sizes = [1, 64], strides = [1, 1]} : vector<72x64xf32> to vector<1x64xf32>
    %53 = vector.extract_strided_slice %36 {offsets = [16, 0], sizes = [1, 64], strides = [1, 1]} : vector<72x64xf32> to vector<1x64xf32>
    %54 = vector.extract_strided_slice %36 {offsets = [17, 0], sizes = [1, 64], strides = [1, 1]} : vector<72x64xf32> to vector<1x64xf32>
    %55 = vector.extract_strided_slice %36 {offsets = [18, 0], sizes = [1, 64], strides = [1, 1]} : vector<72x64xf32> to vector<1x64xf32>
    %56 = vector.extract_strided_slice %36 {offsets = [19, 0], sizes = [1, 64], strides = [1, 1]} : vector<72x64xf32> to vector<1x64xf32>
    %57 = vector.extract_strided_slice %36 {offsets = [20, 0], sizes = [1, 64], strides = [1, 1]} : vector<72x64xf32> to vector<1x64xf32>
    %58 = vector.extract_strided_slice %36 {offsets = [21, 0], sizes = [1, 64], strides = [1, 1]} : vector<72x64xf32> to vector<1x64xf32>
    %59 = vector.extract_strided_slice %36 {offsets = [22, 0], sizes = [1, 64], strides = [1, 1]} : vector<72x64xf32> to vector<1x64xf32>
    %60 = vector.extract_strided_slice %36 {offsets = [23, 0], sizes = [1, 64], strides = [1, 1]} : vector<72x64xf32> to vector<1x64xf32>
    %61 = vector.extract_strided_slice %36 {offsets = [24, 0], sizes = [1, 64], strides = [1, 1]} : vector<72x64xf32> to vector<1x64xf32>
    %62 = vector.extract_strided_slice %36 {offsets = [25, 0], sizes = [1, 64], strides = [1, 1]} : vector<72x64xf32> to vector<1x64xf32>
    %63 = vector.extract_strided_slice %36 {offsets = [26, 0], sizes = [1, 64], strides = [1, 1]} : vector<72x64xf32> to vector<1x64xf32>
    %64 = vector.extract_strided_slice %36 {offsets = [27, 0], sizes = [1, 64], strides = [1, 1]} : vector<72x64xf32> to vector<1x64xf32>
    %65 = vector.extract_strided_slice %36 {offsets = [28, 0], sizes = [1, 64], strides = [1, 1]} : vector<72x64xf32> to vector<1x64xf32>
    %66 = vector.extract_strided_slice %36 {offsets = [29, 0], sizes = [1, 64], strides = [1, 1]} : vector<72x64xf32> to vector<1x64xf32>
    %67 = vector.extract_strided_slice %36 {offsets = [30, 0], sizes = [1, 64], strides = [1, 1]} : vector<72x64xf32> to vector<1x64xf32>
    %68 = vector.extract_strided_slice %36 {offsets = [31, 0], sizes = [1, 64], strides = [1, 1]} : vector<72x64xf32> to vector<1x64xf32>
    %69 = vector.extract_strided_slice %36 {offsets = [32, 0], sizes = [1, 64], strides = [1, 1]} : vector<72x64xf32> to vector<1x64xf32>
    %70 = vector.extract_strided_slice %36 {offsets = [33, 0], sizes = [1, 64], strides = [1, 1]} : vector<72x64xf32> to vector<1x64xf32>
    %71 = vector.extract_strided_slice %36 {offsets = [34, 0], sizes = [1, 64], strides = [1, 1]} : vector<72x64xf32> to vector<1x64xf32>
    %72 = vector.extract_strided_slice %36 {offsets = [35, 0], sizes = [1, 64], strides = [1, 1]} : vector<72x64xf32> to vector<1x64xf32>
    %73 = tpu.concatenate %37, %38, %39, %40, %41, %42, %43, %44, %45, %46, %47, %48, %49, %50, %51, %52 in 1 : vector<1x64xf32>, vector<1x64xf32>, vector<1x64xf32>, vector<1x64xf32>, vector<1x64xf32>, vector<1x64xf32>, vector<1x64xf32>, vector<1x64xf32>, vector<1x64xf32>, vector<1x64xf32>, vector<1x64xf32>, vector<1x64xf32>, vector<1x64xf32>, vector<1x64xf32>, vector<1x64xf32>, vector<1x64xf32> -> vector<1x1024xf32>
    %74 = tpu.concatenate %53, %54, %55, %56, %57, %58, %59, %60, %61, %62, %63, %64, %65, %66, %67, %68 in 1 : vector<1x64xf32>, vector<1x64xf32>, vector<1x64xf32>, vector<1x64xf32>, vector<1x64xf32>, vector<1x64xf32>, vector<1x64xf32>, vector<1x64xf32>, vector<1x64xf32>, vector<1x64xf32>, vector<1x64xf32>, vector<1x64xf32>, vector<1x64xf32>, vector<1x64xf32>, vector<1x64xf32>, vector<1x64xf32> -> vector<1x1024xf32>
    %75 = tpu.concatenate %69, %70, %71, %72 in 1 : vector<1x64xf32>, vector<1x64xf32>, vector<1x64xf32>, vector<1x64xf32> -> vector<1x256xf32>
    %76 = tpu.concatenate %73, %74, %75 in 1 : vector<1x1024xf32>, vector<1x1024xf32>, vector<1x256xf32> -> vector<1x2304xf32>
    %77 = vector.extract_strided_slice %36 {offsets = [36, 0], sizes = [1, 64], strides = [1, 1]} : vector<72x64xf32> to vector<1x64xf32>
    %78 = vector.extract_strided_slice %36 {offsets = [37, 0], sizes = [1, 64], strides = [1, 1]} : vector<72x64xf32> to vector<1x64xf32>
    %79 = vector.extract_strided_slice %36 {offsets = [38, 0], sizes = [1, 64], strides = [1, 1]} : vector<72x64xf32> to vector<1x64xf32>
    %80 = vector.extract_strided_slice %36 {offsets = [39, 0], sizes = [1, 64], strides = [1, 1]} : vector<72x64xf32> to vector<1x64xf32>
    %81 = vector.extract_strided_slice %36 {offsets = [40, 0], sizes = [1, 64], strides = [1, 1]} : vector<72x64xf32> to vector<1x64xf32>
    %82 = vector.extract_strided_slice %36 {offsets = [41, 0], sizes = [1, 64], strides = [1, 1]} : vector<72x64xf32> to vector<1x64xf32>
    %83 = vector.extract_strided_slice %36 {offsets = [42, 0], sizes = [1, 64], strides = [1, 1]} : vector<72x64xf32> to vector<1x64xf32>
    %84 = vector.extract_strided_slice %36 {offsets = [43, 0], sizes = [1, 64], strides = [1, 1]} : vector<72x64xf32> to vector<1x64xf32>
    %85 = vector.extract_strided_slice %36 {offsets = [44, 0], sizes = [1, 64], strides = [1, 1]} : vector<72x64xf32> to vector<1x64xf32>
    %86 = vector.extract_strided_slice %36 {offsets = [45, 0], sizes = [1, 64], strides = [1, 1]} : vector<72x64xf32> to vector<1x64xf32>
    %87 = vector.extract_strided_slice %36 {offsets = [46, 0], sizes = [1, 64], strides = [1, 1]} : vector<72x64xf32> to vector<1x64xf32>
    %88 = vector.extract_strided_slice %36 {offsets = [47, 0], sizes = [1, 64], strides = [1, 1]} : vector<72x64xf32> to vector<1x64xf32>
    %89 = vector.extract_strided_slice %36 {offsets = [48, 0], sizes = [1, 64], strides = [1, 1]} : vector<72x64xf32> to vector<1x64xf32>
    %90 = vector.extract_strided_slice %36 {offsets = [49, 0], sizes = [1, 64], strides = [1, 1]} : vector<72x64xf32> to vector<1x64xf32>
    %91 = vector.extract_strided_slice %36 {offsets = [50, 0], sizes = [1, 64], strides = [1, 1]} : vector<72x64xf32> to vector<1x64xf32>
    %92 = vector.extract_strided_slice %36 {offsets = [51, 0], sizes = [1, 64], strides = [1, 1]} : vector<72x64xf32> to vector<1x64xf32>
    %93 = vector.extract_strided_slice %36 {offsets = [52, 0], sizes = [1, 64], strides = [1, 1]} : vector<72x64xf32> to vector<1x64xf32>
    %94 = vector.extract_strided_slice %36 {offsets = [53, 0], sizes = [1, 64], strides = [1, 1]} : vector<72x64xf32> to vector<1x64xf32>
    %95 = vector.extract_strided_slice %36 {offsets = [54, 0], sizes = [1, 64], strides = [1, 1]} : vector<72x64xf32> to vector<1x64xf32>
    %96 = vector.extract_strided_slice %36 {offsets = [55, 0], sizes = [1, 64], strides = [1, 1]} : vector<72x64xf32> to vector<1x64xf32>
    %97 = vector.extract_strided_slice %36 {offsets = [56, 0], sizes = [1, 64], strides = [1, 1]} : vector<72x64xf32> to vector<1x64xf32>
    %98 = vector.extract_strided_slice %36 {offsets = [57, 0], sizes = [1, 64], strides = [1, 1]} : vector<72x64xf32> to vector<1x64xf32>
    %99 = vector.extract_strided_slice %36 {offsets = [58, 0], sizes = [1, 64], strides = [1, 1]} : vector<72x64xf32> to vector<1x64xf32>
    %100 = vector.extract_strided_slice %36 {offsets = [59, 0], sizes = [1, 64], strides = [1, 1]} : vector<72x64xf32> to vector<1x64xf32>
    %101 = vector.extract_strided_slice %36 {offsets = [60, 0], sizes = [1, 64], strides = [1, 1]} : vector<72x64xf32> to vector<1x64xf32>
    %102 = vector.extract_strided_slice %36 {offsets = [61, 0], sizes = [1, 64], strides = [1, 1]} : vector<72x64xf32> to vector<1x64xf32>
    %103 = vector.extract_strided_slice %36 {offsets = [62, 0], sizes = [1, 64], strides = [1, 1]} : vector<72x64xf32> to vector<1x64xf32>
    %104 = vector.extract_strided_slice %36 {offsets = [63, 0], sizes = [1, 64], strides = [1, 1]} : vector<72x64xf32> to vector<1x64xf32>
    %105 = vector.extract_strided_slice %36 {offsets = [64, 0], sizes = [1, 64], strides = [1, 1]} : vector<72x64xf32> to vector<1x64xf32>
    %106 = vector.extract_strided_slice %36 {offsets = [65, 0], sizes = [1, 64], strides = [1, 1]} : vector<72x64xf32> to vector<1x64xf32>
    %107 = vector.extract_strided_slice %36 {offsets = [66, 0], sizes = [1, 64], strides = [1, 1]} : vector<72x64xf32> to vector<1x64xf32>
    %108 = vector.extract_strided_slice %36 {offsets = [67, 0], sizes = [1, 64], strides = [1, 1]} : vector<72x64xf32> to vector<1x64xf32>
    %109 = vector.extract_strided_slice %36 {offsets = [68, 0], sizes = [1, 64], strides = [1, 1]} : vector<72x64xf32> to vector<1x64xf32>
    %110 = vector.extract_strided_slice %36 {offsets = [69, 0], sizes = [1, 64], strides = [1, 1]} : vector<72x64xf32> to vector<1x64xf32>
    %111 = vector.extract_strided_slice %36 {offsets = [70, 0], sizes = [1, 64], strides = [1, 1]} : vector<72x64xf32> to vector<1x64xf32>
    %112 = vector.extract_strided_slice %36 {offsets = [71, 0], sizes = [1, 64], strides = [1, 1]} : vector<72x64xf32> to vector<1x64xf32>
    %113 = tpu.concatenate %77, %78, %79, %80, %81, %82, %83, %84, %85, %86, %87, %88, %89, %90, %91, %92 in 1 : vector<1x64xf32>, vector<1x64xf32>, vector<1x64xf32>, vector<1x64xf32>, vector<1x64xf32>, vector<1x64xf32>, vector<1x64xf32>, vector<1x64xf32>, vector<1x64xf32>, vector<1x64xf32>, vector<1x64xf32>, vector<1x64xf32>, vector<1x64xf32>, vector<1x64xf32>, vector<1x64xf32>, vector<1x64xf32> -> vector<1x1024xf32>
    %114 = tpu.concatenate %93, %94, %95, %96, %97, %98, %99, %100, %101, %102, %103, %104, %105, %106, %107, %108 in 1 : vector<1x64xf32>, vector<1x64xf32>, vector<1x64xf32>, vector<1x64xf32>, vector<1x64xf32>, vector<1x64xf32>, vector<1x64xf32>, vector<1x64xf32>, vector<1x64xf32>, vector<1x64xf32>, vector<1x64xf32>, vector<1x64xf32>, vector<1x64xf32>, vector<1x64xf32>, vector<1x64xf32>, vector<1x64xf32> -> vector<1x1024xf32>
    %115 = tpu.concatenate %109, %110, %111, %112 in 1 : vector<1x64xf32>, vector<1x64xf32>, vector<1x64xf32>, vector<1x64xf32> -> vector<1x256xf32>
    %116 = tpu.concatenate %113, %114, %115 in 1 : vector<1x1024xf32>, vector<1x1024xf32>, vector<1x256xf32> -> vector<1x2304xf32>
    %117 = tpu.concatenate %76, %116 in 0 : vector<1x2304xf32>, vector<1x2304xf32> -> vector<2x2304xf32>
    %c0_i32_20 = arith.constant 0 : i32
    %118 = tpu.memref_slice %arg11[%c0_i32_20] : memref<3x!tpu.dma_semaphore, #tpu.memory_space<semaphore_mem>> -> memref<1x!tpu.dma_semaphore, #tpu.memory_space<semaphore_mem>>
    %119 = tpu.memref_squeeze %118 : memref<1x!tpu.dma_semaphore, #tpu.memory_space<semaphore_mem>> -> memref<!tpu.dma_semaphore, #tpu.memory_space<semaphore_mem>>
    tpu.wait_dma2 semaphore(%119 : memref<!tpu.dma_semaphore, #tpu.memory_space<semaphore_mem>>) src(%arg4 : memref<2304x128xf32, #tpu.memory_space<any>>) dst(%arg8 : memref<2304x128xf32, #tpu.memory_space<vmem>>)
    %c0_21 = arith.constant 0 : index
    %c0_22 = arith.constant 0 : index
    %120 = vector.load %arg8[%c0_21, %c0_22] : memref<2304x128xf32, #tpu.memory_space<vmem>>, vector<2304x128xf32>
    %cst_23 = arith.constant dense<0.000000e+00> : vector<2x128xf32>
    %121 = tpu.matmul %117, %120, %cst_23 {dimension_numbers = #tpu.dot_dimension_numbers<[1], [0], [0], [1], [0, 0, 1, 1], [], []>} : vector<2x2304xf32>, vector<2304x128xf32>, vector<2x128xf32> -> vector<2x128xf32>
    %122 = vector.broadcast %8 : vector<1x128xf32> to vector<2x128xf32>
    %123 = arith.addf %121, %122 : vector<2x128xf32>
    %cst_24 = arith.constant 0.000000e+00 : f32
    %124 = vector.broadcast %cst_24 : f32 to vector<2x128xf32>
    %125 = arith.maximumf %123, %124 : vector<2x128xf32>
    %cst_25 = arith.constant 0.000000e+00 : f32
    %126 = vector.broadcast %cst_25 : f32 to vector<6x128xf32>
    %127 = tpu.concatenate %125, %126 in 0 : vector<2x128xf32>, vector<6x128xf32> -> vector<8x128xf32>
    %c1_i32_26 = arith.constant 1 : i32
    %128 = tpu.memref_slice %arg11[%c1_i32_26] : memref<3x!tpu.dma_semaphore, #tpu.memory_space<semaphore_mem>> -> memref<1x!tpu.dma_semaphore, #tpu.memory_space<semaphore_mem>>
    %129 = tpu.memref_squeeze %128 : memref<1x!tpu.dma_semaphore, #tpu.memory_space<semaphore_mem>> -> memref<!tpu.dma_semaphore, #tpu.memory_space<semaphore_mem>>
    tpu.wait_dma2 semaphore(%129 : memref<!tpu.dma_semaphore, #tpu.memory_space<semaphore_mem>>) src(%arg5 : memref<128x512xf32, #tpu.memory_space<any>>) dst(%arg9 : memref<128x512xf32, #tpu.memory_space<vmem>>)
    %c0_27 = arith.constant 0 : index
    %c0_28 = arith.constant 0 : index
    %130 = vector.load %arg9[%c0_27, %c0_28] : memref<128x512xf32, #tpu.memory_space<vmem>>, vector<128x512xf32>
    %cst_29 = arith.constant dense<0.000000e+00> : vector<8x512xf32>
    %131 = tpu.matmul %127, %130, %cst_29 {dimension_numbers = #tpu.dot_dimension_numbers<[1], [0], [0], [1], [0, 0, 1, 1], [], []>} : vector<8x128xf32>, vector<128x512xf32>, vector<8x512xf32> -> vector<8x512xf32>
    %132 = vector.broadcast %9 : vector<1x512xf32> to vector<8x512xf32>
    %133 = arith.addf %131, %132 : vector<8x512xf32>
    %cst_30 = arith.constant 0.000000e+00 : f32
    %134 = vector.broadcast %cst_30 : f32 to vector<8x512xf32>
    %135 = arith.maximumf %133, %134 : vector<8x512xf32>
    %c2_i32_31 = arith.constant 2 : i32
    %136 = tpu.memref_slice %arg11[%c2_i32_31] : memref<3x!tpu.dma_semaphore, #tpu.memory_space<semaphore_mem>> -> memref<1x!tpu.dma_semaphore, #tpu.memory_space<semaphore_mem>>
    %137 = tpu.memref_squeeze %136 : memref<1x!tpu.dma_semaphore, #tpu.memory_space<semaphore_mem>> -> memref<!tpu.dma_semaphore, #tpu.memory_space<semaphore_mem>>
    tpu.wait_dma2 semaphore(%137 : memref<!tpu.dma_semaphore, #tpu.memory_space<semaphore_mem>>) src(%arg6 : memref<512x128xf32, #tpu.memory_space<any>>) dst(%arg10 : memref<512x128xf32, #tpu.memory_space<vmem>>)
    %c0_32 = arith.constant 0 : index
    %c0_33 = arith.constant 0 : index
    %138 = vector.load %arg10[%c0_32, %c0_33] : memref<512x128xf32, #tpu.memory_space<vmem>>, vector<512x128xf32>
    %cst_34 = arith.constant dense<0.000000e+00> : vector<8x128xf32>
    %139 = tpu.matmul %135, %138, %cst_34 {dimension_numbers = #tpu.dot_dimension_numbers<[1], [0], [0], [1], [0, 0, 1, 1], [], []>} : vector<8x512xf32>, vector<512x128xf32>, vector<8x128xf32> -> vector<8x128xf32>
    %140 = vector.broadcast %10 : vector<1x128xf32> to vector<8x128xf32>
    %141 = arith.addf %139, %140 : vector<8x128xf32>
    %c0_35 = arith.constant 0 : index
    %c0_36 = arith.constant 0 : index
    %142 = vector.load %arg7[%c0_35, %c0_36] : memref<8x128xf32, #tpu.memory_space<vmem>>, vector<8x128xf32>
    tpu.vector_store %arg7[%c0_35, %c0_36], %141 {strides = array<i32>} : memref<8x128xf32, #tpu.memory_space<vmem>>, vector<8x128xf32>,
    return
  }
}

</mosaic_0001>

<bundles_post_ra>
// kernel: custom-call
= control target key start
LH: loop header
LB: loop body
LE: loop exit
PB: predicated region body
PF: predicated region fallthrough
CT: control target
= control target key end

     0   :  { %s6_s0 = inlined_call_operand.vmem [shape: f32[1024], index: 0, kind: output, shape index: {}]  }

// kernel: custom-call
= control target key start
LH: loop header
LB: loop body
LE: loop exit
PB: predicated region body
PF: predicated region fallthrough
CT: control target
= control target key end

     0   :  { %s6_s0 = inlined_call_operand.vmem [shape: f32[1024], index: 0, kind: output, shape index: {}]  }

// kernel: conv_dqn_forward.1
= control target key start
LH: loop header
LB: loop body
LE: loop exit
PB: predicated region body
PF: predicated region fallthrough
CT: control target
= control target key end

     0   :  { %s5882_s0 = inlined_call_operand.vmem [shape: f32[80,32], index: 0, kind: input, shape index: {}]   ;;  %s5883_s1 = inlined_call_operand.vmem [shape: f32[32,32], index: 1, kind: input, shape index: {}]   ;;  %s5884_s2 = inlined_call_operand.vmem [shape: f32[128,64], index: 2, kind: input, shape index: {}]   ;;  %s5885_s3 = inlined_call_operand.vmem [shape: f32[1,1024], index: 3, kind: input, shape index: {}]   ;;  %s5886_s4 = inlined_call_operand.vmem [shape: f32[2304,128], index: 4, kind: input, shape index: {}]   ;;  %s5887_s5 = inlined_call_operand.vmem [shape: f32[128,512], index: 5, kind: input, shape index: {}]   ;;  %s5888_s6 = inlined_call_operand.vmem [shape: f32[512,128], index: 6, kind: input, shape index: {}]   ;;  %s5889_s7 = inlined_call_operand.vmem [shape: f32[8,128], index: 7, kind: output, shape index: {}]  }
   0x1   :  { %v2882_v0 = vld [vmem:[%s5886_s4] sm:$0xff]  ;;  %v2887_v1 = vld [vmem:[%s5886_s4 + $0x8] sm:$0xff]  ;;  %v2892_v2 = vld [vmem:[%s5886_s4 + $0x10] sm:$0xff] }
   0x2   :  { %5891 = vst [vmem:[#allocation12_spill] sm:$0xff] %v2882_v0  ;;  %v2897_v3 = vld [vmem:[%s5886_s4 + $0x18] sm:$0xff]  ;;  %v2902_v4 = vld [vmem:[%s5886_s4 + $0x20] sm:$0xff]  ;;  %v2907_v5 = vld [vmem:[%s5886_s4 + $0x28] sm:$0xff] }
   0x3   :  { %5892 = vst [vmem:[#allocation13_spill] sm:$0xff] %v2887_v1  ;;  %v2912_v6 = vld [vmem:[%s5886_s4 + $0x30] sm:$0xff]  ;;  %v2917_v7 = vld [vmem:[%s5886_s4 + $0x38] sm:$0xff]  ;;  %v2922_v8 = vld [vmem:[%s5886_s4 + $0x40] sm:$0xff] }
   0x4   :  { %5893 = vst [vmem:[#allocation14_spill] sm:$0xff] %v2892_v2  ;;  %v2927_v9 = vld [vmem:[%s5886_s4 + $0x48] sm:$0xff]  ;;  %v2932_v10 = vld [vmem:[%s5886_s4 + $0x50] sm:$0xff]  ;;  %v2937_v11 = vld [vmem:[%s5886_s4 + $0x58] sm:$0xff] }
   0x5   :  { %5894 = vst [vmem:[#allocation15_spill] sm:$0xff] %v2897_v3  ;;  %v2942_v12 = vld [vmem:[%s5886_s4 + $0x60] sm:$0xff]  ;;  %v2947_v13 = vld [vmem:[%s5886_s4 + $0x68] sm:$0xff]  ;;  %v2952_v14 = vld [vmem:[%s5886_s4 + $0x70] sm:$0xff] }
   0x6   :  { %5895 = vst [vmem:[#allocation16_spill] sm:$0xff] %v2902_v4  ;;  %v2957_v15 = vld [vmem:[%s5886_s4 + $0x78] sm:$0xff]  ;;  %v2962_v16 = vld [vmem:[%s5886_s4 + $0x80] sm:$0xff]  ;;  %v2967_v17 = vld [vmem:[%s5886_s4 + $0x88] sm:$0xff] }
   0x7   :  { %5896 = vst [vmem:[#allocation17_spill] sm:$0xff] %v2907_v5  ;;  %v2972_v18 = vld [vmem:[%s5886_s4 + $0x90] sm:$0xff]  ;;  %v2977_v19 = vld [vmem:[%s5886_s4 + $0x98] sm:$0xff]  ;;  %v2982_v20 = vld [vmem:[%s5886_s4 + $0xa0] sm:$0xff] }
   0x8   :  { %5897 = vst [vmem:[#allocation18_spill] sm:$0xff] %v2912_v6  ;;  %v2987_v21 = vld [vmem:[%s5886_s4 + $0xa8] sm:$0xff]  ;;  %v2992_v22 = vld [vmem:[%s5886_s4 + $0xb0] sm:$0xff]  ;;  %v2997_v23 = vld [vmem:[%s5886_s4 + $0xb8] sm:$0xff] }
   0x9   :  { %5898 = vst [vmem:[#allocation19_spill] sm:$0xff] %v2917_v7  ;;  %v3002_v24 = vld [vmem:[%s5886_s4 + $0xc0] sm:$0xff]  ;;  %v3007_v25 = vld [vmem:[%s5886_s4 + $0xc8] sm:$0xff]  ;;  %v3012_v26 = vld [vmem:[%s5886_s4 + $0xd0] sm:$0xff] }
   0xa   :  { %5899 = vst [vmem:[#allocation20_spill] sm:$0xff] %v2922_v8  ;;  %v3017_v27 = vld [vmem:[%s5886_s4 + $0xd8] sm:$0xff]  ;;  %v3022_v28 = vld [vmem:[%s5886_s4 + $0xe0] sm:$0xff]  ;;  %v3027_v29 = vld [vmem:[%s5886_s4 + $0xe8] sm:$0xff] }
   0xb   :  { %5900 = vst [vmem:[#allocation21_spill] sm:$0xff] %v2962_v16  ;;  %v3032_v30 = vld [vmem:[%s5886_s4 + $0xf0] sm:$0xff]  ;;  %v3037_v31 = vld [vmem:[%s5886_s4 + $0xf8] sm:$0xff]  ;;  %v3042_v32 = vld [vmem:[%s5886_s4 + $0x100] sm:$0xff] }
   0xc   :  { %5901 = vst [vmem:[#allocation22_spill] sm:$0xff] %v2967_v17  ;;  %v3047_v33 = vld [vmem:[%s5886_s4 + $0x108] sm:$0xff]  ;;  %v3052_v34 = vld [vmem:[%s5886_s4 + $0x110] sm:$0xff]  ;;  %v3057_v35 = vld [vmem:[%s5886_s4 + $0x118] sm:$0xff] }
   0xd   :  { %5902 = vst [vmem:[#allocation23_spill] sm:$0xff] %v2972_v18  ;;  %v3062_v36 = vld [vmem:[%s5886_s4 + $0x120] sm:$0xff]  ;;  %v3067_v37 = vld [vmem:[%s5886_s4 + $0x128] sm:$0xff]  ;;  %v3072_v38 = vld [vmem:[%s5886_s4 + $0x130] sm:$0xff] }
   0xe   :  { %5903 = vst [vmem:[#allocation24_spill] sm:$0xff] %v2977_v19  ;;  %v3077_v39 = vld [vmem:[%s5886_s4 + $0x138] sm:$0xff]  ;;  %v3082_v40 = vld [vmem:[%s5886_s4 + $0x140] sm:$0xff]  ;;  %v3087_v41 = vld [vmem:[%s5886_s4 + $0x148] sm:$0xff] }
   0xf   :  { %5904 = vst [vmem:[#allocation25_spill] sm:$0xff] %v2982_v20  ;;  %v3092_v42 = vld [vmem:[%s5886_s4 + $0x150] sm:$0xff]  ;;  %v3097_v43 = vld [vmem:[%s5886_s4 + $0x158] sm:$0xff]  ;;  %v3102_v44 = vld [vmem:[%s5886_s4 + $0x160] sm:$0xff] }
  0x10   :  { %5905 = vst [vmem:[#allocation26_spill] sm:$0xff] %v2987_v21  ;;  %v3107_v45 = vld [vmem:[%s5886_s4 + $0x168] sm:$0xff]  ;;  %v3112_v46 = vld [vmem:[%s5886_s4 + $0x170] sm:$0xff]  ;;  %v3117_v47 = vld [vmem:[%s5886_s4 + $0x178] sm:$0xff] }
  0x11   :  { %5906 = vst [vmem:[#allocation27_spill] sm:$0xff] %v2992_v22  ;;  %v3122_v48 = vld [vmem:[%s5886_s4 + $0x180] sm:$0xff]  ;;  %v3127_v49 = vld [vmem:[%s5886_s4 + $0x188] sm:$0xff]  ;;  %v3132_v50 = vld [vmem:[%s5886_s4 + $0x190] sm:$0xff] }
  0x12   :  { %5907 = vst [vmem:[#allocation28_spill] sm:$0xff] %v2997_v23  ;;  %v3137_v51 = vld [vmem:[%s5886_s4 + $0x198] sm:$0xff]  ;;  %v3142_v52 = vld [vmem:[%s5886_s4 + $0x1a0] sm:$0xff]  ;;  %v3147_v53 = vld [vmem:[%s5886_s4 + $0x1a8] sm:$0xff] }
  0x13   :  { %5908 = vst [vmem:[#allocation29_spill] sm:$0xff] %v3002_v24  ;;  %v3152_v54 = vld [vmem:[%s5886_s4 + $0x1b0] sm:$0xff]  ;;  %v3157_v55 = vld [vmem:[%s5886_s4 + $0x1b8] sm:$0xff]  ;;  %v3162_v56 = vld [vmem:[%s5886_s4 + $0x1c0] sm:$0xff] }
  0x14   :  { %5909 = vst [vmem:[#allocation30_spill] sm:$0xff] %v3042_v32  ;;  %v3167_v57 = vld [vmem:[%s5886_s4 + $0x1c8] sm:$0xff]  ;;  %v3172_v58 = vld [vmem:[%s5886_s4 + $0x1d0] sm:$0xff]  ;;  %v3177_v59 = vld [vmem:[%s5886_s4 + $0x1d8] sm:$0xff] }
  0x15   :  { %5910 = vst [vmem:[#allocation31_spill] sm:$0xff] %v3047_v33  ;;  %v3182_v60 = vld [vmem:[%s5886_s4 + $0x1e0] sm:$0xff]  ;;  %v3187_v61 = vld [vmem:[%s5886_s4 + $0x1e8] sm:$0xff]  ;;  %v3192_v62 = vld [vmem:[%s5886_s4 + $0x1f0] sm:$0xff] }
  0x16   :  { %5911 = vst [vmem:[#allocation32_spill] sm:$0xff] %v3052_v34  ;;  %v3197_v63 = vld [vmem:[%s5886_s4 + $0x1f8] sm:$0xff]  ;;  %v3692_v16 = vld [vmem:[%s5886_s4 + $0x510] sm:$0xff] }
  0x17   :  { %5912 = vst [vmem:[#allocation33_spill] sm:$0xff] %v3057_v35  ;;  %v3677_v32 = vld [vmem:[%s5886_s4 + $0x4f8] sm:$0xff] }
  0x18   :  { %5913 = vst [vmem:[#allocation34_spill] sm:$0xff] %v3062_v36  ;;  %v3697_v0 = vld [vmem:[%s5886_s4 + $0x518] sm:$0xff] }
  0x19   :  { %5914 = vst [vmem:[#allocation35_spill] sm:$0xff] %v3067_v37 }
  0x1a   :  { %5915 = vst [vmem:[#allocation36_spill] sm:$0xff] %v3072_v38 }
  0x1b   :  { %5916 = vst [vmem:[#allocation37_spill] sm:$0xff] %v3077_v39 }
  0x1c   :  { %5917 = vst [vmem:[#allocation38_spill] sm:$0xff] %v3082_v40 }
  0x1d   :  { %5918 = vst [vmem:[#allocation39_spill] sm:$0xff] %v3122_v48  ;;  %v3202_v48 = vld [vmem:[%s5886_s4 + $0x200] sm:$0xff] }
  0x1e   :  { %5919 = vst [vmem:[#allocation40_spill] sm:$0xff] %v3127_v49  ;;  %v3207_v49 = vld [vmem:[%s5886_s4 + $0x208] sm:$0xff] }
  0x1f   :  { %5920 = vst [vmem:[#allocation41_spill] sm:$0xff] %v3132_v50  ;;  %v3212_v50 = vld [vmem:[%s5886_s4 + $0x210] sm:$0xff] }
  0x20   :  { %5921 = vst [vmem:[#allocation42_spill] sm:$0xff] %v3137_v51  ;;  %v3217_v51 = vld [vmem:[%s5886_s4 + $0x218] sm:$0xff] }
  0x21   :  { %5922 = vst [vmem:[#allocation43_spill] sm:$0xff] %v3142_v52  ;;  %v3222_v52 = vld [vmem:[%s5886_s4 + $0x220] sm:$0xff] }
  0x22   :  { %5923 = vst [vmem:[#allocation44_spill] sm:$0xff] %v3147_v53  ;;  %v3257_v53 = vld [vmem:[%s5886_s4 + $0x258] sm:$0xff] }
  0x23   :  { %5924 = vst [vmem:[#allocation45_spill] sm:$0xff] %v3152_v54  ;;  %v3267_v54 = vld [vmem:[%s5886_s4 + $0x268] sm:$0xff] }
  0x24   :  { %5925 = vst [vmem:[#allocation46_spill] sm:$0xff] %v3157_v55  ;;  %v3277_v55 = vld [vmem:[%s5886_s4 + $0x278] sm:$0xff] }
  0x25   :  { %5926 = vst [vmem:[#allocation47_spill] sm:$0xff] %v3162_v56  ;;  %v3287_v56 = vld [vmem:[%s5886_s4 + $0x288] sm:$0xff] }
  0x26   :  { %5927 = vst [vmem:[#allocation48_spill] sm:$0xff] %v3167_v57  ;;  %v3297_v57 = vld [vmem:[%s5886_s4 + $0x298] sm:$0xff] }
  0x27   :  { %5928 = vst [vmem:[#allocation49_spill] sm:$0xff] %v3172_v58  ;;  %v3367_v58 = vld [vmem:[%s5886_s4 + $0x308] sm:$0xff] }
  0x28   :  { %5929 = vst [vmem:[#allocation50_spill] sm:$0xff] %v3177_v59  ;;  %v3382_v59 = vld [vmem:[%s5886_s4 + $0x320] sm:$0xff] }
  0x29   :  { %5930 = vst [vmem:[#allocation51_spill] sm:$0xff] %v3182_v60  ;;  %v3637_v60 = vld [vmem:[%s5886_s4 + $0x4b8] sm:$0xff] }
  0x2a   :  { %5931 = vst [vmem:[#allocation52_spill] sm:$0xff] %v3187_v61  ;;  %v3657_v61 = vld [vmem:[%s5886_s4 + $0x4d8] sm:$0xff] }
  0x2b   :  { %5932 = vst [vmem:[#allocation53_spill] sm:$0xff] %v3192_v62  ;;  %v3672_v62 = vld [vmem:[%s5886_s4 + $0x4f0] sm:$0xff] }
  0x2c   :  { %5933 = vst [vmem:[#allocation54_spill] sm:$0xff] %v3197_v63  ;;  %v3687_v63 = vld [vmem:[%s5886_s4 + $0x508] sm:$0xff] }
  0x2d   :  { %5934 = vst [vmem:[#allocation55_spill] sm:$0xff] %v3202_v48  ;;  %v3227_v48 = vld [vmem:[%s5886_s4 + $0x228] sm:$0xff] }
  0x2e   :  { %5935 = vst [vmem:[#allocation56_spill] sm:$0xff] %v3207_v49  ;;  %v3232_v49 = vld [vmem:[%s5886_s4 + $0x230] sm:$0xff] }
  0x2f   :  { %5936 = vst [vmem:[#allocation57_spill] sm:$0xff] %v3212_v50  ;;  %v3237_v50 = vld [vmem:[%s5886_s4 + $0x238] sm:$0xff] }
  0x30   :  { %5937 = vst [vmem:[#allocation58_spill] sm:$0xff] %v3217_v51  ;;  %v3242_v51 = vld [vmem:[%s5886_s4 + $0x240] sm:$0xff] }
  0x31   :  { %5938 = vst [vmem:[#allocation59_spill] sm:$0xff] %v3222_v52  ;;  %v3247_v52 = vld [vmem:[%s5886_s4 + $0x248] sm:$0xff] }
  0x32   :  { %5939 = vst [vmem:[#allocation60_spill] sm:$0xff] %v3227_v48  ;;  %v3252_v48 = vld [vmem:[%s5886_s4 + $0x250] sm:$0xff] }
  0x33   :  { %5940 = vst [vmem:[#allocation61_spill] sm:$0xff] %v3232_v49  ;;  %v3262_v49 = vld [vmem:[%s5886_s4 + $0x260] sm:$0xff] }
  0x34   :  { %5941 = vst [vmem:[#allocation62_spill] sm:$0xff] %v3237_v50  ;;  %v3272_v50 = vld [vmem:[%s5886_s4 + $0x270] sm:$0xff] }
  0x35   :  { %5942 = vst [vmem:[#allocation63_spill] sm:$0xff] %v3242_v51  ;;  %v3282_v51 = vld [vmem:[%s5886_s4 + $0x280] sm:$0xff] }
  0x36   :  { %5943 = vst [vmem:[#allocation64_spill] sm:$0xff] %v3247_v52  ;;  %v3292_v52 = vld [vmem:[%s5886_s4 + $0x290] sm:$0xff] }
  0x37   :  { %5944 = vst [vmem:[#allocation65_spill] sm:$0xff] %v3252_v48  ;;  %v3302_v48 = vld [vmem:[%s5886_s4 + $0x2a0] sm:$0xff] }
  0x38   :  { %5945 = vst [vmem:[#allocation66_spill] sm:$0xff] %v3257_v53  ;;  %v3377_v53 = vld [vmem:[%s5886_s4 + $0x318] sm:$0xff] }
  0x39   :  { %5946 = vst [vmem:[#allocation67_spill] sm:$0xff] %v3262_v49  ;;  %v3632_v49 = vld [vmem:[%s5886_s4 + $0x4b0] sm:$0xff] }
  0x3a   :  { %5947 = vst [vmem:[#allocation68_spill] sm:$0xff] %v3267_v54  ;;  %v3652_v54 = vld [vmem:[%s5886_s4 + $0x4d0] sm:$0xff] }
  0x3b   :  { %5948 = vst [vmem:[#allocation69_spill] sm:$0xff] %v3272_v50  ;;  %v3667_v50 = vld [vmem:[%s5886_s4 + $0x4e8] sm:$0xff] }
  0x3c   :  { %5949 = vst [vmem:[#allocation70_spill] sm:$0xff] %v3277_v55  ;;  %v3682_v55 = vld [vmem:[%s5886_s4 + $0x500] sm:$0xff] }
  0x3d   :  { %5950 = vst [vmem:[#allocation71_spill] sm:$0xff] %v3282_v51  ;;  %v3307_v51 = vld [vmem:[%s5886_s4 + $0x2a8] sm:$0xff] }
  0x3e   :  { %5951 = vst [vmem:[#allocation72_spill] sm:$0xff] %v3287_v56  ;;  %v3312_v56 = vld [vmem:[%s5886_s4 + $0x2b0] sm:$0xff] }
  0x3f   :  { %5952 = vst [vmem:[#allocation73_spill] sm:$0xff] %v3292_v52  ;;  %v3317_v52 = vld [vmem:[%s5886_s4 + $0x2b8] sm:$0xff] }
  0x40   :  { %5953 = vst [vmem:[#allocation74_spill] sm:$0xff] %v3297_v57  ;;  %v3322_v57 = vld [vmem:[%s5886_s4 + $0x2c0] sm:$0xff] }
  0x41   :  { %5954 = vst [vmem:[#allocation75_spill] sm:$0xff] %v3302_v48  ;;  %v3327_v48 = vld [vmem:[%s5886_s4 + $0x2c8] sm:$0xff] }
  0x42   :  { %5955 = vst [vmem:[#allocation76_spill] sm:$0xff] %v3307_v51  ;;  %v3332_v51 = vld [vmem:[%s5886_s4 + $0x2d0] sm:$0xff] }
  0x43   :  { %5956 = vst [vmem:[#allocation77_spill] sm:$0xff] %v3312_v56  ;;  %v3337_v56 = vld [vmem:[%s5886_s4 + $0x2d8] sm:$0xff] }
  0x44   :  { %5957 = vst [vmem:[#allocation78_spill] sm:$0xff] %v3317_v52  ;;  %v3342_v52 = vld [vmem:[%s5886_s4 + $0x2e0] sm:$0xff] }
  0x45   :  { %5958 = vst [vmem:[#allocation79_spill] sm:$0xff] %v3322_v57  ;;  %v3347_v57 = vld [vmem:[%s5886_s4 + $0x2e8] sm:$0xff] }
  0x46   :  { %5959 = vst [vmem:[#allocation80_spill] sm:$0xff] %v3327_v48  ;;  %v3352_v48 = vld [vmem:[%s5886_s4 + $0x2f0] sm:$0xff] }
  0x47   :  { %5960 = vst [vmem:[#allocation81_spill] sm:$0xff] %v3332_v51  ;;  %v3357_v51 = vld [vmem:[%s5886_s4 + $0x2f8] sm:$0xff] }
  0x48   :  { %5961 = vst [vmem:[#allocation82_spill] sm:$0xff] %v3337_v56  ;;  %v3362_v56 = vld [vmem:[%s5886_s4 + $0x300] sm:$0xff] }
  0x49   :  { %5962 = vst [vmem:[#allocation83_spill] sm:$0xff] %v3342_v52  ;;  %v3372_v52 = vld [vmem:[%s5886_s4 + $0x310] sm:$0xff] }
  0x4a   :  { %5963 = vst [vmem:[#allocation84_spill] sm:$0xff] %v3347_v57  ;;  %v3627_v57 = vld [vmem:[%s5886_s4 + $0x4a8] sm:$0xff] }
  0x4b   :  { %5964 = vst [vmem:[#allocation85_spill] sm:$0xff] %v3352_v48  ;;  %v3647_v48 = vld [vmem:[%s5886_s4 + $0x4c8] sm:$0xff] }
  0x4c   :  { %5965 = vst [vmem:[#allocation86_spill] sm:$0xff] %v3357_v51  ;;  %v3662_v51 = vld [vmem:[%s5886_s4 + $0x4e0] sm:$0xff] }
  0x4d   :  { %5966 = vst [vmem:[#allocation87_spill] sm:$0xff] %v3362_v56  ;;  %v3387_v56 = vld [vmem:[%s5886_s4 + $0x328] sm:$0xff] }
  0x4e   :  { %5967 = vst [vmem:[#allocation88_spill] sm:$0xff] %v3367_v58  ;;  %v3392_v58 = vld [vmem:[%s5886_s4 + $0x330] sm:$0xff] }
  0x4f   :  { %5968 = vst [vmem:[#allocation89_spill] sm:$0xff] %v3372_v52  ;;  %v3397_v52 = vld [vmem:[%s5886_s4 + $0x338] sm:$0xff] }
  0x50   :  { %5969 = vst [vmem:[#allocation90_spill] sm:$0xff] %v3377_v53  ;;  %v3402_v53 = vld [vmem:[%s5886_s4 + $0x340] sm:$0xff] }
  0x51   :  { %5970 = vst [vmem:[#allocation91_spill] sm:$0xff] %v3382_v59  ;;  %v3407_v59 = vld [vmem:[%s5886_s4 + $0x348] sm:$0xff] }
  0x52   :  { %5971 = vst [vmem:[#allocation92_spill] sm:$0xff] %v3387_v56  ;;  %v3412_v56 = vld [vmem:[%s5886_s4 + $0x350] sm:$0xff] }
  0x53   :  { %5972 = vst [vmem:[#allocation93_spill] sm:$0xff] %v3392_v58  ;;  %v3417_v58 = vld [vmem:[%s5886_s4 + $0x358] sm:$0xff] }
  0x54   :  { %5973 = vst [vmem:[#allocation94_spill] sm:$0xff] %v3397_v52  ;;  %v3422_v52 = vld [vmem:[%s5886_s4 + $0x360] sm:$0xff] }
  0x55   :  { %5974 = vst [vmem:[#allocation95_spill] sm:$0xff] %v3402_v53  ;;  %v3427_v53 = vld [vmem:[%s5886_s4 + $0x368] sm:$0xff] }
  0x56   :  { %5975 = vst [vmem:[#allocation96_spill] sm:$0xff] %v3407_v59  ;;  %v3432_v59 = vld [vmem:[%s5886_s4 + $0x370] sm:$0xff] }
  0x57   :  { %5976 = vst [vmem:[#allocation97_spill] sm:$0xff] %v3412_v56  ;;  %v3437_v56 = vld [vmem:[%s5886_s4 + $0x378] sm:$0xff] }
  0x58   :  { %5977 = vst [vmem:[#allocation98_spill] sm:$0xff] %v3417_v58  ;;  %v3442_v58 = vld [vmem:[%s5886_s4 + $0x380] sm:$0xff] }
  0x59   :  { %5978 = vst [vmem:[#allocation99_spill] sm:$0xff] %v3422_v52  ;;  %v3447_v52 = vld [vmem:[%s5886_s4 + $0x388] sm:$0xff] }
  0x5a   :  { %5979 = vst [vmem:[#allocation100_spill] sm:$0xff] %v3427_v53  ;;  %v3452_v53 = vld [vmem:[%s5886_s4 + $0x390] sm:$0xff] }
  0x5b   :  { %5980 = vst [vmem:[#allocation101_spill] sm:$0xff] %v3432_v59  ;;  %v3457_v59 = vld [vmem:[%s5886_s4 + $0x398] sm:$0xff] }
  0x5c   :  { %5981 = vst [vmem:[#allocation102_spill] sm:$0xff] %v3437_v56  ;;  %v3462_v56 = vld [vmem:[%s5886_s4 + $0x3a0] sm:$0xff] }
  0x5d   :  { %5982 = vst [vmem:[#allocation103_spill] sm:$0xff] %v3442_v58  ;;  %v3467_v58 = vld [vmem:[%s5886_s4 + $0x3a8] sm:$0xff] }
  0x5e   :  { %5983 = vst [vmem:[#allocation104_spill] sm:$0xff] %v3447_v52  ;;  %v3472_v52 = vld [vmem:[%s5886_s4 + $0x3b0] sm:$0xff] }
  0x5f   :  { %5984 = vst [vmem:[#allocation105_spill] sm:$0xff] %v3452_v53  ;;  %v3477_v53 = vld [vmem:[%s5886_s4 + $0x3b8] sm:$0xff] }
  0x60   :  { %5985 = vst [vmem:[#allocation106_spill] sm:$0xff] %v3457_v59  ;;  %v3482_v59 = vld [vmem:[%s5886_s4 + $0x3c0] sm:$0xff] }
  0x61   :  { %5986 = vst [vmem:[#allocation107_spill] sm:$0xff] %v3462_v56  ;;  %v3487_v56 = vld [vmem:[%s5886_s4 + $0x3c8] sm:$0xff] }
  0x62   :  { %5987 = vst [vmem:[#allocation108_spill] sm:$0xff] %v3467_v58  ;;  %v3492_v58 = vld [vmem:[%s5886_s4 + $0x3d0] sm:$0xff] }
  0x63   :  { %5988 = vst [vmem:[#allocation109_spill] sm:$0xff] %v3472_v52  ;;  %v3497_v52 = vld [vmem:[%s5886_s4 + $0x3d8] sm:$0xff] }
  0x64   :  { %5989 = vst [vmem:[#allocation110_spill] sm:$0xff] %v3477_v53  ;;  %v3502_v53 = vld [vmem:[%s5886_s4 + $0x3e0] sm:$0xff] }
  0x65   :  { %5990 = vst [vmem:[#allocation111_spill] sm:$0xff] %v3482_v59  ;;  %v3507_v59 = vld [vmem:[%s5886_s4 + $0x3e8] sm:$0xff] }
  0x66   :  { %5991 = vst [vmem:[#allocation112_spill] sm:$0xff] %v3487_v56  ;;  %v3512_v56 = vld [vmem:[%s5886_s4 + $0x3f0] sm:$0xff] }
  0x67   :  { %5992 = vst [vmem:[#allocation113_spill] sm:$0xff] %v3492_v58  ;;  %v3517_v58 = vld [vmem:[%s5886_s4 + $0x3f8] sm:$0xff] }
  0x68   :  { %5993 = vst [vmem:[#allocation114_spill] sm:$0xff] %v3497_v52  ;;  %v3522_v52 = vld [vmem:[%s5886_s4 + $0x400] sm:$0xff] }
  0x69   :  { %5994 = vst [vmem:[#allocation115_spill] sm:$0xff] %v3502_v53  ;;  %v3527_v53 = vld [vmem:[%s5886_s4 + $0x408] sm:$0xff] }
  0x6a   :  { %5995 = vst [vmem:[#allocation116_spill] sm:$0xff] %v3507_v59  ;;  %v3532_v59 = vld [vmem:[%s5886_s4 + $0x410] sm:$0xff] }
  0x6b   :  { %5996 = vst [vmem:[#allocation117_spill] sm:$0xff] %v3512_v56  ;;  %v3537_v56 = vld [vmem:[%s5886_s4 + $0x418] sm:$0xff] }
  0x6c   :  { %5997 = vst [vmem:[#allocation118_spill] sm:$0xff] %v3517_v58  ;;  %v3542_v58 = vld [vmem:[%s5886_s4 + $0x420] sm:$0xff] }
  0x6d   :  { %5998 = vst [vmem:[#allocation119_spill] sm:$0xff] %v3522_v52  ;;  %v3547_v52 = vld [vmem:[%s5886_s4 + $0x428] sm:$0xff] }
  0x6e   :  { %5999 = vst [vmem:[#allocation120_spill] sm:$0xff] %v3527_v53  ;;  %v3552_v53 = vld [vmem:[%s5886_s4 + $0x430] sm:$0xff] }
  0x6f   :  { %6000 = vst [vmem:[#allocation121_spill] sm:$0xff] %v3532_v59  ;;  %v3557_v59 = vld [vmem:[%s5886_s4 + $0x438] sm:$0xff] }
  0x70   :  { %6001 = vst [vmem:[#allocation122_spill] sm:$0xff] %v3537_v56  ;;  %v3562_v56 = vld [vmem:[%s5886_s4 + $0x440] sm:$0xff] }
  0x71   :  { %6002 = vst [vmem:[#allocation123_spill] sm:$0xff] %v3542_v58  ;;  %v3567_v58 = vld [vmem:[%s5886_s4 + $0x448] sm:$0xff] }
  0x72   :  { %6003 = vst [vmem:[#allocation124_spill] sm:$0xff] %v3547_v52  ;;  %v3572_v52 = vld [vmem:[%s5886_s4 + $0x450] sm:$0xff] }
  0x73   :  { %6004 = vst [vmem:[#allocation125_spill] sm:$0xff] %v3552_v53  ;;  %v3577_v53 = vld [vmem:[%s5886_s4 + $0x458] sm:$0xff] }
  0x74   :  { %6005 = vst [vmem:[#allocation126_spill] sm:$0xff] %v3557_v59  ;;  %v3582_v59 = vld [vmem:[%s5886_s4 + $0x460] sm:$0xff] }
  0x75   :  { %6006 = vst [vmem:[#allocation127_spill] sm:$0xff] %v3562_v56  ;;  %v3587_v56 = vld [vmem:[%s5886_s4 + $0x468] sm:$0xff] }
  0x76   :  { %6007 = vst [vmem:[#allocation128_spill] sm:$0xff] %v3567_v58  ;;  %v3592_v58 = vld [vmem:[%s5886_s4 + $0x470] sm:$0xff] }
  0x77   :  { %6008 = vst [vmem:[#allocation129_spill] sm:$0xff] %v3572_v52  ;;  %v3597_v52 = vld [vmem:[%s5886_s4 + $0x478] sm:$0xff] }
  0x78   :  { %6009 = vst [vmem:[#allocation130_spill] sm:$0xff] %v3577_v53  ;;  %v3602_v53 = vld [vmem:[%s5886_s4 + $0x480] sm:$0xff] }
  0x79   :  { %6010 = vst [vmem:[#allocation131_spill] sm:$0xff] %v3582_v59  ;;  %v3607_v59 = vld [vmem:[%s5886_s4 + $0x488] sm:$0xff] }
  0x7a   :  { %6011 = vst [vmem:[#allocation132_spill] sm:$0xff] %v3587_v56  ;;  %v3612_v56 = vld [vmem:[%s5886_s4 + $0x490] sm:$0xff] }
  0x7b   :  { %6012 = vst [vmem:[#allocation133_spill] sm:$0xff] %v3592_v58  ;;  %v3617_v58 = vld [vmem:[%s5886_s4 + $0x498] sm:$0xff] }
  0x7c   :  { %6013 = vst [vmem:[#allocation134_spill] sm:$0xff] %v3597_v52  ;;  %v3622_v52 = vld [vmem:[%s5886_s4 + $0x4a0] sm:$0xff] }
  0x7d   :  { %6014 = vst [vmem:[#allocation135_spill] sm:$0xff] %v3602_v53  ;;  %v3642_v53 = vld [vmem:[%s5886_s4 + $0x4c0] sm:$0xff] }
  0x7e   :  { %6015 = vst [vmem:[#allocation136_spill] sm:$0xff] %v3607_v59  ;;  %v3702_v59 = vld [vmem:[%s5886_s4 + $0x520] sm:$0xff] }
  0x7f   :  { %6016 = vst [vmem:[#allocation137_spill] sm:$0xff] %v3612_v56 }
  0x80   :  { %6017 = vst [vmem:[#allocation138_spill] sm:$0xff] %v3617_v58 }
  0x81   :  { %6018 = vst [vmem:[#allocation139_spill] sm:$0xff] %v3622_v52 }
  0x82   :  { %6019 = vst [vmem:[#allocation140_spill] sm:$0xff] %v3627_v57 }
  0x83   :  { %6020 = vst [vmem:[#allocation141_spill] sm:$0xff] %v3632_v49 }
  0x84   :  { %6021 = vst [vmem:[#allocation142_spill] sm:$0xff] %v3637_v60 }
  0x85   :  { %6022 = vst [vmem:[#allocation143_spill] sm:$0xff] %v3642_v53 }
  0x86   :  { %6023 = vst [vmem:[#allocation144_spill] sm:$0xff] %v3647_v48 }
  0x87   :  { %6024 = vst [vmem:[#allocation145_spill] sm:$0xff] %v3682_v55  ;;  %v3707_v55 = vld [vmem:[%s5886_s4 + $0x528] sm:$0xff] }
  0x88   :  { %6025 = vst [vmem:[#allocation146_spill] sm:$0xff] %v3687_v63  ;;  %v3712_v63 = vld [vmem:[%s5886_s4 + $0x530] sm:$0xff] }
  0x89   :  { %6026 = vst [vmem:[#allocation147_spill] sm:$0xff] %v3692_v16  ;;  %v3717_v16 = vld [vmem:[%s5886_s4 + $0x538] sm:$0xff] }
  0x8a   :  { %6027 = vst [vmem:[#allocation148_spill] sm:$0xff] %v3697_v0  ;;  %v3722_v0 = vld [vmem:[%s5886_s4 + $0x540] sm:$0xff] }
  0x8b   :  { %6028 = vst [vmem:[#allocation149_spill] sm:$0xff] %v3702_v59  ;;  %v3727_v59 = vld [vmem:[%s5886_s4 + $0x548] sm:$0xff] }
  0x8c   :  { %6029 = vst [vmem:[#allocation150_spill] sm:$0xff] %v3707_v55  ;;  %v3732_v55 = vld [vmem:[%s5886_s4 + $0x550] sm:$0xff] }
  0x8d   :  { %6030 = vst [vmem:[#allocation151_spill] sm:$0xff] %v3712_v63  ;;  %v3737_v63 = vld [vmem:[%s5886_s4 + $0x558] sm:$0xff] }
  0x8e   :  { %6031 = vst [vmem:[#allocation152_spill] sm:$0xff] %v3717_v16  ;;  %v3742_v16 = vld [vmem:[%s5886_s4 + $0x560] sm:$0xff] }
  0x8f   :  { %6032 = vst [vmem:[#allocation153_spill] sm:$0xff] %v3722_v0  ;;  %v3747_v0 = vld [vmem:[%s5886_s4 + $0x568] sm:$0xff] }
  0x90   :  { %6033 = vst [vmem:[#allocation154_spill] sm:$0xff] %v3727_v59  ;;  %v3752_v59 = vld [vmem:[%s5886_s4 + $0x570] sm:$0xff] }
  0x91   :  { %6034 = vst [vmem:[#allocation155_spill] sm:$0xff] %v3732_v55  ;;  %v3757_v55 = vld [vmem:[%s5886_s4 + $0x578] sm:$0xff] }
  0x92   :  { %6035 = vst [vmem:[#allocation156_spill] sm:$0xff] %v3737_v63  ;;  %v3762_v63 = vld [vmem:[%s5886_s4 + $0x580] sm:$0xff] }
  0x93   :  { %6036 = vst [vmem:[#allocation157_spill] sm:$0xff] %v3742_v16  ;;  %v3767_v16 = vld [vmem:[%s5886_s4 + $0x588] sm:$0xff] }
  0x94   :  { %6037 = vst [vmem:[#allocation158_spill] sm:$0xff] %v3747_v0  ;;  %v3772_v0 = vld [vmem:[%s5886_s4 + $0x590] sm:$0xff] }
  0x95   :  { %6038 = vst [vmem:[#allocation159_spill] sm:$0xff] %v3752_v59  ;;  %v3777_v59 = vld [vmem:[%s5886_s4 + $0x598] sm:$0xff] }
  0x96   :  { %6039 = vst [vmem:[#allocation160_spill] sm:$0xff] %v3757_v55  ;;  %v3782_v55 = vld [vmem:[%s5886_s4 + $0x5a0] sm:$0xff] }
  0x97   :  { %6040 = vst [vmem:[#allocation161_spill] sm:$0xff] %v3762_v63  ;;  %v3787_v63 = vld [vmem:[%s5886_s4 + $0x5a8] sm:$0xff] }
  0x98   :  { %6041 = vst [vmem:[#allocation162_spill] sm:$0xff] %v3767_v16  ;;  %v3792_v16 = vld [vmem:[%s5886_s4 + $0x5b0] sm:$0xff] }
  0x99   :  { %6042 = vst [vmem:[#allocation163_spill] sm:$0xff] %v3772_v0  ;;  %v3797_v0 = vld [vmem:[%s5886_s4 + $0x5b8] sm:$0xff] }
  0x9a   :  { %6043 = vst [vmem:[#allocation164_spill] sm:$0xff] %v3777_v59  ;;  %v3802_v59 = vld [vmem:[%s5886_s4 + $0x5c0] sm:$0xff] }
  0x9b   :  { %6044 = vst [vmem:[#allocation165_spill] sm:$0xff] %v3782_v55  ;;  %v3807_v55 = vld [vmem:[%s5886_s4 + $0x5c8] sm:$0xff] }
  0x9c   :  { %6045 = vst [vmem:[#allocation166_spill] sm:$0xff] %v3787_v63  ;;  %v3812_v63 = vld [vmem:[%s5886_s4 + $0x5d0] sm:$0xff] }
  0x9d   :  { %6046 = vst [vmem:[#allocation167_spill] sm:$0xff] %v3792_v16  ;;  %v3817_v16 = vld [vmem:[%s5886_s4 + $0x5d8] sm:$0xff] }
  0x9e   :  { %6047 = vst [vmem:[#allocation168_spill] sm:$0xff] %v3797_v0  ;;  %v3822_v0 = vld [vmem:[%s5886_s4 + $0x5e0] sm:$0xff] }
  0x9f   :  { %6048 = vst [vmem:[#allocation169_spill] sm:$0xff] %v3802_v59  ;;  %v3827_v59 = vld [vmem:[%s5886_s4 + $0x5e8] sm:$0xff] }
  0xa0   :  { %6049 = vst [vmem:[#allocation170_spill] sm:$0xff] %v3807_v55  ;;  %v3832_v55 = vld [vmem:[%s5886_s4 + $0x5f0] sm:$0xff] }
  0xa1   :  { %6050 = vst [vmem:[#allocation171_spill] sm:$0xff] %v3812_v63  ;;  %v3837_v63 = vld [vmem:[%s5886_s4 + $0x5f8] sm:$0xff] }
  0xa2   :  { %6051 = vst [vmem:[#allocation172_spill] sm:$0xff] %v3817_v16  ;;  %v3842_v16 = vld [vmem:[%s5886_s4 + $0x600] sm:$0xff] }
  0xa3   :  { %6052 = vst [vmem:[#allocation173_spill] sm:$0xff] %v3822_v0  ;;  %v3847_v0 = vld [vmem:[%s5886_s4 + $0x608] sm:$0xff] }
  0xa4   :  { %6053 = vst [vmem:[#allocation174_spill] sm:$0xff] %v3827_v59  ;;  %v3852_v59 = vld [vmem:[%s5886_s4 + $0x610] sm:$0xff] }
  0xa5   :  { %6054 = vst [vmem:[#allocation175_spill] sm:$0xff] %v3832_v55  ;;  %v3857_v55 = vld [vmem:[%s5886_s4 + $0x618] sm:$0xff] }
  0xa6   :  { %6055 = vst [vmem:[#allocation176_spill] sm:$0xff] %v3837_v63  ;;  %v3862_v63 = vld [vmem:[%s5886_s4 + $0x620] sm:$0xff] }
  0xa7   :  { %6056 = vst [vmem:[#allocation177_spill] sm:$0xff] %v3842_v16  ;;  %v3867_v16 = vld [vmem:[%s5886_s4 + $0x628] sm:$0xff] }
  0xa8   :  { %6057 = vst [vmem:[#allocation178_spill] sm:$0xff] %v3847_v0  ;;  %v3872_v0 = vld [vmem:[%s5886_s4 + $0x630] sm:$0xff] }
  0xa9   :  { %6058 = vst [vmem:[#allocation179_spill] sm:$0xff] %v3852_v59  ;;  %v3877_v59 = vld [vmem:[%s5886_s4 + $0x638] sm:$0xff] }
  0xaa   :  { %6059 = vst [vmem:[#allocation180_spill] sm:$0xff] %v3857_v55  ;;  %v3882_v55 = vld [vmem:[%s5886_s4 + $0x640] sm:$0xff] }
  0xab   :  { %6060 = vst [vmem:[#allocation181_spill] sm:$0xff] %v3862_v63  ;;  %v3887_v63 = vld [vmem:[%s5886_s4 + $0x648] sm:$0xff] }
  0xac   :  { %6061 = vst [vmem:[#allocation182_spill] sm:$0xff] %v3867_v16  ;;  %v3892_v16 = vld [vmem:[%s5886_s4 + $0x650] sm:$0xff] }
  0xad   :  { %6062 = vst [vmem:[#allocation183_spill] sm:$0xff] %v3872_v0  ;;  %v3897_v0 = vld [vmem:[%s5886_s4 + $0x658] sm:$0xff] }
  0xae   :  { %6063 = vst [vmem:[#allocation184_spill] sm:$0xff] %v3877_v59  ;;  %v3902_v59 = vld [vmem:[%s5886_s4 + $0x660] sm:$0xff] }
  0xaf   :  { %6064 = vst [vmem:[#allocation185_spill] sm:$0xff] %v3882_v55  ;;  %v3907_v55 = vld [vmem:[%s5886_s4 + $0x668] sm:$0xff] }
  0xb0   :  { %6065 = vst [vmem:[#allocation186_spill] sm:$0xff] %v3887_v63  ;;  %v3912_v63 = vld [vmem:[%s5886_s4 + $0x670] sm:$0xff] }
  0xb1   :  { %6066 = vst [vmem:[#allocation187_spill] sm:$0xff] %v3892_v16  ;;  %v3917_v16 = vld [vmem:[%s5886_s4 + $0x678] sm:$0xff] }
  0xb2   :  { %6067 = vst [vmem:[#allocation188_spill] sm:$0xff] %v3897_v0  ;;  %v3922_v0 = vld [vmem:[%s5886_s4 + $0x680] sm:$0xff] }
  0xb3   :  { %6068 = vst [vmem:[#allocation189_spill] sm:$0xff] %v3902_v59  ;;  %v3927_v59 = vld [vmem:[%s5886_s4 + $0x688] sm:$0xff] }
  0xb4   :  { %6069 = vst [vmem:[#allocation190_spill] sm:$0xff] %v3907_v55  ;;  %v3932_v55 = vld [vmem:[%s5886_s4 + $0x690] sm:$0xff] }
  0xb5   :  { %6070 = vst [vmem:[#allocation191_spill] sm:$0xff] %v3912_v63  ;;  %v3937_v63 = vld [vmem:[%s5886_s4 + $0x698] sm:$0xff] }
  0xb6   :  { %6071 = vst [vmem:[#allocation192_spill] sm:$0xff] %v3917_v16  ;;  %v3942_v16 = vld [vmem:[%s5886_s4 + $0x6a0] sm:$0xff] }
  0xb7   :  { %6072 = vst [vmem:[#allocation193_spill] sm:$0xff] %v3922_v0  ;;  %v3947_v0 = vld [vmem:[%s5886_s4 + $0x6a8] sm:$0xff] }
  0xb8   :  { %6073 = vst [vmem:[#allocation194_spill] sm:$0xff] %v3927_v59  ;;  %v3952_v59 = vld [vmem:[%s5886_s4 + $0x6b0] sm:$0xff] }
  0xb9   :  { %6074 = vst [vmem:[#allocation195_spill] sm:$0xff] %v3932_v55  ;;  %v3957_v55 = vld [vmem:[%s5886_s4 + $0x6b8] sm:$0xff] }
  0xba   :  { %6075 = vst [vmem:[#allocation196_spill] sm:$0xff] %v3937_v63  ;;  %v3962_v63 = vld [vmem:[%s5886_s4 + $0x6c0] sm:$0xff] }
  0xbb   :  { %6076 = vst [vmem:[#allocation197_spill] sm:$0xff] %v3942_v16  ;;  %v3967_v16 = vld [vmem:[%s5886_s4 + $0x6c8] sm:$0xff] }
  0xbc   :  { %6077 = vst [vmem:[#allocation198_spill] sm:$0xff] %v3947_v0  ;;  %v3972_v0 = vld [vmem:[%s5886_s4 + $0x6d0] sm:$0xff] }
  0xbd   :  { %6078 = vst [vmem:[#allocation199_spill] sm:$0xff] %v3952_v59  ;;  %v3977_v59 = vld [vmem:[%s5886_s4 + $0x6d8] sm:$0xff] }
  0xbe   :  { %6079 = vst [vmem:[#allocation200_spill] sm:$0xff] %v3957_v55  ;;  %v3982_v55 = vld [vmem:[%s5886_s4 + $0x6e0] sm:$0xff] }
  0xbf   :  { %6080 = vst [vmem:[#allocation201_spill] sm:$0xff] %v3962_v63  ;;  %v3987_v63 = vld [vmem:[%s5886_s4 + $0x6e8] sm:$0xff] }
  0xc0   :  { %6081 = vst [vmem:[#allocation202_spill] sm:$0xff] %v3967_v16  ;;  %v3992_v16 = vld [vmem:[%s5886_s4 + $0x6f0] sm:$0xff] }
  0xc1   :  { %6082 = vst [vmem:[#allocation203_spill] sm:$0xff] %v3972_v0  ;;  %v3997_v0 = vld [vmem:[%s5886_s4 + $0x6f8] sm:$0xff] }
  0xc2   :  { %6083 = vst [vmem:[#allocation204_spill] sm:$0xff] %v3977_v59  ;;  %v4002_v59 = vld [vmem:[%s5886_s4 + $0x700] sm:$0xff] }
  0xc3   :  { %6084 = vst [vmem:[#allocation205_spill] sm:$0xff] %v3982_v55  ;;  %v4007_v55 = vld [vmem:[%s5886_s4 + $0x708] sm:$0xff] }
  0xc4   :  { %6085 = vst [vmem:[#allocation206_spill] sm:$0xff] %v3987_v63  ;;  %v4012_v63 = vld [vmem:[%s5886_s4 + $0x710] sm:$0xff] }
  0xc5   :  { %6086 = vst [vmem:[#allocation207_spill] sm:$0xff] %v3992_v16  ;;  %v4017_v16 = vld [vmem:[%s5886_s4 + $0x718] sm:$0xff] }
  0xc6   :  { %6087 = vst [vmem:[#allocation208_spill] sm:$0xff] %v3997_v0  ;;  %v4022_v0 = vld [vmem:[%s5886_s4 + $0x720] sm:$0xff] }
  0xc7   :  { %6088 = vst [vmem:[#allocation209_spill] sm:$0xff] %v4002_v59  ;;  %v4027_v59 = vld [vmem:[%s5886_s4 + $0x728] sm:$0xff] }
  0xc8   :  { %6089 = vst [vmem:[#allocation210_spill] sm:$0xff] %v4007_v55  ;;  %v4032_v55 = vld [vmem:[%s5886_s4 + $0x730] sm:$0xff] }
  0xc9   :  { %6090 = vst [vmem:[#allocation211_spill] sm:$0xff] %v4012_v63  ;;  %v4037_v63 = vld [vmem:[%s5886_s4 + $0x738] sm:$0xff] }
  0xca   :  { %6091 = vst [vmem:[#allocation212_spill] sm:$0xff] %v4017_v16  ;;  %v4042_v16 = vld [vmem:[%s5886_s4 + $0x740] sm:$0xff] }
  0xcb   :  { %6092 = vst [vmem:[#allocation213_spill] sm:$0xff] %v4022_v0  ;;  %v4047_v0 = vld [vmem:[%s5886_s4 + $0x748] sm:$0xff] }
  0xcc   :  { %6093 = vst [vmem:[#allocation214_spill] sm:$0xff] %v4027_v59  ;;  %v4052_v59 = vld [vmem:[%s5886_s4 + $0x750] sm:$0xff] }
  0xcd   :  { %6094 = vst [vmem:[#allocation215_spill] sm:$0xff] %v4032_v55  ;;  %v4057_v55 = vld [vmem:[%s5886_s4 + $0x758] sm:$0xff] }
  0xce   :  { %6095 = vst [vmem:[#allocation216_spill] sm:$0xff] %v4037_v63  ;;  %v4062_v63 = vld [vmem:[%s5886_s4 + $0x760] sm:$0xff] }
  0xcf   :  { %6096 = vst [vmem:[#allocation217_spill] sm:$0xff] %v4042_v16  ;;  %v4067_v16 = vld [vmem:[%s5886_s4 + $0x768] sm:$0xff] }
  0xd0   :  { %6097 = vst [vmem:[#allocation218_spill] sm:$0xff] %v4047_v0  ;;  %v4072_v0 = vld [vmem:[%s5886_s4 + $0x770] sm:$0xff] }
  0xd1   :  { %6098 = vst [vmem:[#allocation219_spill] sm:$0xff] %v4052_v59  ;;  %v4077_v59 = vld [vmem:[%s5886_s4 + $0x778] sm:$0xff] }
  0xd2   :  { %6099 = vst [vmem:[#allocation220_spill] sm:$0xff] %v4057_v55  ;;  %v4082_v55 = vld [vmem:[%s5886_s4 + $0x780] sm:$0xff] }
  0xd3   :  { %6100 = vst [vmem:[#allocation221_spill] sm:$0xff] %v4062_v63  ;;  %v4087_v63 = vld [vmem:[%s5886_s4 + $0x788] sm:$0xff] }
  0xd4   :  { %6101 = vst [vmem:[#allocation222_spill] sm:$0xff] %v4067_v16  ;;  %v4092_v16 = vld [vmem:[%s5886_s4 + $0x790] sm:$0xff] }
  0xd5   :  { %6102 = vst [vmem:[#allocation223_spill] sm:$0xff] %v4072_v0  ;;  %v4097_v0 = vld [vmem:[%s5886_s4 + $0x798] sm:$0xff] }
  0xd6   :  { %6103 = vst [vmem:[#allocation224_spill] sm:$0xff] %v4077_v59  ;;  %v4102_v59 = vld [vmem:[%s5886_s4 + $0x7a0] sm:$0xff] }
  0xd7   :  { %6104 = vst [vmem:[#allocation225_spill] sm:$0xff] %v4082_v55  ;;  %v4107_v55 = vld [vmem:[%s5886_s4 + $0x7a8] sm:$0xff] }
  0xd8   :  { %6105 = vst [vmem:[#allocation226_spill] sm:$0xff] %v4087_v63  ;;  %v4112_v63 = vld [vmem:[%s5886_s4 + $0x7b0] sm:$0xff] }
  0xd9   :  { %6106 = vst [vmem:[#allocation227_spill] sm:$0xff] %v4092_v16  ;;  %v4117_v16 = vld [vmem:[%s5886_s4 + $0x7b8] sm:$0xff] }
  0xda   :  { %6107 = vst [vmem:[#allocation228_spill] sm:$0xff] %v4097_v0  ;;  %v4122_v0 = vld [vmem:[%s5886_s4 + $0x7c0] sm:$0xff] }
  0xdb   :  { %6108 = vst [vmem:[#allocation229_spill] sm:$0xff] %v4102_v59  ;;  %v4127_v59 = vld [vmem:[%s5886_s4 + $0x7c8] sm:$0xff] }
  0xdc   :  { %6109 = vst [vmem:[#allocation230_spill] sm:$0xff] %v4107_v55  ;;  %v4132_v55 = vld [vmem:[%s5886_s4 + $0x7d0] sm:$0xff] }
  0xdd   :  { %6110 = vst [vmem:[#allocation231_spill] sm:$0xff] %v4112_v63  ;;  %v4137_v63 = vld [vmem:[%s5886_s4 + $0x7d8] sm:$0xff] }
  0xde   :  { %6111 = vst [vmem:[#allocation232_spill] sm:$0xff] %v4117_v16  ;;  %v4142_v16 = vld [vmem:[%s5886_s4 + $0x7e0] sm:$0xff] }
  0xdf   :  { %6112 = vst [vmem:[#allocation233_spill] sm:$0xff] %v4122_v0  ;;  %v4147_v0 = vld [vmem:[%s5886_s4 + $0x7e8] sm:$0xff] }
  0xe0   :  { %6113 = vst [vmem:[#allocation234_spill] sm:$0xff] %v4127_v59  ;;  %v4152_v59 = vld [vmem:[%s5886_s4 + $0x7f0] sm:$0xff] }
  0xe1   :  { %6114 = vst [vmem:[#allocation235_spill] sm:$0xff] %v4132_v55  ;;  %v4157_v55 = vld [vmem:[%s5886_s4 + $0x7f8] sm:$0xff] }
  0xe2   :  { %6115 = vst [vmem:[#allocation236_spill] sm:$0xff] %v4137_v63  ;;  %v4162_v63 = vld [vmem:[%s5886_s4 + $0x800] sm:$0xff] }
  0xe3   :  { %6116 = vst [vmem:[#allocation237_spill] sm:$0xff] %v4142_v16  ;;  %v4167_v16 = vld [vmem:[%s5886_s4 + $0x808] sm:$0xff] }
  0xe4   :  { %6117 = vst [vmem:[#allocation238_spill] sm:$0xff] %v4147_v0  ;;  %v4172_v0 = vld [vmem:[%s5886_s4 + $0x810] sm:$0xff] }
  0xe5   :  { %6118 = vst [vmem:[#allocation239_spill] sm:$0xff] %v4152_v59  ;;  %v4177_v59 = vld [vmem:[%s5886_s4 + $0x818] sm:$0xff] }
  0xe6   :  { %6119 = vst [vmem:[#allocation240_spill] sm:$0xff] %v4157_v55  ;;  %v4182_v55 = vld [vmem:[%s5886_s4 + $0x820] sm:$0xff] }
  0xe7   :  { %6120 = vst [vmem:[#allocation241_spill] sm:$0xff] %v4162_v63  ;;  %v4187_v63 = vld [vmem:[%s5886_s4 + $0x828] sm:$0xff] }
  0xe8   :  { %6121 = vst [vmem:[#allocation242_spill] sm:$0xff] %v4167_v16  ;;  %v4192_v16 = vld [vmem:[%s5886_s4 + $0x830] sm:$0xff] }
  0xe9   :  { %6122 = vst [vmem:[#allocation243_spill] sm:$0xff] %v4172_v0  ;;  %v4197_v0 = vld [vmem:[%s5886_s4 + $0x838] sm:$0xff] }
  0xea   :  { %6123 = vst [vmem:[#allocation244_spill] sm:$0xff] %v4177_v59  ;;  %v4202_v59 = vld [vmem:[%s5886_s4 + $0x840] sm:$0xff] }
  0xeb   :  { %6124 = vst [vmem:[#allocation245_spill] sm:$0xff] %v4182_v55  ;;  %v4207_v55 = vld [vmem:[%s5886_s4 + $0x848] sm:$0xff] }
  0xec   :  { %6125 = vst [vmem:[#allocation246_spill] sm:$0xff] %v4187_v63  ;;  %v4212_v63 = vld [vmem:[%s5886_s4 + $0x850] sm:$0xff] }
  0xed   :  { %6126 = vst [vmem:[#allocation247_spill] sm:$0xff] %v4192_v16  ;;  %v4217_v16 = vld [vmem:[%s5886_s4 + $0x858] sm:$0xff] }
  0xee   :  { %6127 = vst [vmem:[#allocation248_spill] sm:$0xff] %v4197_v0  ;;  %v4222_v0 = vld [vmem:[%s5886_s4 + $0x860] sm:$0xff] }
  0xef   :  { %6128 = vst [vmem:[#allocation249_spill] sm:$0xff] %v4202_v59  ;;  %v4227_v59 = vld [vmem:[%s5886_s4 + $0x868] sm:$0xff] }
  0xf0   :  { %6129 = vst [vmem:[#allocation250_spill] sm:$0xff] %v4207_v55  ;;  %v4232_v55 = vld [vmem:[%s5886_s4 + $0x870] sm:$0xff] }
  0xf1   :  { %6130 = vst [vmem:[#allocation251_spill] sm:$0xff] %v4212_v63  ;;  %v4237_v63 = vld [vmem:[%s5886_s4 + $0x878] sm:$0xff] }
  0xf2   :  { %6131 = vst [vmem:[#allocation252_spill] sm:$0xff] %v4217_v16  ;;  %v4242_v16 = vld [vmem:[%s5886_s4 + $0x880] sm:$0xff] }
  0xf3   :  { %6132 = vst [vmem:[#allocation253_spill] sm:$0xff] %v4222_v0  ;;  %v4247_v0 = vld [vmem:[%s5886_s4 + $0x888] sm:$0xff] }
  0xf4   :  { %6133 = vst [vmem:[#allocation254_spill] sm:$0xff] %v4227_v59  ;;  %v4252_v59 = vld [vmem:[%s5886_s4 + $0x890] sm:$0xff] }
  0xf5   :  { %6134 = vst [vmem:[#allocation255_spill] sm:$0xff] %v4232_v55  ;;  %v4257_v55 = vld [vmem:[%s5886_s4 + $0x898] sm:$0xff] }
  0xf6   :  { %6135 = vst [vmem:[#allocation256_spill] sm:$0xff] %v4237_v63  ;;  %v4262_v63 = vld [vmem:[%s5886_s4 + $0x8a0] sm:$0xff] }
  0xf7   :  { %6136 = vst [vmem:[#allocation257_spill] sm:$0xff] %v4242_v16  ;;  %v4267_v16 = vld [vmem:[%s5886_s4 + $0x8a8] sm:$0xff] }
  0xf8   :  { %6137 = vst [vmem:[#allocation258_spill] sm:$0xff] %v4247_v0  ;;  %v4272_v0 = vld [vmem:[%s5886_s4 + $0x8b0] sm:$0xff] }
  0xf9   :  { %6138 = vst [vmem:[#allocation259_spill] sm:$0xff] %v4252_v59  ;;  %v4277_v59 = vld [vmem:[%s5886_s4 + $0x8b8] sm:$0xff] }
  0xfa   :  { %6139 = vst [vmem:[#allocation260_spill] sm:$0xff] %v4257_v55  ;;  %v4282_v55 = vld [vmem:[%s5886_s4 + $0x8c0] sm:$0xff] }
  0xfb   :  { %6140 = vst [vmem:[#allocation261_spill] sm:$0xff] %v4262_v63  ;;  %v4287_v63 = vld [vmem:[%s5886_s4 + $0x8c8] sm:$0xff] }
  0xfc   :  { %6141 = vst [vmem:[#allocation262_spill] sm:$0xff] %v4267_v16  ;;  %v4292_v16 = vld [vmem:[%s5886_s4 + $0x8d0] sm:$0xff] }
  0xfd   :  { %6142 = vst [vmem:[#allocation263_spill] sm:$0xff] %v4272_v0  ;;  %v4297_v0 = vld [vmem:[%s5886_s4 + $0x8d8] sm:$0xff] }
  0xfe   :  { %6143 = vst [vmem:[#allocation264_spill] sm:$0xff] %v4277_v59  ;;  %v4302_v59 = vld [vmem:[%s5886_s4 + $0x8e0] sm:$0xff] }
  0xff   :  { %6144 = vst [vmem:[#allocation265_spill] sm:$0xff] %v4282_v55  ;;  %v4307_v55 = vld [vmem:[%s5886_s4 + $0x8e8] sm:$0xff] }
 0x100   :  { %6145 = vst [vmem:[#allocation266_spill] sm:$0xff] %v4287_v63  ;;  %v4312_v63 = vld [vmem:[%s5886_s4 + $0x8f0] sm:$0xff] }
 0x101   :  { %6146 = vst [vmem:[#allocation267_spill] sm:$0xff] %v4292_v16  ;;  %v4317_v16 = vld [vmem:[%s5886_s4 + $0x8f8] sm:$0xff] }
 0x102   :  { %6147 = vst [vmem:[#allocation268_spill] sm:$0xff] %v4297_v0 }
 0x103   :  { %6148 = vst [vmem:[#allocation269_spill] sm:$0xff] %v4302_v59 }
 0x104   :  { %6149 = vst [vmem:[#allocation270_spill] sm:$0xff] %v4307_v55 }
 0x105   :  { %6150 = vst [vmem:[#allocation271_spill] sm:$0xff] %v4312_v63 }
 0x106   :  { %6151 = vst [vmem:[#allocation272_spill] sm:$0xff] %v4317_v16 }
 0x107   :  { %611 = vsyncadd [#allocation5], 36864  ;;  %v4322_v0 = vld [vmem:[%s5887_s5] sm:$0xff]  ;;  %v4327_v59 = vld [vmem:[%s5887_s5 + $0x8] sm:$0xff] }
 0x108   :  { %6152 = vst [vmem:[#allocation273_spill] sm:$0xff] %v4322_v0  ;;  %v4332_v55 = vld [vmem:[%s5887_s5 + $0x10] sm:$0xff]  ;;  %v4337_v63 = vld [vmem:[%s5887_s5 + $0x18] sm:$0xff]  ;;  %v4342_v16 = vld [vmem:[%s5887_s5 + $0x20] sm:$0xff] }
 0x109   :  { %6153 = vst [vmem:[#allocation274_spill] sm:$0xff] %v4327_v59  ;;  %v4347_v0 = vld [vmem:[%s5887_s5 + $0x28] sm:$0xff]  ;;  %v4352_v59 = vld [vmem:[%s5887_s5 + $0x30] sm:$0xff] }
 0x10a   :  { %6154 = vst [vmem:[#allocation275_spill] sm:$0xff] %v4332_v55  ;;  %v4357_v55 = vld [vmem:[%s5887_s5 + $0x38] sm:$0xff] }
 0x10b   :  { %6155 = vst [vmem:[#allocation276_spill] sm:$0xff] %v4337_v63  ;;  %v4362_v63 = vld [vmem:[%s5887_s5 + $0x40] sm:$0xff] }
 0x10c   :  { %6156 = vst [vmem:[#allocation277_spill] sm:$0xff] %v4342_v16  ;;  %v4367_v16 = vld [vmem:[%s5887_s5 + $0x48] sm:$0xff] }
 0x10d   :  { %6157 = vst [vmem:[#allocation278_spill] sm:$0xff] %v4347_v0  ;;  %v4372_v0 = vld [vmem:[%s5887_s5 + $0x50] sm:$0xff] }
 0x10e   :  { %6158 = vst [vmem:[#allocation279_spill] sm:$0xff] %v4352_v59  ;;  %v4377_v59 = vld [vmem:[%s5887_s5 + $0x58] sm:$0xff] }
 0x10f   :  { %6159 = vst [vmem:[#allocation280_spill] sm:$0xff] %v4357_v55  ;;  %v4382_v55 = vld [vmem:[%s5887_s5 + $0x60] sm:$0xff] }
 0x110   :  { %6160 = vst [vmem:[#allocation281_spill] sm:$0xff] %v4362_v63  ;;  %v4387_v63 = vld [vmem:[%s5887_s5 + $0x68] sm:$0xff] }
 0x111   :  { %6161 = vst [vmem:[#allocation282_spill] sm:$0xff] %v4367_v16  ;;  %v4392_v16 = vld [vmem:[%s5887_s5 + $0x70] sm:$0xff] }
 0x112   :  { %6162 = vst [vmem:[#allocation283_spill] sm:$0xff] %v4372_v0  ;;  %v4397_v0 = vld [vmem:[%s5887_s5 + $0x78] sm:$0xff] }
 0x113   :  { %6163 = vst [vmem:[#allocation284_spill] sm:$0xff] %v4377_v59  ;;  %v4402_v59 = vld [vmem:[%s5887_s5 + $0x80] sm:$0xff] }
 0x114   :  { %6164 = vst [vmem:[#allocation285_spill] sm:$0xff] %v4382_v55  ;;  %v4407_v55 = vld [vmem:[%s5887_s5 + $0x88] sm:$0xff] }
 0x115   :  { %6165 = vst [vmem:[#allocation286_spill] sm:$0xff] %v4387_v63  ;;  %v4412_v63 = vld [vmem:[%s5887_s5 + $0x90] sm:$0xff] }
 0x116   :  { %6166 = vst [vmem:[#allocation287_spill] sm:$0xff] %v4392_v16  ;;  %v4417_v16 = vld [vmem:[%s5887_s5 + $0x98] sm:$0xff] }
 0x117   :  { %6167 = vst [vmem:[#allocation288_spill] sm:$0xff] %v4397_v0  ;;  %v4422_v0 = vld [vmem:[%s5887_s5 + $0xa0] sm:$0xff] }
 0x118   :  { %6168 = vst [vmem:[#allocation289_spill] sm:$0xff] %v4402_v59  ;;  %v4427_v59 = vld [vmem:[%s5887_s5 + $0xa8] sm:$0xff] }
 0x119   :  { %6169 = vst [vmem:[#allocation290_spill] sm:$0xff] %v4407_v55  ;;  %v4432_v55 = vld [vmem:[%s5887_s5 + $0xb0] sm:$0xff] }
 0x11a   :  { %6170 = vst [vmem:[#allocation291_spill] sm:$0xff] %v4412_v63  ;;  %v4437_v63 = vld [vmem:[%s5887_s5 + $0xb8] sm:$0xff] }
 0x11b   :  { %6171 = vst [vmem:[#allocation292_spill] sm:$0xff] %v4417_v16  ;;  %v4442_v16 = vld [vmem:[%s5887_s5 + $0xc0] sm:$0xff] }
 0x11c   :  { %6172 = vst [vmem:[#allocation293_spill] sm:$0xff] %v4422_v0  ;;  %v4447_v0 = vld [vmem:[%s5887_s5 + $0xc8] sm:$0xff] }
 0x11d   :  { %6173 = vst [vmem:[#allocation294_spill] sm:$0xff] %v4427_v59  ;;  %v4452_v59 = vld [vmem:[%s5887_s5 + $0xd0] sm:$0xff] }
 0x11e   :  { %6174 = vst [vmem:[#allocation295_spill] sm:$0xff] %v4432_v55  ;;  %v4457_v55 = vld [vmem:[%s5887_s5 + $0xd8] sm:$0xff] }
 0x11f   :  { %6175 = vst [vmem:[#allocation296_spill] sm:$0xff] %v4437_v63  ;;  %v4462_v63 = vld [vmem:[%s5887_s5 + $0xe0] sm:$0xff] }
 0x120   :  { %6176 = vst [vmem:[#allocation297_spill] sm:$0xff] %v4442_v16  ;;  %v4467_v16 = vld [vmem:[%s5887_s5 + $0xe8] sm:$0xff] }
 0x121   :  { %6177 = vst [vmem:[#allocation298_spill] sm:$0xff] %v4447_v0  ;;  %v4472_v0 = vld [vmem:[%s5887_s5 + $0xf0] sm:$0xff] }
 0x122   :  { %6178 = vst [vmem:[#allocation299_spill] sm:$0xff] %v4452_v59  ;;  %v4477_v59 = vld [vmem:[%s5887_s5 + $0xf8] sm:$0xff] }
 0x123   :  { %6179 = vst [vmem:[#allocation300_spill] sm:$0xff] %v4457_v55  ;;  %v4482_v55 = vld [vmem:[%s5887_s5 + $0x100] sm:$0xff] }
 0x124   :  { %6180 = vst [vmem:[#allocation301_spill] sm:$0xff] %v4462_v63  ;;  %v4487_v63 = vld [vmem:[%s5887_s5 + $0x108] sm:$0xff] }
 0x125   :  { %6181 = vst [vmem:[#allocation302_spill] sm:$0xff] %v4467_v16  ;;  %v4492_v16 = vld [vmem:[%s5887_s5 + $0x110] sm:$0xff] }
 0x126   :  { %6182 = vst [vmem:[#allocation303_spill] sm:$0xff] %v4472_v0  ;;  %v4497_v0 = vld [vmem:[%s5887_s5 + $0x118] sm:$0xff] }
 0x127   :  { %6183 = vst [vmem:[#allocation304_spill] sm:$0xff] %v4477_v59  ;;  %v4502_v59 = vld [vmem:[%s5887_s5 + $0x120] sm:$0xff] }
 0x128   :  { %6184 = vst [vmem:[#allocation305_spill] sm:$0xff] %v4482_v55  ;;  %v4507_v55 = vld [vmem:[%s5887_s5 + $0x128] sm:$0xff] }
 0x129   :  { %6185 = vst [vmem:[#allocation306_spill] sm:$0xff] %v4487_v63  ;;  %v4512_v63 = vld [vmem:[%s5887_s5 + $0x130] sm:$0xff] }
 0x12a   :  { %6186 = vst [vmem:[#allocation307_spill] sm:$0xff] %v4492_v16  ;;  %v4517_v16 = vld [vmem:[%s5887_s5 + $0x138] sm:$0xff] }
 0x12b   :  { %6187 = vst [vmem:[#allocation308_spill] sm:$0xff] %v4497_v0  ;;  %v4522_v0 = vld [vmem:[%s5887_s5 + $0x140] sm:$0xff] }
 0x12c   :  { %6188 = vst [vmem:[#allocation309_spill] sm:$0xff] %v4502_v59  ;;  %v4527_v59 = vld [vmem:[%s5887_s5 + $0x148] sm:$0xff] }
 0x12d   :  { %6189 = vst [vmem:[#allocation310_spill] sm:$0xff] %v4507_v55  ;;  %v4532_v55 = vld [vmem:[%s5887_s5 + $0x150] sm:$0xff] }
 0x12e   :  { %6190 = vst [vmem:[#allocation311_spill] sm:$0xff] %v4512_v63  ;;  %v4537_v63 = vld [vmem:[%s5887_s5 + $0x158] sm:$0xff] }
 0x12f   :  { %6191 = vst [vmem:[#allocation312_spill] sm:$0xff] %v4517_v16  ;;  %v4542_v16 = vld [vmem:[%s5887_s5 + $0x160] sm:$0xff] }
 0x130   :  { %6192 = vst [vmem:[#allocation313_spill] sm:$0xff] %v4522_v0  ;;  %v4547_v0 = vld [vmem:[%s5887_s5 + $0x168] sm:$0xff] }
 0x131   :  { %6193 = vst [vmem:[#allocation314_spill] sm:$0xff] %v4527_v59  ;;  %v4552_v59 = vld [vmem:[%s5887_s5 + $0x170] sm:$0xff] }
 0x132   :  { %6194 = vst [vmem:[#allocation315_spill] sm:$0xff] %v4532_v55  ;;  %v4557_v55 = vld [vmem:[%s5887_s5 + $0x178] sm:$0xff] }
 0x133   :  { %6195 = vst [vmem:[#allocation316_spill] sm:$0xff] %v4537_v63  ;;  %v4562_v63 = vld [vmem:[%s5887_s5 + $0x180] sm:$0xff] }
 0x134   :  { %6196 = vst [vmem:[#allocation317_spill] sm:$0xff] %v4542_v16  ;;  %v4567_v16 = vld [vmem:[%s5887_s5 + $0x188] sm:$0xff] }
 0x135   :  { %6197 = vst [vmem:[#allocation318_spill] sm:$0xff] %v4547_v0  ;;  %v4572_v0 = vld [vmem:[%s5887_s5 + $0x190] sm:$0xff] }
 0x136   :  { %6198 = vst [vmem:[#allocation319_spill] sm:$0xff] %v4552_v59  ;;  %v4577_v59 = vld [vmem:[%s5887_s5 + $0x198] sm:$0xff] }
 0x137   :  { %6199 = vst [vmem:[#allocation320_spill] sm:$0xff] %v4557_v55  ;;  %v4582_v55 = vld [vmem:[%s5887_s5 + $0x1a0] sm:$0xff] }
 0x138   :  { %6200 = vst [vmem:[#allocation321_spill] sm:$0xff] %v4562_v63  ;;  %v4587_v63 = vld [vmem:[%s5887_s5 + $0x1a8] sm:$0xff] }
 0x139   :  { %6201 = vst [vmem:[#allocation322_spill] sm:$0xff] %v4567_v16  ;;  %v4592_v16 = vld [vmem:[%s5887_s5 + $0x1b0] sm:$0xff] }
 0x13a   :  { %6202 = vst [vmem:[#allocation323_spill] sm:$0xff] %v4572_v0  ;;  %v4597_v0 = vld [vmem:[%s5887_s5 + $0x1b8] sm:$0xff] }
 0x13b   :  { %6203 = vst [vmem:[#allocation324_spill] sm:$0xff] %v4577_v59  ;;  %v4602_v59 = vld [vmem:[%s5887_s5 + $0x1c0] sm:$0xff] }
 0x13c   :  { %6204 = vst [vmem:[#allocation325_spill] sm:$0xff] %v4582_v55  ;;  %v4607_v55 = vld [vmem:[%s5887_s5 + $0x1c8] sm:$0xff] }
 0x13d   :  { %6205 = vst [vmem:[#allocation326_spill] sm:$0xff] %v4587_v63  ;;  %v4612_v63 = vld [vmem:[%s5887_s5 + $0x1d0] sm:$0xff] }
 0x13e   :  { %6206 = vst [vmem:[#allocation327_spill] sm:$0xff] %v4592_v16  ;;  %v4617_v16 = vld [vmem:[%s5887_s5 + $0x1d8] sm:$0xff] }
 0x13f   :  { %6207 = vst [vmem:[#allocation328_spill] sm:$0xff] %v4597_v0  ;;  %v4622_v0 = vld [vmem:[%s5887_s5 + $0x1e0] sm:$0xff] }
 0x140   :  { %6208 = vst [vmem:[#allocation329_spill] sm:$0xff] %v4602_v59  ;;  %v4627_v59 = vld [vmem:[%s5887_s5 + $0x1e8] sm:$0xff] }
 0x141   :  { %6209 = vst [vmem:[#allocation330_spill] sm:$0xff] %v4607_v55  ;;  %v4632_v55 = vld [vmem:[%s5887_s5 + $0x1f0] sm:$0xff] }
 0x142   :  { %6210 = vst [vmem:[#allocation331_spill] sm:$0xff] %v4612_v63  ;;  %v4637_v63 = vld [vmem:[%s5887_s5 + $0x1f8] sm:$0xff] }
 0x143   :  { %6211 = vst [vmem:[#allocation332_spill] sm:$0xff] %v4617_v16 }
 0x144   :  { %6212 = vst [vmem:[#allocation333_spill] sm:$0xff] %v4622_v0 }
 0x145   :  { %6213 = vst [vmem:[#allocation334_spill] sm:$0xff] %v4627_v59 }
 0x146   :  { %6214 = vst [vmem:[#allocation335_spill] sm:$0xff] %v4632_v55 }
 0x147   :  { %6215 = vst [vmem:[#allocation336_spill] sm:$0xff] %v4637_v63 }
 0x148   :  { %756 = vsyncadd [#allocation5 + $0x1], 8192  ;;  %v4642_v16 = vld [vmem:[%s5888_s6] sm:$0xff]  ;;  %v4647_v59 = vld [vmem:[%s5888_s6 + $0x8] sm:$0xff] }
 0x149   :  { %6216 = vst [vmem:[#allocation337_spill] sm:$0xff] %v4642_v16  ;;  %v4652_v55 = vld [vmem:[%s5888_s6 + $0x10] sm:$0xff]  ;;  %v4657_v63 = vld [vmem:[%s5888_s6 + $0x18] sm:$0xff]  ;;  %v4662_v0 = vld [vmem:[%s5888_s6 + $0x20] sm:$0xff] }
 0x14a   :  { %6217 = vst [vmem:[#allocation338_spill] sm:$0xff] %v4647_v59  ;;  %v4667_v16 = vld [vmem:[%s5888_s6 + $0x28] sm:$0xff]  ;;  %v4672_v59 = vld [vmem:[%s5888_s6 + $0x30] sm:$0xff] }
 0x14b   :  { %6218 = vst [vmem:[#allocation339_spill] sm:$0xff] %v4652_v55  ;;  %v4677_v55 = vld [vmem:[%s5888_s6 + $0x38] sm:$0xff] }
 0x14c   :  { %6219 = vst [vmem:[#allocation340_spill] sm:$0xff] %v4657_v63  ;;  %v4682_v63 = vld [vmem:[%s5888_s6 + $0x40] sm:$0xff] }
 0x14d   :  { %6220 = vst [vmem:[#allocation341_spill] sm:$0xff] %v4662_v0  ;;  %v4687_v0 = vld [vmem:[%s5888_s6 + $0x48] sm:$0xff] }
 0x14e   :  { %6221 = vst [vmem:[#allocation342_spill] sm:$0xff] %v4667_v16  ;;  %v4692_v16 = vld [vmem:[%s5888_s6 + $0x50] sm:$0xff] }
 0x14f   :  { %6222 = vst [vmem:[#allocation343_spill] sm:$0xff] %v4672_v59  ;;  %v4697_v59 = vld [vmem:[%s5888_s6 + $0x58] sm:$0xff] }
 0x150   :  { %6223 = vst [vmem:[#allocation344_spill] sm:$0xff] %v4677_v55  ;;  %v4702_v55 = vld [vmem:[%s5888_s6 + $0x60] sm:$0xff] }
 0x151   :  { %6224 = vst [vmem:[#allocation345_spill] sm:$0xff] %v4682_v63  ;;  %v4707_v63 = vld [vmem:[%s5888_s6 + $0x68] sm:$0xff] }
 0x152   :  { %6225 = vst [vmem:[#allocation346_spill] sm:$0xff] %v4687_v0  ;;  %v4712_v0 = vld [vmem:[%s5888_s6 + $0x70] sm:$0xff] }
 0x153   :  { %6226 = vst [vmem:[#allocation347_spill] sm:$0xff] %v4692_v16  ;;  %v4717_v16 = vld [vmem:[%s5888_s6 + $0x78] sm:$0xff] }
 0x154   :  { %6227 = vst [vmem:[#allocation348_spill] sm:$0xff] %v4697_v59  ;;  %v4722_v59 = vld [vmem:[%s5888_s6 + $0x80] sm:$0xff] }
 0x155   :  { %6228 = vst [vmem:[#allocation349_spill] sm:$0xff] %v4702_v55  ;;  %v4727_v55 = vld [vmem:[%s5888_s6 + $0x88] sm:$0xff] }
 0x156   :  { %6229 = vst [vmem:[#allocation350_spill] sm:$0xff] %v4707_v63  ;;  %v4732_v63 = vld [vmem:[%s5888_s6 + $0x90] sm:$0xff] }
 0x157   :  { %6230 = vst [vmem:[#allocation351_spill] sm:$0xff] %v4712_v0  ;;  %v4737_v0 = vld [vmem:[%s5888_s6 + $0x98] sm:$0xff] }
 0x158   :  { %6231 = vst [vmem:[#allocation352_spill] sm:$0xff] %v4717_v16  ;;  %v4742_v16 = vld [vmem:[%s5888_s6 + $0xa0] sm:$0xff] }
 0x159   :  { %6232 = vst [vmem:[#allocation353_spill] sm:$0xff] %v4722_v59  ;;  %v4747_v59 = vld [vmem:[%s5888_s6 + $0xa8] sm:$0xff] }
 0x15a   :  { %6233 = vst [vmem:[#allocation354_spill] sm:$0xff] %v4727_v55  ;;  %v4752_v55 = vld [vmem:[%s5888_s6 + $0xb0] sm:$0xff] }
 0x15b   :  { %6234 = vst [vmem:[#allocation355_spill] sm:$0xff] %v4732_v63  ;;  %v4757_v63 = vld [vmem:[%s5888_s6 + $0xb8] sm:$0xff] }
 0x15c   :  { %6235 = vst [vmem:[#allocation356_spill] sm:$0xff] %v4737_v0  ;;  %v4762_v0 = vld [vmem:[%s5888_s6 + $0xc0] sm:$0xff] }
 0x15d   :  { %6236 = vst [vmem:[#allocation357_spill] sm:$0xff] %v4742_v16  ;;  %v4767_v16 = vld [vmem:[%s5888_s6 + $0xc8] sm:$0xff] }
 0x15e   :  { %6237 = vst [vmem:[#allocation358_spill] sm:$0xff] %v4747_v59  ;;  %v4772_v59 = vld [vmem:[%s5888_s6 + $0xd0] sm:$0xff] }
 0x15f   :  { %6238 = vst [vmem:[#allocation359_spill] sm:$0xff] %v4752_v55  ;;  %v4777_v55 = vld [vmem:[%s5888_s6 + $0xd8] sm:$0xff] }
 0x160   :  { %6239 = vst [vmem:[#allocation360_spill] sm:$0xff] %v4757_v63  ;;  %v4782_v63 = vld [vmem:[%s5888_s6 + $0xe0] sm:$0xff] }
 0x161   :  { %6240 = vst [vmem:[#allocation361_spill] sm:$0xff] %v4762_v0  ;;  %v4787_v0 = vld [vmem:[%s5888_s6 + $0xe8] sm:$0xff] }
 0x162   :  { %6241 = vst [vmem:[#allocation362_spill] sm:$0xff] %v4767_v16  ;;  %v4792_v16 = vld [vmem:[%s5888_s6 + $0xf0] sm:$0xff] }
 0x163   :  { %6242 = vst [vmem:[#allocation363_spill] sm:$0xff] %v4772_v59  ;;  %v4797_v59 = vld [vmem:[%s5888_s6 + $0xf8] sm:$0xff] }
 0x164   :  { %6243 = vst [vmem:[#allocation364_spill] sm:$0xff] %v4777_v55  ;;  %v4802_v55 = vld [vmem:[%s5888_s6 + $0x100] sm:$0xff] }
 0x165   :  { %6244 = vst [vmem:[#allocation365_spill] sm:$0xff] %v4782_v63  ;;  %v4807_v63 = vld [vmem:[%s5888_s6 + $0x108] sm:$0xff] }
 0x166   :  { %6245 = vst [vmem:[#allocation366_spill] sm:$0xff] %v4787_v0  ;;  %v4812_v0 = vld [vmem:[%s5888_s6 + $0x110] sm:$0xff] }
 0x167   :  { %6246 = vst [vmem:[#allocation367_spill] sm:$0xff] %v4792_v16  ;;  %v4817_v16 = vld [vmem:[%s5888_s6 + $0x118] sm:$0xff] }
 0x168   :  { %6247 = vst [vmem:[#allocation368_spill] sm:$0xff] %v4797_v59  ;;  %v4822_v59 = vld [vmem:[%s5888_s6 + $0x120] sm:$0xff] }
 0x169   :  { %6248 = vst [vmem:[#allocation369_spill] sm:$0xff] %v4802_v55  ;;  %v4827_v55 = vld [vmem:[%s5888_s6 + $0x128] sm:$0xff] }
 0x16a   :  { %6249 = vst [vmem:[#allocation370_spill] sm:$0xff] %v4807_v63  ;;  %v4832_v63 = vld [vmem:[%s5888_s6 + $0x130] sm:$0xff] }
 0x16b   :  { %6250 = vst [vmem:[#allocation371_spill] sm:$0xff] %v4812_v0  ;;  %v4837_v0 = vld [vmem:[%s5888_s6 + $0x138] sm:$0xff] }
 0x16c   :  { %6251 = vst [vmem:[#allocation372_spill] sm:$0xff] %v4817_v16  ;;  %v4842_v16 = vld [vmem:[%s5888_s6 + $0x140] sm:$0xff] }
 0x16d   :  { %6252 = vst [vmem:[#allocation373_spill] sm:$0xff] %v4822_v59  ;;  %v4847_v59 = vld [vmem:[%s5888_s6 + $0x148] sm:$0xff] }
 0x16e   :  { %6253 = vst [vmem:[#allocation374_spill] sm:$0xff] %v4827_v55  ;;  %v4852_v55 = vld [vmem:[%s5888_s6 + $0x150] sm:$0xff] }
 0x16f   :  { %6254 = vst [vmem:[#allocation375_spill] sm:$0xff] %v4832_v63  ;;  %v4857_v63 = vld [vmem:[%s5888_s6 + $0x158] sm:$0xff] }
 0x170   :  { %6255 = vst [vmem:[#allocation376_spill] sm:$0xff] %v4837_v0  ;;  %v4862_v0 = vld [vmem:[%s5888_s6 + $0x160] sm:$0xff] }
 0x171   :  { %6256 = vst [vmem:[#allocation377_spill] sm:$0xff] %v4842_v16  ;;  %v4867_v16 = vld [vmem:[%s5888_s6 + $0x168] sm:$0xff] }
 0x172   :  { %6257 = vst [vmem:[#allocation378_spill] sm:$0xff] %v4847_v59  ;;  %v4872_v59 = vld [vmem:[%s5888_s6 + $0x170] sm:$0xff] }
 0x173   :  { %6258 = vst [vmem:[#allocation379_spill] sm:$0xff] %v4852_v55  ;;  %v4877_v55 = vld [vmem:[%s5888_s6 + $0x178] sm:$0xff] }
 0x174   :  { %6259 = vst [vmem:[#allocation380_spill] sm:$0xff] %v4857_v63  ;;  %v4882_v63 = vld [vmem:[%s5888_s6 + $0x180] sm:$0xff] }
 0x175   :  { %6260 = vst [vmem:[#allocation381_spill] sm:$0xff] %v4862_v0  ;;  %v4887_v0 = vld [vmem:[%s5888_s6 + $0x188] sm:$0xff] }
 0x176   :  { %6261 = vst [vmem:[#allocation382_spill] sm:$0xff] %v4867_v16  ;;  %v4892_v16 = vld [vmem:[%s5888_s6 + $0x190] sm:$0xff] }
 0x177   :  { %6262 = vst [vmem:[#allocation383_spill] sm:$0xff] %v4872_v59  ;;  %v4897_v59 = vld [vmem:[%s5888_s6 + $0x198] sm:$0xff] }
 0x178   :  { %6263 = vst [vmem:[#allocation384_spill] sm:$0xff] %v4877_v55  ;;  %v4902_v55 = vld [vmem:[%s5888_s6 + $0x1a0] sm:$0xff] }
 0x179   :  { %6264 = vst [vmem:[#allocation385_spill] sm:$0xff] %v4882_v63  ;;  %v4907_v63 = vld [vmem:[%s5888_s6 + $0x1a8] sm:$0xff] }
 0x17a   :  { %6265 = vst [vmem:[#allocation386_spill] sm:$0xff] %v4887_v0  ;;  %v4912_v0 = vld [vmem:[%s5888_s6 + $0x1b0] sm:$0xff] }
 0x17b   :  { %6266 = vst [vmem:[#allocation387_spill] sm:$0xff] %v4892_v16  ;;  %v4917_v16 = vld [vmem:[%s5888_s6 + $0x1b8] sm:$0xff] }
 0x17c   :  { %6267 = vst [vmem:[#allocation388_spill] sm:$0xff] %v4897_v59  ;;  %v4922_v59 = vld [vmem:[%s5888_s6 + $0x1c0] sm:$0xff] }
 0x17d   :  { %6268 = vst [vmem:[#allocation389_spill] sm:$0xff] %v4902_v55  ;;  %v4927_v55 = vld [vmem:[%s5888_s6 + $0x1c8] sm:$0xff] }
 0x17e   :  { %6269 = vst [vmem:[#allocation390_spill] sm:$0xff] %v4907_v63  ;;  %v4932_v63 = vld [vmem:[%s5888_s6 + $0x1d0] sm:$0xff] }
 0x17f   :  { %6270 = vst [vmem:[#allocation391_spill] sm:$0xff] %v4912_v0  ;;  %v4937_v0 = vld [vmem:[%s5888_s6 + $0x1d8] sm:$0xff] }
 0x180   :  { %6271 = vst [vmem:[#allocation392_spill] sm:$0xff] %v4917_v16  ;;  %v4942_v16 = vld [vmem:[%s5888_s6 + $0x1e0] sm:$0xff] }
 0x181   :  { %6272 = vst [vmem:[#allocation393_spill] sm:$0xff] %v4922_v59  ;;  %v4947_v59 = vld [vmem:[%s5888_s6 + $0x1e8] sm:$0xff] }
 0x182   :  { %6273 = vst [vmem:[#allocation394_spill] sm:$0xff] %v4927_v55  ;;  %v4952_v55 = vld [vmem:[%s5888_s6 + $0x1f0] sm:$0xff] }
 0x183   :  { %6274 = vst [vmem:[#allocation395_spill] sm:$0xff] %v4932_v63  ;;  %v4957_v63 = vld [vmem:[%s5888_s6 + $0x1f8] sm:$0xff] }
 0x184   :  { %6275 = vst [vmem:[#allocation396_spill] sm:$0xff] %v4937_v0 }
 0x185   :  { %6276 = vst [vmem:[#allocation397_spill] sm:$0xff] %v4942_v16 }
 0x186   :  { %6277 = vst [vmem:[#allocation398_spill] sm:$0xff] %v4947_v59 }
 0x187   :  { %6278 = vst [vmem:[#allocation399_spill] sm:$0xff] %v4952_v55 }
 0x188   :  { %6279 = vst [vmem:[#allocation400_spill] sm:$0xff] %v4957_v63 }
 0x189   :  { %901 = vsyncadd [#allocation5 + $0x2], 8192  ;;  %v4962_v0 = vld [vmem:[%s5885_s3 + $0x2] sm:$0x1]  ;;  %v4967_v16 = vld [vmem:[%s5885_s3 + $0x3] sm:$0xf] }
 0x18a   :  { %6280 = vst [vmem:[#allocation401_spill] sm:$0xff] %v4962_v0  ;;  %v4972_v59 = vld [vmem:[%s5885_s3 + $0x7] sm:$0x1]  ;;  %v920_v55 = vld [vmem:[%s5883_s1 + $0x18] sm:$0xff]  ;;  %v919_v63 = vld [vmem:[%s5883_s1 + $0x10] sm:$0xff]  ;;  %vm924_vm0 = vcmask 261120  }
 0x18b   :  { %6281 = vst [vmem:[#allocation402_spill] sm:$0xff] %v4967_v16  ;;  %967 = vmatpush.msra.mxu0 %v920_v55  ;;  %v918_v0 = vld [vmem:[%s5883_s1 + $0x8] sm:$0xff]  ;;  %v917_v16 = vld [vmem:[%s5883_s1] sm:$0xff]  ;;  %v1271_v1 = vld [vmem:[%s5884_s2 + $0x70] sm:$0xff]  ;;  %vm1030_vm1 = vcmask 1046528   ;;  %vm1178_vm2 = vcmask 1041408  }
 0x18c   :  { %6282 = vst [vmem:[#allocation403_spill] sm:$0xff] %v4972_v59  ;;  %v907_v59 = vld [vmem:[%s5882_s0] sm:$0xff]  ;;  %v908_v55 = vld [vmem:[%s5882_s0 + $0x8] sm:$0xff]  ;;  %vm1273_vm3 = vcmask 1040384   ;;  %vm1431_vm4 = vcmask 523264  }
 0x18d   :  { %968 = vmatpush.msra.mxu0 %v919_v63  ;;  %v909_v63 = vld [vmem:[%s5882_s0 + $0x10] sm:$0xff]  ;;  %v1175_v33 = vld [vmem:[%s5884_s2 + $0x48] sm:$0xff] }
 0x18f   :  { %969 = vmatpush.msra.mxu0 %v918_v0  ;;  %v910_v0 = vld [vmem:[%s5882_s0 + $0x18] sm:$0xff] }
 0x191   :  { %970 = vmatpush.msra.mxu0 %v917_v16  ;;  %v911_v16 = vld [vmem:[%s5882_s0 + $0x20] sm:$0xff] }
 0x192   :  { %2691 = vmatmul.msk.f32.vlgmr.msra.gmra.mxu0 %vm924_vm0, %v907_v59  ;;  %v912_v59 = vld [vmem:[%s5882_s0 + $0x28] sm:$0xff] }
 0x19a   :  { %2692 = vmatmul.msk.f32.gmra.mxu0 %vm924_vm0, %v908_v55  ;;  %v1015_v55 = vld [vmem:[%s5884_s2 + $0x18] sm:$0xff] }
 0x19b   :  { %1142 = vmatpush.msra.mxu2 %v1015_v55  ;;  %v1014_v55 = vld [vmem:[%s5884_s2 + $0x10] sm:$0xff] }
 0x19d   :  { %1143 = vmatpush.msra.mxu2 %v1014_v55  ;;  %v1018_v55 = vld [vmem:[%s5884_s2 + $0x30] sm:$0xff] }
 0x1a2   :  { %2693 = vmatmul.msk.f32.gmra.mxu0 %vm924_vm0, %v909_v63  ;;  %v913_v63 = vld [vmem:[%s5882_s0 + $0x30] sm:$0xff] }
 0x1aa   :  { %2694 = vmatmul.msk.f32.gmra.mxu0 %vm924_vm0, %v910_v0  ;;  %v914_v0 = vld [vmem:[%s5882_s0 + $0x38] sm:$0xff] }
 0x1b2   :  { %2695 = vmatmul.msk.f32.gmra.mxu0 %vm924_vm0, %v911_v16  ;;  %v915_v16 = vld [vmem:[%s5882_s0 + $0x40] sm:$0xff] }
 0x1ba   :  { %2696 = vmatmul.msk.f32.gmra.mxu0 %vm924_vm0, %v912_v59  ;;  %v916_v59 = vld [vmem:[%s5882_s0 + $0x48] sm:$0xff] }
 0x1c2   :  { %2697 = vmatmul.msk.f32.gmra.mxu0 %vm924_vm0, %v913_v63  ;;  %v1013_v63 = vld [vmem:[%s5884_s2 + $0x8] sm:$0xff] }
 0x1c3   :  { %1144 = vmatpush.msra.mxu2 %v1013_v63  ;;  %v1176_v63 = vld [vmem:[%s5884_s2 + $0x50] sm:$0xff] }
 0x1ca   :  { %2698 = vmatmul.msk.f32.gmra.mxu0 %vm924_vm0, %v914_v0  ;;  %v1012_v0 = vld [vmem:[%s5884_s2] sm:$0xff] }
 0x1cb   :  { %1145 = vmatpush.msra.mxu2 %v1012_v0  ;;  %v1017_v0 = vld [vmem:[%s5884_s2 + $0x28] sm:$0xff] }
 0x1cd   :  { %1981 = vmatpush.msrb.mxu2 %v2957_v15 }
 0x1d2   :  { %2699 = vmatmul.msk.f32.gmra.mxu0 %vm924_vm0, %v915_v16  ;;  %v1019_v16 = vld [vmem:[%s5884_s2 + $0x38] sm:$0xff] }
 0x1d3   :  { %1080 = vmatpush.msra.mxu1 %v1019_v16  ;;  %v1016_v16 = vld [vmem:[%s5884_s2 + $0x20] sm:$0xff] }
 0x1d5   :  { %1081 = vmatpush.msra.mxu1 %v1018_v55  ;;  %v1272_v55 = vld [vmem:[%s5884_s2 + $0x78] sm:$0xff] }
 0x1d7   :  { %1082 = vmatpush.msra.mxu1 %v1017_v0 }
 0x1d9   :  { %1083 = vmatpush.msra.mxu1 %v1016_v16 }
 0x1da   :  { %2700 = vmatmul.msk.f32.gmra.mxu0 %vm924_vm0, %v916_v59  ;;  %v1177_v59 = vld [vmem:[%s5884_s2 + $0x58] sm:$0xff] }
 0x1db   :  { %1228 = vmatpush.msra.mxu3 %v1177_v59  ;;  %v1174_v59 = vld [vmem:[%s5884_s2 + $0x40] sm:$0xff]  ;;  %1323 = vmatpush.msrb.mxu1 %v1272_v55 }
 0x1dd   :  { %1229 = vmatpush.msra.mxu3 %v1176_v63  ;;  %v5068_v63 = vld [vmem:[%s5885_s3] ss:$0 sm:$0xff]  ;;  %1324 = vmatpush.msrb.mxu1 %v1271_v1 }
 0x1df   :  { %1230 = vmatpush.msra.mxu3 %v1175_v33 }
 0x1e1   :  { %1231 = vmatpush.msra.mxu3 %v1174_v59 }
 0x1e3   :  { %2001 = vmatpush.msrb.mxu3 %v3037_v31 }
 0x20f   :  { %v972_v33 = vpop.f32.mrf.mxu0 }
 0x210   :  { %v973_v0 = vadd.f32 %v5068_v63, %v972_v33 }
 0x212   :  { %v1002_v17 = vmax.f32 %v973_v0, 0.0 }
 0x214   :  { %2710 = vmatmul.msk.f32.vlgmr.msra.gmra.mxu2 %vm924_vm0, %v1002_v17  ;;  %v1031_v56 = vrot.slane %v1002_v17, 1  ;;  %v1179_v34 = vrot.slane %v1002_v17, 6  ;;  %v1274_v18 = vrot.slane %v1002_v17, 7  ;;  %v1270_v17 = vld [vmem:[%s5884_s2 + $0x68] sm:$0xff] }
 0x215   :  { %1325 = vmatpush.msrb.mxu1 %v1270_v17 }
 0x217   :  { %v975_v16 = vpop.f32.mrf.mxu0 }
 0x218   :  { %v976_v59 = vadd.f32 %v5068_v63, %v975_v16 }
 0x21a   :  { %v1003_v55 = vmax.f32 %v976_v59, 0.0 }
 0x21c   :  { %2711 = vmatmul.msk.f32.gmra.mxu2 %vm924_vm0, %v1003_v55  ;;  %v1032_v33 = vrot.slane %v1003_v55, 1  ;;  %v1180_v0 = vrot.slane %v1003_v55, 6  ;;  %v1275_v2 = vrot.slane %v1003_v55, 7 }
 0x21e   :  { %v1033_v58 = vsel %vm1030_vm1, %v1031_v56, %v1032_v33  ;;  %v1181_v1 = vsel %vm1178_vm2, %v1179_v34, %v1180_v0  ;;  %v5080_v35 = vsel %vm1273_vm3, %v1274_v18, %v1275_v2 }
 0x21f   :  { %v978_v16 = vpop.f32.mrf.mxu0  ;;  %2701 = vmatmul.msk.f32.vlgmr.msra.gmra.mxu1 %vm924_vm0, %v1033_v58  ;;  %2719 = vmatmul.msk.f32.vlgmr.msra.gmra.mxu3 %vm924_vm0, %v1181_v1 }
 0x220   :  { %v979_v59 = vadd.f32 %v5068_v63, %v978_v16 }
 0x222   :  { %v1004_v19 = vmax.f32 %v979_v59, 0.0 }
 0x224   :  { %2712 = vmatmul.msk.f32.gmra.mxu2 %vm924_vm0, %v1004_v19  ;;  %v1034_v56 = vrot.slane %v1004_v19, 1  ;;  %v1182_v34 = vrot.slane %v1004_v19, 6  ;;  %v1277_v55 = vrot.slane %v1004_v19, 7 }
 0x226   :  { %v1035_v18 = vsel %vm1030_vm1, %v1032_v33, %v1034_v56  ;;  %v1183_v3 = vsel %vm1178_vm2, %v1180_v0, %v1182_v34  ;;  %v5092_v58 = vsel %vm1273_vm3, %v1275_v2, %v1277_v55 }
 0x227   :  { %v981_v1 = vpop.f32.mrf.mxu0  ;;  %2702 = vmatmul.msk.f32.gmra.mxu1 %vm924_vm0, %v1035_v18  ;;  %2720 = vmatmul.msk.f32.gmra.mxu3 %vm924_vm0, %v1183_v3 }
 0x228   :  { %v982_v16 = vadd.f32 %v5068_v63, %v981_v1 }
 0x22a   :  { %v1005_v59 = vmax.f32 %v982_v16, 0.0 }
 0x22c   :  { %2713 = vmatmul.msk.f32.gmra.mxu2 %vm924_vm0, %v1005_v59  ;;  %v1036_v17 = vrot.slane %v1005_v59, 1  ;;  %v1184_v52 = vrot.slane %v1005_v59, 6  ;;  %v1279_v19 = vrot.slane %v1005_v59, 7 }
 0x22e   :  { %v1037_v33 = vsel %vm1030_vm1, %v1034_v56, %v1036_v17  ;;  %v1185_v0 = vsel %vm1178_vm2, %v1182_v34, %v1184_v52  ;;  %v5101_v2 = vsel %vm1273_vm3, %v1277_v55, %v1279_v19  ;;  %v1269_v56 = vld [vmem:[%s5884_s2 + $0x60] sm:$0xff] }
 0x22f   :  { %v984_v36 = vpop.f32.mrf.mxu0  ;;  %2703 = vmatmul.msk.f32.gmra.mxu1 %vm924_vm0, %v1037_v33  ;;  %2721 = vmatmul.msk.f32.gmra.mxu3 %vm924_vm0, %v1185_v0 }
 0x230   :  { %v985_v3 = vadd.f32 %v5068_v63, %v984_v36  ;;  %1326 = vmatpush.msrb.mxu1 %v1269_v56 }
 0x232   :  { %v1006_v18 = vmax.f32 %v985_v3, 0.0 }
 0x234   :  { %2714 = vmatmul.msk.f32.gmra.mxu2 %vm924_vm0, %v1006_v18  ;;  %v1038_v1 = vrot.slane %v1006_v18, 1  ;;  %v1186_v16 = vrot.slane %v1006_v18, 6  ;;  %v1281_v34 = vrot.slane %v1006_v18, 7 }
 0x236   :  { %v1039_v55 = vsel %vm1030_vm1, %v1036_v17, %v1038_v1  ;;  %v1187_v59 = vsel %vm1178_vm2, %v1184_v52, %v1186_v16  ;;  %v5113_v33 = vsel %vm1273_vm3, %v1279_v19, %v1281_v34 }
 0x237   :  { %v987_v0 = vpop.f32.mrf.mxu0  ;;  %2704 = vmatmul.msk.f32.gmra.mxu1 %vm924_vm0, %v1039_v55  ;;  %2722 = vmatmul.msk.f32.gmra.mxu3 %vm924_vm0, %v1187_v59 }
 0x238   :  { %v988_v36 = vadd.f32 %v5068_v63, %v987_v0 }
 0x23a   :  { %v1007_v3 = vmax.f32 %v988_v36, 0.0 }
 0x23c   :  { %2715 = vmatmul.msk.f32.gmra.mxu2 %vm924_vm0, %v1007_v3  ;;  %v1040_v20 = vrot.slane %v1007_v3, 1  ;;  %v1188_v18 = vrot.slane %v1007_v3, 6  ;;  %v1283_v56 = vrot.slane %v1007_v3, 7 }
 0x23e   :  { %v1041_v17 = vsel %vm1030_vm1, %v1038_v1, %v1040_v20  ;;  %v1189_v52 = vsel %vm1178_vm2, %v1186_v16, %v1188_v18  ;;  %v1284_v19 = vsel %vm1273_vm3, %v1281_v34, %v1283_v56 }
 0x23f   :  { %v990_v4 = vpop.f32.mrf.mxu0  ;;  %2705 = vmatmul.msk.f32.gmra.mxu1 %vm924_vm0, %v1041_v17  ;;  %2723 = vmatmul.msk.f32.gmra.mxu3 %vm924_vm0, %v1189_v52 }
 0x240   :  { %v991_v55 = vadd.f32 %v5068_v63, %v990_v4 }
 0x242   :  { %v1008_v59 = vmax.f32 %v991_v55, 0.0 }
 0x244   :  { %2716 = vmatmul.msk.f32.gmra.mxu2 %vm924_vm0, %v1008_v59  ;;  %v1042_v0 = vrot.slane %v1008_v59, 1  ;;  %v1190_v36 = vrot.slane %v1008_v59, 6  ;;  %v1285_v57 = vrot.slane %v1008_v59, 7 }
 0x246   :  { %v1043_v3 = vsel %vm1030_vm1, %v1040_v20, %v1042_v0  ;;  %v1191_v1 = vsel %vm1178_vm2, %v1188_v18, %v1190_v36  ;;  %v1286_v16 = vsel %vm1273_vm3, %v1283_v56, %v1285_v57 }
 0x247   :  { %v993_v34 = vpop.f32.mrf.mxu0  ;;  %2706 = vmatmul.msk.f32.gmra.mxu1 %vm924_vm0, %v1043_v3  ;;  %2724 = vmatmul.msk.f32.gmra.mxu3 %vm924_vm0, %v1191_v1 }
 0x248   :  { %v994_v17 = vadd.f32 %v5068_v63, %v993_v34 }
 0x24a   :  { %v1009_v4 = vmax.f32 %v994_v17, 0.0 }
 0x24c   :  { %2717 = vmatmul.msk.f32.gmra.mxu2 %vm924_vm0, %v1009_v4  ;;  %v1044_v52 = vrot.slane %v1009_v4, 1  ;;  %v1192_v55 = vrot.slane %v1009_v4, 6  ;;  %v1287_v37 = vrot.slane %v1009_v4, 7 }
 0x24e   :  { %v1045_v59 = vsel %vm1030_vm1, %v1042_v0, %v1044_v52  ;;  %v1193_v20 = vsel %vm1178_vm2, %v1190_v36, %v1192_v55  ;;  %v1288_v18 = vsel %vm1273_vm3, %v1285_v57, %v1287_v37 }
 0x24f   :  { %v996_v56 = vpop.f32.mrf.mxu0  ;;  %2707 = vmatmul.msk.f32.gmra.mxu1 %vm924_vm0, %v1045_v59  ;;  %2725 = vmatmul.msk.f32.gmra.mxu3 %vm924_vm0, %v1193_v20 }
 0x250   :  { %v997_v3 = vadd.f32 %v5068_v63, %v996_v56 }
 0x252   :  { %v1010_v1 = vmax.f32 %v997_v3, 0.0 }
 0x254   :  { %2718 = vmatmul.msk.f32.gmra.mxu2 %vm924_vm0, %v1010_v1  ;;  %v1046_v34 = vrot.slane %v1010_v1, 1  ;;  %v1194_v17 = vrot.slane %v1010_v1, 6  ;;  %v1289_v21 = vrot.slane %v1010_v1, 7 }
 0x256   :  { %v1047_v4 = vsel %vm1030_vm1, %v1044_v52, %v1046_v34  ;;  %v1195_v0 = vsel %vm1178_vm2, %v1192_v55, %v1194_v17  ;;  %v1290_v36 = vsel %vm1273_vm3, %v1287_v37, %v1289_v21 }
 0x257   :  { %v999_v57 = vpop.f32.mrf.mxu0  ;;  %2708 = vmatmul.msk.f32.gmra.mxu1 %vm924_vm0, %v1047_v4  ;;  %2726 = vmatmul.msk.f32.gmra.mxu3 %vm924_vm0, %v1195_v0 }
 0x258   :  { %v1000_v59 = vadd.f32 %v5068_v63, %v999_v57 }
 0x25a   :  { %v1011_v20 = vmax.f32 %v1000_v59, 0.0 }
 0x25c   :  { %v1048_v56 = vrot.slane %v1011_v20, 1  ;;  %v1196_v3 = vrot.slane %v1011_v20, 6  ;;  %v1291_v5 = vrot.slane %v1011_v20, 7 }
 0x25e   :  { %v1049_v49 = vsel %vm1030_vm1, %v1046_v34, %v1048_v56  ;;  %v1197_v1 = vsel %vm1178_vm2, %v1194_v17, %v1196_v3  ;;  %v1292_v52 = vsel %vm1273_vm3, %v1289_v21, %v1291_v5 }
 0x25f   :  { %2709 = vmatmul.msk.f32.gmra.mxu1 %vm924_vm0, %v1049_v49  ;;  %2727 = vmatmul.msk.f32.gmra.mxu3 %vm924_vm0, %v1197_v1 }
 0x267   :  { %2728 = vmatmul.msk.f32.vlgmr.msrb.gmra.mxu1 %vm924_vm0, %v5080_v35 }
 0x26f   :  { %2729 = vmatmul.msk.f32.gmra.mxu1 %vm924_vm0, %v5092_v58 }
 0x277   :  { %2730 = vmatmul.msk.f32.gmra.mxu1 %vm924_vm0, %v5101_v2 }
 0x27f   :  { %2731 = vmatmul.msk.f32.gmra.mxu1 %vm924_vm0, %v5113_v33 }
 0x287   :  { %2732 = vmatmul.msk.f32.gmra.mxu1 %vm924_vm0, %v1284_v19 }
 0x28f   :  { %2733 = vmatmul.msk.f32.gmra.mxu1 %vm924_vm0, %v1286_v16 }
 0x297   :  { %2734 = vmatmul.msk.f32.gmra.mxu1 %vm924_vm0, %v1288_v18  ;;  %v1147_v2 = vpop.f32.mrf.mxu2 }
 0x29c   :  { %v1085_v5 = vpop.f32.mrf.mxu1 }
 0x29d   :  { %v1148_v34 = vadd.f32 %v1147_v2, %v1085_v5 }
 0x29f   :  { %2735 = vmatmul.msk.f32.gmra.mxu1 %vm924_vm0, %v1290_v36  ;;  %v1150_v16 = vpop.f32.mrf.mxu2  ;;  %v5175_v36 = vld [vmem:[%s5885_s3 + $0x1] ss:$0 sm:$0xff]  ;;  %s2838_s3 = smov 64  }
 0x2a2   :  { %v1233_v33 = vpop.f32.mrf.mxu3 }
 0x2a3   :  { %v1260_v17 = vadd.f32 %v1233_v33, %v1148_v34 }
 0x2a4   :  { %v1088_v21 = vpop.f32.mrf.mxu1 }
 0x2a5   :  { %v1151_v56 = vadd.f32 %v1150_v16, %v1088_v21 }
 0x2a7   :  { %2736 = vmatmul.msk.f32.gmra.mxu1 %vm924_vm0, %v1292_v52  ;;  %v1153_v4 = vpop.f32.mrf.mxu2 }
 0x2aa   :  { %v1236_v55 = vpop.f32.mrf.mxu3 }
 0x2ab   :  { %v1261_v1 = vadd.f32 %v1236_v55, %v1151_v56 }
 0x2ac   :  { %v1091_v35 = vpop.f32.mrf.mxu1 }
 0x2af   :  { %v1156_v33 = vpop.f32.mrf.mxu2 }
 0x2b2   :  { %v1239_v0 = vpop.f32.mrf.mxu3 }
 0x2b4   :  { %v1094_v37 = vpop.f32.mrf.mxu1 }
 0x2ba   :  { %v1242_v34 = vpop.f32.mrf.mxu3 }
 0x2bc   :  { %v1097_v49 = vpop.f32.mrf.mxu1 }
 0x2c4   :  { %v5164_v63 = vpop.f32.mrf.mxu1 }
 0x2cc   :  { %v5166_v58 = vpop.f32.mrf.mxu1 }
 0x2d4   :  { %v5168_v19 = vpop.f32.mrf.mxu1 }
 0x2dc   :  { %v5170_v18 = vpop.f32.mrf.mxu1 }
 0x2e4   :  { %v1328_v57 = vpop.f32.mrf.mxu1 }
 0x2e5   :  { %v1355_v59 = vadd.f32 %v1328_v57, %v1260_v17  ;;  %v1154_v17 = vadd.f32 %v1153_v4, %v1091_v35 }
 0x2e7   :  { %v1367_v20 = vadd.f32 %v5175_v36, %v1355_v59  ;;  %v1262_v55 = vadd.f32 %v1239_v0, %v1154_v17 }
 0x2e9   :  { %v5178_v3 = vmax.f32 %v1367_v20, 0.0 }
 0x2eb   :  { %v1386_v52 = vrot.slane %v5178_v3, 1  ;;  %v1392_v5 = vrot.slane %v5178_v3, 3  ;;  %v1398_v21 = vrot.slane %v5178_v3, 5  ;;  %v1404_v16 = vrot.slane %v5178_v3, 7 }
 0x2ec   :  { %v1331_v2 = vpop.f32.mrf.mxu1 }
 0x2ed   :  { %v1356_v38 = vadd.f32 %v1331_v2, %v1261_v1  ;;  %v2745_v22 = vpack.i.bf16 %v1392_v5, %v1386_v52  ;;  %v2750_v52 = vpack.i.bf16 %v1404_v16, %v1398_v21  ;;  %v1245_v2 = vpop.f32.mrf.mxu3 }
 0x2ef   :  { %v1368_v6 = vadd.f32 %v5175_v36, %v1356_v38  ;;  %2746 = vrot.lane.b32.xlu0 %v2745_v22, %s2838_s3  ;;  %v1159_v38 = vpop.f32.mrf.mxu2 }
 0x2f1   :  { %v5184_v57 = vmax.f32 %v1368_v6, 0.0  ;;  %v1157_v6 = vadd.f32 %v1156_v33, %v1094_v37  ;;  %v1160_v37 = vadd.f32 %v1159_v38, %v1097_v49 }
 0x2f3   :  { %v1409_v59 = vrot.slane %v5184_v57, 1  ;;  %v1415_v20 = vrot.slane %v5184_v57, 3  ;;  %v1421_v4 = vrot.slane %v5184_v57, 5  ;;  %v1427_v0 = vrot.slane %v5184_v57, 7 }
 0x2f4   :  { %v1334_v56 = vpop.f32.mrf.mxu1  ;;  %v1263_v17 = vadd.f32 %v1242_v34, %v1157_v6  ;;  %v1264_v6 = vadd.f32 %v1245_v2, %v1160_v37 }
 0x2f5   :  { %v1357_v1 = vadd.f32 %v1334_v56, %v1262_v55  ;;  %v2755_v5 = vpack.i.bf16 %v1415_v20, %v1409_v59  ;;  %v2760_v20 = vpack.i.bf16 %v1427_v0, %v1421_v4 }
 0x2f7   :  { %v1369_v22 = vadd.f32 %v5175_v36, %v1357_v1  ;;  %2751 = vrot.lane.b32.xlu0 %v2750_v52, %s2838_s3  ;;  %2756 = vrot.lane.b32.xlu1 %v2755_v5, %s2838_s3  ;;  %v1162_v33 = vpop.f32.mrf.mxu2  ;;  %v1248_v52 = vpop.f32.mrf.mxu3 }
 0x2f8   :  { %v1163_v2 = vadd.f32 %v1162_v33, %v5164_v63 }
 0x2f9   :  { %v5193_v35 = vmax.f32 %v1369_v22, 0.0 }
 0x2fa   :  { %v1265_v37 = vadd.f32 %v1248_v52, %v1163_v2 }
 0x2fb   :  { %v1441_v55 = vrot.slane %v5193_v35, 1  ;;  %v1447_v21 = vrot.slane %v5193_v35, 3  ;;  %v1453_v34 = vrot.slane %v5193_v35, 5  ;;  %v1459_v22 = vrot.slane %v5193_v35, 7 }
 0x2fc   :  { %v1337_v16 = vpop.f32.mrf.mxu1 }
 0x2fd   :  { %v1358_v59 = vadd.f32 %v1337_v16, %v1263_v17  ;;  %v2765_v56 = vpack.i.bf16 %v1447_v21, %v1441_v55  ;;  %v2770_v49 = vpack.i.bf16 %v1459_v22, %v1453_v34 }
 0x2ff   :  { %v1370_v1 = vadd.f32 %v5175_v36, %v1358_v59  ;;  %2761 = vrot.lane.b32.xlu1 %v2760_v20, %s2838_s3  ;;  %2766 = vrot.lane.b32.xlu2 %v2765_v56, %s2838_s3  ;;  %v1251_v60 = vpop.f32.mrf.mxu3 }
 0x301   :  { %v5202_v5 = vmax.f32 %v1370_v1, 0.0  ;;  %v1165_v1 = vpop.f32.mrf.mxu2 }
 0x303   :  { %v1476_v17 = vrot.slane %v5202_v5, 5  ;;  %v1482_v4 = vrot.slane %v5202_v5, 7  ;;  %v1464_v0 = vrot.slane %v5202_v5, 1  ;;  %v1470_v55 = vrot.slane %v5202_v5, 3 }
 0x304   :  { %v1340_v21 = vpop.f32.mrf.mxu1 }
 0x305   :  { %v1359_v16 = vadd.f32 %v1340_v21, %v1264_v6  ;;  %v2780_v38 = vpack.i.bf16 %v1482_v4, %v1476_v17  ;;  %v2775_v59 = vpack.i.bf16 %v1470_v55, %v1464_v0  ;;  %v1166_v55 = vadd.f32 %v1165_v1, %v5166_v58 }
 0x307   :  { %v1371_v20 = vadd.f32 %v5175_v36, %v1359_v16  ;;  %2771 = vrot.lane.b32.xlu2 %v2770_v49, %s2838_s3  ;;  %2781 = vrot.lane.b32.xlu1 %v2780_v38, %s2838_s3  ;;  %v1266_v63 = vadd.f32 %v1251_v60, %v1166_v55 }
 0x308   :  { %2776 = vrot.lane.b32.xlu0 %v2775_v59, %s2838_s3 }
 0x309   :  { %v5215_v56 = vmax.f32 %v1371_v20, 0.0  ;;  %v1168_v59 = vpop.f32.mrf.mxu2  ;;  %v1254_v20 = vpop.f32.mrf.mxu3 }
 0x30a   :  { %v1169_v60 = vadd.f32 %v1168_v59, %v5168_v19 }
 0x30b   :  { %v1495_v6 = vrot.slane %v5215_v56, 1  ;;  %v1501_v34 = vrot.slane %v5215_v56, 3 }
 0x30c   :  { %v1343_v22 = vpop.f32.mrf.mxu1  ;;  %v1267_v1 = vadd.f32 %v1254_v20, %v1169_v60 }
 0x30d   :  { %v1360_v17 = vadd.f32 %v1343_v22, %v1265_v37  ;;  %v2785_v4 = vpack.i.bf16 %v1501_v34, %v1495_v6 }
 0x30f   :  { %v1372_v0 = vadd.f32 %v5175_v36, %v1360_v17  ;;  %2786 = vrot.lane.b32.xlu2 %v2785_v4, %s2838_s3 }
 0x311   :  { %v5222_v21 = vmax.f32 %v1372_v0, 0.0 }
 0x313   :  { %v1520_v33 = vrot.slane %v5222_v21, 1  ;;  %v1526_v52 = vrot.slane %v5222_v21, 3  ;;  %v1510_v16 = vrot.slane %v5222_v21, 5  ;;  %v1516_v49 = vrot.slane %v5222_v21, 7 }
 0x314   :  { %v1346_v38 = vpop.f32.mrf.mxu1 }
 0x315   :  { %v1361_v2 = vadd.f32 %v1346_v38, %v1266_v63  ;;  %v2795_v37 = vpack.i.bf16 %v1526_v52, %v1520_v33  ;;  %v2790_v6 = vpack.i.bf16 %v1516_v49, %v1510_v16  ;;  %v1171_v16 = vpop.f32.mrf.mxu2  ;;  %v1257_v49 = vpop.f32.mrf.mxu3 }
 0x316   :  { %v1172_v19 = vadd.f32 %v1171_v16, %v5170_v18 }
 0x317   :  { %v1373_v34 = vadd.f32 %v5175_v36, %v1361_v2  ;;  %2796 = vrot.lane.b32.xlu1 %v2795_v37, %s2838_s3  ;;  %2791 = vrot.lane.b32.xlu0 %v2790_v6, %s2838_s3 }
 0x318   :  { %v1268_v20 = vadd.f32 %v1257_v49, %v1172_v19  ;;  %v1499_v19 = vrot.slane %v5215_v56, 2 }
 0x319   :  { %v5232_v58 = vmax.f32 %v1373_v34, 0.0 }
 0x31b   :  { %v1549_v22 = vrot.slane %v5232_v58, 1  ;;  %v1555_v17 = vrot.slane %v5232_v58, 3  ;;  %v1533_v4 = vrot.slane %v5232_v58, 5  ;;  %v1539_v0 = vrot.slane %v5232_v58, 7 }
 0x31c   :  { %v1349_v55 = vpop.f32.mrf.mxu1 }
 0x31d   :  { %v1362_v63 = vadd.f32 %v1349_v55, %v1267_v1  ;;  %v2805_v33 = vpack.i.bf16 %v1555_v17, %v1549_v22  ;;  %v2800_v52 = vpack.i.bf16 %v1539_v0, %v1533_v4 }
 0x31f   :  { %v1374_v38 = vadd.f32 %v5175_v36, %v1362_v63  ;;  %2806 = vrot.lane.b32.xlu0 %v2805_v33, %s2838_s3  ;;  %2801 = vrot.lane.b32.xlu2 %v2800_v52, %s2838_s3 }
 0x321   :  { %v5242_v59 = vmax.f32 %v1374_v38, 0.0 }
 0x323   :  { %v1572_v2 = vrot.slane %v5242_v59, 1  ;;  %v1578_v37 = vrot.slane %v5242_v59, 3  ;;  %v1562_v6 = vrot.slane %v5242_v59, 5  ;;  %v1568_v34 = vrot.slane %v5242_v59, 7 }
 0x324   :  { %v1352_v60 = vpop.f32.mrf.mxu1  ;;  %v1576_v53 = vrot.slane %v5242_v59, 2 }
 0x325   :  { %v1363_v1 = vadd.f32 %v1352_v60, %v1268_v20  ;;  %v2815_v22 = vpack.i.bf16 %v1578_v37, %v1572_v2  ;;  %v2810_v17 = vpack.i.bf16 %v1568_v34, %v1562_v6  ;;  %v1390_v60 = vrot.slane %v5178_v3, 2 }
 0x327   :  { %v1375_v4 = vadd.f32 %v5175_v36, %v1363_v1  ;;  %2816 = vrot.lane.b32.xlu2 %v2815_v22, %s2838_s3  ;;  %2811 = vrot.lane.b32.xlu1 %v2810_v17, %s2838_s3 }
 0x329   :  { %v5251_v18 = vmax.f32 %v1375_v4, 0.0 }
 0x32b   :  { %v1603_v0 = vrot.slane %v5251_v18, 1  ;;  %v1609_v55 = vrot.slane %v5251_v18, 3  ;;  %v1585_v63 = vrot.slane %v5251_v18, 5  ;;  %v1591_v33 = vrot.slane %v5251_v18, 7 }
 0x32d   :  { %v2825_v52 = vpack.i.bf16 %v1609_v55, %v1603_v0  ;;  %v2820_v16 = vpack.i.bf16 %v1591_v33, %v1585_v63 }
 0x32f   :  { %2826 = vrot.lane.b32.xlu1 %v2825_v52, %s2838_s3  ;;  %2821 = vrot.lane.b32.xlu0 %v2820_v16, %s2838_s3 }
 0x359   :  { %v5259_v36 = vpop.permute.xlu2 %2766 }
 0x361   :  { %v5261_v49 = vpop.permute.xlu2 %2771  ;;  %v2747_v38 = vpop.permute.xlu0 %2746 }
 0x362   :  { %v2749_v2 = vunpack.i.h.bf16 %v2747_v38  ;;  %v2748_v37 = vunpack.i.l.bf16 %v2747_v38 }
 0x364   :  { %v1433_v55 = vsel %vm1431_vm4, %v1390_v60, %v2749_v2  ;;  %v1432_v63 = vsel %vm1431_vm4, %v5178_v3, %v2748_v37  ;;  %v1419_v37 = vrot.slane %v5184_v57, 4 }
 0x369   :  { %v2787_v20 = vpop.permute.xlu2 %2786  ;;  %v5265_v1 = vpop.permute.xlu1 %2756 }
 0x36a   :  { %v2789_v6 = vunpack.i.h.bf16 %v2787_v20  ;;  %v2788_v34 = vunpack.i.l.bf16 %v2787_v20  ;;  %v5285_v16 = vpop.permute.xlu0 %2751  ;;  %v1531_v20 = vrot.slane %v5232_v58, 4 }
 0x36c   :  { %v5268_v22 = vsel %vm1431_vm4, %v1499_v19, %v2789_v6  ;;  %v5272_v17 = vsel %vm1431_vm4, %v5215_v56, %v2788_v34  ;;  %v1537_v56 = vrot.slane %v5232_v58, 6 }
 0x36d   :  { %v1634_v4 = vrot.slane %v5268_v22, 3  ;;  %v1633_v0 = vrot.slane %v5272_v17, 3 }
 0x36f   :  { %v5280_v33 = vsel %vm1273_vm3, %v1433_v55, %v1634_v4  ;;  %v5283_v52 = vsel %vm1273_vm3, %v1432_v63, %v1633_v0  ;;  %v1425_v4 = vrot.slane %v5184_v57, 6 }
 0x370   :  { %6283 = vst [vmem:[#allocation404_spill] sm:$0xff] %v5280_v33 }
 0x371   :  { %6284 = vst [vmem:[#allocation405_spill] sm:$0xff] %v5283_v52  ;;  %v2762_v38 = vpop.permute.xlu1 %2761 }
 0x372   :  { %v2764_v6 = vunpack.i.h.bf16 %v2762_v38  ;;  %v2763_v34 = vunpack.i.l.bf16 %v2762_v38 }
 0x374   :  { %v1439_v52 = vsel %vm1431_vm4, %v1425_v4, %v2764_v6  ;;  %v1438_v39 = vsel %vm1431_vm4, %v1419_v37, %v2763_v34  ;;  %v1468_v6 = vrot.slane %v5202_v5, 2 }
 0x379   :  { %v2802_v19 = vpop.permute.xlu2 %2801 }
 0x37a   :  { %v2804_v2 = vunpack.i.h.bf16 %v2802_v19  ;;  %v2803_v60 = vunpack.i.l.bf16 %v2802_v19  ;;  %v2777_v23 = vpop.permute.xlu0 %2776  ;;  %v5301_v19 = vpop.permute.xlu1 %2781 }
 0x37c   :  { %v1548_v55 = vsel %vm1431_vm4, %v1537_v56, %v2804_v2  ;;  %v1547_v0 = vsel %vm1431_vm4, %v1531_v20, %v2803_v60  ;;  %v2779_v2 = vunpack.i.h.bf16 %v2777_v23  ;;  %v2778_v20 = vunpack.i.l.bf16 %v2777_v23 }
 0x37d   :  { %v1640_v63 = vrot.slane %v1548_v55, 3  ;;  %v1639_v33 = vrot.slane %v1547_v0, 3 }
 0x37f   :  { %v5296_v7 = vsel %vm1273_vm3, %v1439_v52, %v1640_v63  ;;  %v5299_v38 = vsel %vm1273_vm3, %v1438_v39, %v1639_v33  ;;  %v1491_v39 = vsel %vm1431_vm4, %v1468_v6, %v2779_v2  ;;  %v1490_v33 = vsel %vm1431_vm4, %v5202_v5, %v2778_v20 }
 0x380   :  { %6285 = vst [vmem:[#allocation406_spill] sm:$0xff] %v5296_v7  ;;  %v1524_v63 = vrot.slane %v5222_v21, 2  ;;  %v2759_v2 = vunpack.i.h.bf16 %v5265_v1  ;;  %v2758_v20 = vunpack.i.l.bf16 %v5265_v1  ;;  %v1413_v7 = vrot.slane %v5184_v57, 2 }
 0x381   :  { %6286 = vst [vmem:[#allocation407_spill] sm:$0xff] %v5299_v38  ;;  %v2817_v56 = vpop.permute.xlu2 %2816 }
 0x382   :  { %v2819_v60 = vunpack.i.h.bf16 %v2817_v56  ;;  %v2818_v55 = vunpack.i.l.bf16 %v2817_v56  ;;  %v1508_v56 = vrot.slane %v5222_v21, 4 }
 0x384   :  { %v1600_v34 = vsel %vm1431_vm4, %v1576_v53, %v2819_v60  ;;  %v1599_v52 = vsel %vm1431_vm4, %v5242_v59, %v2818_v55  ;;  %v1514_v53 = vrot.slane %v5222_v21, 6  ;;  %v2754_v60 = vunpack.i.h.bf16 %v5285_v16 }
 0x385   :  { %v1646_v37 = vrot.slane %v1600_v34, 3  ;;  %v1645_v4 = vrot.slane %v1599_v52, 3  ;;  %v2753_v55 = vunpack.i.l.bf16 %v5285_v16 }
 0x387   :  { %v5312_v0 = vsel %vm1273_vm3, %v1491_v39, %v1646_v37  ;;  %v5315_v23 = vsel %vm1273_vm3, %v1490_v33, %v1645_v4  ;;  %v1396_v33 = vrot.slane %v5178_v3, 4 }
 0x388   :  { %6287 = vst [vmem:[#allocation408_spill] sm:$0xff] %v5312_v0 }
 0x389   :  { %6288 = vst [vmem:[#allocation409_spill] sm:$0xff] %v5315_v23  ;;  %v2797_v6 = vpop.permute.xlu1 %2796  ;;  %v2792_v34 = vpop.permute.xlu0 %2791  ;;  %v1402_v23 = vrot.slane %v5178_v3, 6  ;;  %v1434_v48 = vsel %vm1431_vm4, %v1396_v33, %v2753_v55  ;;  %v1437_v3 = vsel %vm1431_vm4, %v1413_v7, %v2759_v2  ;;  %v2769_v7 = vunpack.i.h.bf16 %v5259_v36 }
 0x38a   :  { %v2799_v52 = vunpack.i.h.bf16 %v2797_v6  ;;  %v2798_v37 = vunpack.i.l.bf16 %v2797_v6  ;;  %v2794_v4 = vunpack.i.h.bf16 %v2792_v34  ;;  %v2793_v39 = vunpack.i.l.bf16 %v2792_v34 }
 0x38b   :  { %v1435_v34 = vsel %vm1431_vm4, %v1402_v23, %v2754_v60  ;;  %v1553_v23 = vrot.slane %v5232_v58, 2  ;;  %v1560_v33 = vrot.slane %v5242_v59, 4 }
 0x38c   :  { %v1546_v38 = vsel %vm1431_vm4, %v1524_v63, %v2799_v52  ;;  %v1545_v16 = vsel %vm1431_vm4, %v5222_v21, %v2798_v37  ;;  %v1544_v0 = vsel %vm1431_vm4, %v1514_v53, %v2794_v4  ;;  %v1543_v1 = vsel %vm1431_vm4, %v1508_v56, %v2793_v39 }
 0x38d   :  { %v1638_v40 = vrot.slane %v1546_v38, 3  ;;  %v1637_v24 = vrot.slane %v1545_v16, 3  ;;  %v1636_v6 = vrot.slane %v1544_v0, 3  ;;  %v1635_v8 = vrot.slane %v1543_v1, 3 }
 0x38e   :  { %v1436_v63 = vsel %vm1431_vm4, %v5184_v57, %v2758_v20  ;;  %v2768_v56 = vunpack.i.l.bf16 %v5259_v36  ;;  %v1566_v4 = vrot.slane %v5242_v59, 6  ;;  %v2773_v16 = vunpack.i.l.bf16 %v5261_v49 }
 0x38f   :  { %v5338_v52 = vsel %vm1273_vm3, %v1437_v3, %v1638_v40  ;;  %v5341_v21 = vsel %vm1273_vm3, %v1436_v63, %v1637_v24  ;;  %v5344_v38 = vsel %vm1273_vm3, %v1435_v34, %v1636_v6  ;;  %v5347_v0 = vsel %vm1273_vm3, %v1434_v48, %v1635_v8 }
 0x390   :  { %v1445_v40 = vrot.slane %v5193_v35, 2  ;;  %v1486_v48 = vsel %vm1431_vm4, %v5193_v35, %v2768_v56  ;;  %v1451_v34 = vrot.slane %v5193_v35, 4  ;;  %v1457_v3 = vrot.slane %v5193_v35, 6 }
 0x391   :  { %v2807_v53 = vpop.permute.xlu0 %2806  ;;  %v2784_v35 = vunpack.i.h.bf16 %v5301_v19 }
 0x392   :  { %v2809_v57 = vunpack.i.h.bf16 %v2807_v53  ;;  %v2808_v60 = vunpack.i.l.bf16 %v2807_v53  ;;  %v1487_v8 = vsel %vm1431_vm4, %v1445_v40, %v2769_v7  ;;  %v1488_v59 = vsel %vm1431_vm4, %v1451_v34, %v2773_v16 }
 0x393   :  { %v2783_v40 = vunpack.i.l.bf16 %v5301_v19 }
 0x394   :  { %v1596_v24 = vsel %vm1431_vm4, %v1553_v23, %v2809_v57  ;;  %v1595_v55 = vsel %vm1431_vm4, %v5232_v58, %v2808_v60  ;;  %v2774_v58 = vunpack.i.h.bf16 %v5261_v49  ;;  %v1607_v60 = vrot.slane %v5251_v18, 2 }
 0x395   :  { %v1642_v2 = vrot.slane %v1596_v24, 3  ;;  %v1641_v20 = vrot.slane %v1595_v55, 3  ;;  %v1589_v55 = vrot.slane %v5251_v18, 6 }
 0x396   :  { %v1489_v56 = vsel %vm1431_vm4, %v1457_v3, %v2774_v58  ;;  %v1474_v58 = vrot.slane %v5202_v5, 4 }
 0x397   :  { %v5360_v37 = vsel %vm1273_vm3, %v1487_v8, %v1642_v2  ;;  %v5363_v36 = vsel %vm1273_vm3, %v1486_v48, %v1641_v20  ;;  %v1583_v20 = vrot.slane %v5251_v18, 4 }
 0x399   :  { %v2812_v39 = vpop.permute.xlu1 %2811 }
 0x39a   :  { %v2814_v1 = vunpack.i.h.bf16 %v2812_v39  ;;  %v2813_v6 = vunpack.i.l.bf16 %v2812_v39 }
 0x39c   :  { %v1598_v63 = vsel %vm1431_vm4, %v1566_v4, %v2814_v1  ;;  %v1597_v23 = vsel %vm1431_vm4, %v1560_v33, %v2813_v6  ;;  %v1480_v33 = vrot.slane %v5202_v5, 6 }
 0x39d   :  { %v1644_v53 = vrot.slane %v1598_v63, 3  ;;  %v1643_v7 = vrot.slane %v1597_v23, 3 }
 0x39f   :  { %v5376_v57 = vsel %vm1273_vm3, %v1489_v56, %v1644_v53  ;;  %v5379_v49 = vsel %vm1273_vm3, %v1488_v59, %v1643_v7  ;;  %v1493_v53 = vsel %vm1431_vm4, %v1480_v33, %v2784_v35  ;;  %v1492_v7 = vsel %vm1431_vm4, %v1474_v58, %v2783_v40 }
 0x3a1   :  { %v2827_v24 = vpop.permute.xlu1 %2826  ;;  %v2822_v2 = vpop.permute.xlu0 %2821 }
 0x3a2   :  { %v2829_v8 = vunpack.i.h.bf16 %v2827_v24  ;;  %v2828_v48 = vunpack.i.l.bf16 %v2827_v24  ;;  %v2824_v4 = vunpack.i.h.bf16 %v2822_v2  ;;  %v2823_v39 = vunpack.i.l.bf16 %v2822_v2 }
 0x3a4   :  { %v1614_v16 = vsel %vm1431_vm4, %v1607_v60, %v2829_v8  ;;  %v1613_v1 = vsel %vm1431_vm4, %v5251_v18, %v2828_v48  ;;  %v1602_v19 = vsel %vm1431_vm4, %v1589_v55, %v2824_v4  ;;  %v1601_v6 = vsel %vm1431_vm4, %v1583_v20, %v2823_v39 }
 0x3a5   :  { %v1650_v34 = vrot.slane %v1614_v16, 3  ;;  %v1649_v3 = vrot.slane %v1613_v1, 3  ;;  %v1648_v63 = vrot.slane %v1602_v19, 3  ;;  %v1647_v23 = vrot.slane %v1601_v6, 3 }
 0x3a7   :  { %v5397_v5 = vsel %vm1273_vm3, %v5268_v22, %v1650_v34  ;;  %v5401_v56 = vsel %vm1273_vm3, %v5272_v17, %v1649_v3  ;;  %v5404_v18 = vsel %vm1273_vm3, %v1493_v53, %v1648_v63  ;;  %v5407_v59 = vsel %vm1273_vm3, %v1492_v7, %v1647_v23 }
 0x3a8   :  { %2832 = dma.done.wait [#allocation5], 36864 }
 0x3a9   :  { %2833 = vsyncadd [#allocation5], 4294930432  ;;  %2021 = vmatpush.msrb.mxu0 %v3117_v47  ;;  %2161 = vmatpush.msra.mxu1 %v3677_v32  ;;  %v6294_v15 = vld [vmem:[#allocation19_spill] sm:$0xff]  ;;  %v6302_v31 = vld [vmem:[#allocation17_spill] sm:$0xff] }
 0x3aa   :  { %1982 = vmatpush.msrb.mxu2 %v2952_v14  ;;  %2002 = vmatpush.msrb.mxu3 %v3032_v30  ;;  %v6292_v14 = vld [vmem:[#allocation38_spill] sm:$0xff]  ;;  %v6301_v30 = vld [vmem:[#allocation141_spill] sm:$0xff]  ;;  %v6310_v47 = vld [vmem:[#allocation15_spill] sm:$0xff] }
 0x3ab   :  { %2022 = vmatpush.msrb.mxu0 %v3112_v46  ;;  %2162 = vmatpush.msra.mxu1 %v3672_v62  ;;  %v6303_v32 = vld [vmem:[#allocation26_spill] sm:$0xff]  ;;  %v6309_v46 = vld [vmem:[#allocation139_spill] sm:$0xff]  ;;  %v6316_v22 = vld [vmem:[#allocation32_spill] sm:$0xff] }
 0x3ac   :  { %1983 = vmatpush.msrb.mxu2 %v2947_v13  ;;  %2003 = vmatpush.msrb.mxu3 %v3027_v29  ;;  %v6291_v13 = vld [vmem:[#allocation29_spill] sm:$0xff]  ;;  %v6300_v29 = vld [vmem:[#allocation36_spill] sm:$0xff]  ;;  %v6315_v62 = vld [vmem:[#allocation23_spill] sm:$0xff] }
 0x3ad   :  { %2023 = vmatpush.msrb.mxu0 %v3107_v45  ;;  %2163 = vmatpush.msra.mxu1 %v3667_v50  ;;  %v6308_v45 = vld [vmem:[#allocation34_spill] sm:$0xff]  ;;  %v6311_v50 = vld [vmem:[#allocation24_spill] sm:$0xff]  ;;  %v6317_v17 = vld [vmem:[#allocation137_spill] sm:$0xff] }
 0x3ae   :  { %1984 = vmatpush.msrb.mxu2 %v2942_v12  ;;  %2004 = vmatpush.msrb.mxu3 %v3022_v28  ;;  %v6290_v12 = vld [vmem:[#allocation20_spill] sm:$0xff]  ;;  %v6299_v28 = vld [vmem:[#allocation27_spill] sm:$0xff]  ;;  %v6318_v60 = vld [vmem:[#allocation13_spill] sm:$0xff] }
 0x3af   :  { %2024 = vmatpush.msrb.mxu0 %v3102_v44  ;;  %2164 = vmatpush.msra.mxu1 %v3662_v51  ;;  %v6307_v44 = vld [vmem:[#allocation25_spill] sm:$0xff]  ;;  %v6319_v35 = vld [vmem:[#allocation22_spill] sm:$0xff]  ;;  %v6320_v40 = vld [vmem:[#allocation31_spill] sm:$0xff] }
 0x3b0   :  { %1985 = vmatpush.msrb.mxu2 %v2937_v11  ;;  %2005 = vmatpush.msrb.mxu3 %v3017_v27  ;;  %v6289_v11 = vld [vmem:[#allocation144_spill] sm:$0xff]  ;;  %v6296_v27 = vld [vmem:[#allocation37_spill] sm:$0xff]  ;;  %v6324_v20 = vld [vmem:[#allocation54_spill] sm:$0xff] }
 0x3b1   :  { %2025 = vmatpush.msrb.mxu0 %v3097_v43  ;;  %2165 = vmatpush.msra.mxu1 %v3657_v61  ;;  %v6306_v43 = vld [vmem:[#allocation16_spill] sm:$0xff]  ;;  %v6312_v51 = vld [vmem:[#allocation33_spill] sm:$0xff]  ;;  %v6314_v61 = vld [vmem:[#allocation14_spill] sm:$0xff] }
 0x3b2   :  { %1986 = vmatpush.msrb.mxu2 %v2932_v10  ;;  %2006 = vmatpush.msrb.mxu3 %v3012_v26  ;;  %v6293_v10 = vld [vmem:[#allocation143_spill] sm:$0xff]  ;;  %v6295_v26 = vld [vmem:[#allocation28_spill] sm:$0xff]  ;;  %v6323_v2 = vld [vmem:[#allocation21_spill] sm:$0xff] }
 0x3b3   :  { %2026 = vmatpush.msrb.mxu0 %v3092_v42  ;;  %2166 = vmatpush.msra.mxu1 %v3652_v54  ;;  %v6305_v42 = vld [vmem:[#allocation140_spill] sm:$0xff]  ;;  %v6313_v54 = vld [vmem:[#allocation138_spill] sm:$0xff]  ;;  %v6327_v4 = vld [vmem:[#allocation405_spill] sm:$0xff] }
 0x3b4   :  { %1987 = vmatpush.msrb.mxu2 %v2927_v9  ;;  %2007 = vmatpush.msrb.mxu3 %v3007_v25  ;;  %v6297_v9 = vld [vmem:[#allocation142_spill] sm:$0xff]  ;;  %v6321_v24 = vld [vmem:[#allocation136_spill] sm:$0xff]  ;;  %v6328_v39 = vld [vmem:[#allocation53_spill] sm:$0xff] }
 0x3b5   :  { %2027 = vmatpush.msrb.mxu0 %v3087_v41  ;;  %2167 = vmatpush.msra.mxu1 %v6289_v11  ;;  %v6298_v25 = vld [vmem:[#allocation18_spill] sm:$0xff]  ;;  %v6304_v41 = vld [vmem:[#allocation35_spill] sm:$0xff]  ;;  %v6322_v55 = vld [vmem:[#allocation12_spill] sm:$0xff] }
 0x3b6   :  { %1988 = vmatpush.msrb.mxu2 %v6290_v12  ;;  %2008 = vmatpush.msrb.mxu3 %v6291_v13  ;;  %v6325_v8 = vld [vmem:[#allocation70_spill] sm:$0xff]  ;;  %v6329_v33 = vld [vmem:[#allocation69_spill] sm:$0xff]  ;;  %v6331_v16 = vld [vmem:[#allocation404_spill] sm:$0xff] }
 0x3b7   :  { %2028 = vmatpush.msrb.mxu0 %v6292_v14  ;;  %2168 = vmatpush.msra.mxu1 %v6293_v10  ;;  %v6326_v48 = vld [vmem:[#allocation30_spill] sm:$0xff]  ;;  %v6332_v1 = vld [vmem:[#allocation52_spill] sm:$0xff]  ;;  %v6334_v6 = vld [vmem:[#allocation85_spill] sm:$0xff] }
 0x3b8   :  { %1989 = vmatpush.msrb.mxu2 %v6294_v15  ;;  %2009 = vmatpush.msrb.mxu3 %v6295_v26  ;;  %v6330_v58 = vld [vmem:[#allocation86_spill] sm:$0xff]  ;;  %v6333_v19 = vld [vmem:[#allocation68_spill] sm:$0xff]  ;;  %v6335_v34 = vld [vmem:[#allocation135_spill] sm:$0xff] }
 0x3b9   :  { %2029 = vmatpush.msrb.mxu0 %v6296_v27  ;;  %2169 = vmatpush.msra.mxu1 %v6297_v9  ;;  %v6336_v3 = vld [vmem:[#allocation51_spill] sm:$0xff]  ;;  %v6338_v23 = vld [vmem:[#allocation84_spill] sm:$0xff]  ;;  %v6339_v53 = vld [vmem:[#allocation50_spill] sm:$0xff] }
 0x3ba   :  { %1990 = vmatpush.msrb.mxu2 %v6298_v25  ;;  %2010 = vmatpush.msrb.mxu3 %v6299_v28  ;;  %v6337_v63 = vld [vmem:[#allocation67_spill] sm:$0xff]  ;;  %v6340_v7 = vld [vmem:[#allocation66_spill] sm:$0xff]  ;;  %v6342_v12 = vld [vmem:[#allocation208_spill] sm:$0xff] }
 0x3bb   :  { %2030 = vmatpush.msrb.mxu0 %v6300_v29  ;;  %2170 = vmatpush.msra.mxu1 %v6301_v30  ;;  %v6341_v11 = vld [vmem:[#allocation83_spill] sm:$0xff]  ;;  %v6343_v13 = vld [vmem:[#allocation49_spill] sm:$0xff]  ;;  %v6345_v10 = vld [vmem:[#allocation82_spill] sm:$0xff] }
 0x3bc   :  { %1991 = vmatpush.msrb.mxu2 %v6302_v31  ;;  %2011 = vmatpush.msrb.mxu3 %v6303_v32  ;;  %v6344_v14 = vld [vmem:[#allocation65_spill] sm:$0xff]  ;;  %v6346_v15 = vld [vmem:[#allocation207_spill] sm:$0xff]  ;;  %v6347_v26 = vld [vmem:[#allocation48_spill] sm:$0xff] }
 0x3bd   :  { %2031 = vmatpush.msrb.mxu0 %v6304_v41  ;;  %2171 = vmatpush.msra.mxu1 %v6305_v42  ;;  %v6348_v27 = vld [vmem:[#allocation64_spill] sm:$0xff]  ;;  %v6350_v9 = vld [vmem:[#allocation206_spill] sm:$0xff]  ;;  %v6351_v25 = vld [vmem:[#allocation47_spill] sm:$0xff] }
 0x3be   :  { %1992 = vmatpush.msrb.mxu2 %v6306_v43  ;;  %2012 = vmatpush.msrb.mxu3 %v6307_v44  ;;  %v6352_v28 = vld [vmem:[#allocation63_spill] sm:$0xff]  ;;  %v6353_v29 = vld [vmem:[#allocation80_spill] sm:$0xff]  ;;  %v6354_v30 = vld [vmem:[#allocation205_spill] sm:$0xff] }
 0x3bf   :  { %2032 = vmatpush.msrb.mxu0 %v6308_v45  ;;  %2172 = vmatpush.msra.mxu1 %v6309_v46  ;;  %v6355_v31 = vld [vmem:[#allocation46_spill] sm:$0xff]  ;;  %v6357_v41 = vld [vmem:[#allocation79_spill] sm:$0xff]  ;;  %v6358_v42 = vld [vmem:[#allocation204_spill] sm:$0xff] }
 0x3c0   :  { %1993 = vmatpush.msrb.mxu2 %v6310_v47  ;;  %2013 = vmatpush.msrb.mxu3 %v6311_v50  ;;  %v6356_v32 = vld [vmem:[#allocation62_spill] sm:$0xff]  ;;  %v6359_v43 = vld [vmem:[#allocation45_spill] sm:$0xff]  ;;  %v6362_v46 = vld [vmem:[#allocation203_spill] sm:$0xff] }
 0x3c1   :  { %2033 = vmatpush.msrb.mxu0 %v6312_v51  ;;  %2173 = vmatpush.msra.mxu1 %v6313_v54  ;;  %v6360_v44 = vld [vmem:[#allocation61_spill] sm:$0xff]  ;;  %v6361_v45 = vld [vmem:[#allocation78_spill] sm:$0xff]  ;;  %v6363_v47 = vld [vmem:[#allocation44_spill] sm:$0xff] }
 0x3c2   :  { %1994 = vmatpush.msrb.mxu2 %v6314_v61  ;;  %2014 = vmatpush.msrb.mxu3 %v6315_v62  ;;  %v6364_v50 = vld [vmem:[#allocation60_spill] sm:$0xff]  ;;  %v6365_v51 = vld [vmem:[#allocation77_spill] sm:$0xff]  ;;  %v6366_v54 = vld [vmem:[#allocation202_spill] sm:$0xff] }
 0x3c3   :  { %2034 = vmatpush.msrb.mxu0 %v6316_v22  ;;  %2174 = vmatpush.msra.mxu1 %v6317_v17  ;;  %v6367_v61 = vld [vmem:[#allocation43_spill] sm:$0xff]  ;;  %v6369_v22 = vld [vmem:[#allocation76_spill] sm:$0xff]  ;;  %v6370_v17 = vld [vmem:[#allocation201_spill] sm:$0xff] }
 0x3c4   :  { %1995 = vmatpush.msrb.mxu2 %v6318_v60  ;;  %2015 = vmatpush.msrb.mxu3 %v6319_v35  ;;  %v6368_v62 = vld [vmem:[#allocation59_spill] sm:$0xff]  ;;  %v6371_v60 = vld [vmem:[#allocation42_spill] sm:$0xff] }
 0x3c5   :  { %2035 = vmatpush.msrb.mxu0 %v6320_v40  ;;  %2175 = vmatpush.msra.mxu1 %v6321_v24  ;;  %v6372_v35 = vld [vmem:[#allocation58_spill] sm:$0xff]  ;;  %v6373_v40 = vld [vmem:[#allocation75_spill] sm:$0xff]  ;;  %v6374_v24 = vld [vmem:[#allocation200_spill] sm:$0xff] }
 0x3c6   :  { %1996 = vmatpush.msrb.mxu2 %v6322_v55  ;;  %2016 = vmatpush.msrb.mxu3 %v6323_v2  ;;  %v6375_v55 = vld [vmem:[#allocation41_spill] sm:$0xff] }
 0x3c7   :  { %2036 = vmatpush.msrb.mxu0 %v6326_v48  ;;  %1997 = vmatmul.f32.vlgmr.msrb.gmra.mxu2 %v6327_v4  ;;  %v6376_v2 = vld [vmem:[#allocation57_spill] sm:$0xff]  ;;  %v6379_v48 = vld [vmem:[#allocation40_spill] sm:$0xff] }
 0x3c8   :  { %2041 = vmatpush.msra.mxu2 %v6324_v20  ;;  %2061 = vmatpush.msra.mxu3 %v6325_v8  ;;  %v6377_v20 = vld [vmem:[#allocation74_spill] sm:$0xff]  ;;  %v6378_v8 = vld [vmem:[#allocation199_spill] sm:$0xff]  ;;  %v6380_v4 = vld [vmem:[#allocation56_spill] sm:$0xff] }
 0x3c9   :  { %2081 = vmatpush.msra.mxu0 %v6330_v58  ;;  %2017 = vmatmul.f32.vlgmr.msrb.gmra.mxu3 %v6331_v16  ;;  %v6383_v58 = vld [vmem:[#allocation39_spill] sm:$0xff] }
 0x3ca   :  { %2042 = vmatpush.msra.mxu2 %v6328_v39  ;;  %2062 = vmatpush.msra.mxu3 %v6329_v33  ;;  %v6381_v39 = vld [vmem:[#allocation73_spill] sm:$0xff]  ;;  %v6382_v33 = vld [vmem:[#allocation198_spill] sm:$0xff]  ;;  %v6384_v16 = vld [vmem:[#allocation55_spill] sm:$0xff] }
 0x3cb   :  { %2082 = vmatpush.msra.mxu0 %v6334_v6  ;;  %2176 = vmatpush.msra.mxu1 %v6335_v34  ;;  %v6387_v6 = vld [vmem:[#allocation72_spill] sm:$0xff]  ;;  %v6388_v34 = vld [vmem:[#allocation101_spill] sm:$0xff] }
 0x3cc   :  { %2043 = vmatpush.msra.mxu2 %v6332_v1  ;;  %2063 = vmatpush.msra.mxu3 %v6333_v19  ;;  %v6385_v1 = vld [vmem:[#allocation102_spill] sm:$0xff] }
 0x3cd   :  { %2083 = vmatpush.msra.mxu0 %v6338_v23  ;;  %2177 = vmatmul.f32.vlgmr.msra.gmra.mxu1 %v5360_v37  ;;  %v6349_v37 = vld [vmem:[#allocation81_spill] sm:$0xff]  ;;  %v6386_v19 = vld [vmem:[#allocation118_spill] sm:$0xff]  ;;  %v6391_v23 = vld [vmem:[#allocation116_spill] sm:$0xff] }
 0x3ce   :  { %2044 = vmatpush.msra.mxu2 %v6336_v3  ;;  %2064 = vmatpush.msra.mxu3 %v6337_v63  ;;  %v6389_v3 = vld [vmem:[#allocation117_spill] sm:$0xff]  ;;  %v6390_v63 = vld [vmem:[#allocation100_spill] sm:$0xff] }
 0x3cf   :  { %2084 = vmatpush.msra.mxu0 %v6341_v11  ;;  %2241 = vmatpush.msrb.mxu1 %v6342_v12  ;;  %v6394_v11 = vld [vmem:[#allocation99_spill] sm:$0xff]  ;;  %v6396_v12 = vld [vmem:[#allocation134_spill] sm:$0xff] }
 0x3d0   :  { %2045 = vmatpush.msra.mxu2 %v6339_v53  ;;  %2065 = vmatpush.msra.mxu3 %v6340_v7  ;;  %v6392_v53 = vld [vmem:[#allocation71_spill] sm:$0xff]  ;;  %v6393_v7 = vld [vmem:[#allocation197_spill] sm:$0xff] }
 0x3d1   :  { %2085 = vmatpush.msra.mxu0 %v6345_v10  ;;  %2242 = vmatpush.msrb.mxu1 %v6346_v15  ;;  %v6401_v10 = vld [vmem:[#allocation195_spill] sm:$0xff]  ;;  %v6402_v15 = vld [vmem:[#allocation97_spill] sm:$0xff] }
 0x3d2   :  { %2046 = vmatpush.msra.mxu2 %v6343_v13  ;;  %2066 = vmatpush.msra.mxu3 %v6344_v14  ;;  %v6397_v13 = vld [vmem:[#allocation196_spill] sm:$0xff]  ;;  %v6398_v14 = vld [vmem:[#allocation98_spill] sm:$0xff] }
 0x3d3   :  { %2086 = vmatpush.msra.mxu0 %v6349_v37  ;;  %2243 = vmatpush.msrb.mxu1 %v6350_v9  ;;  %v6405_v37 = vld [vmem:[#allocation194_spill] sm:$0xff]  ;;  %v6406_v9 = vld [vmem:[#allocation96_spill] sm:$0xff] }
 0x3d4   :  { %2047 = vmatpush.msra.mxu2 %v6347_v26  ;;  %2067 = vmatpush.msra.mxu3 %v6348_v27  ;;  %v6403_v26 = vld [vmem:[#allocation113_spill] sm:$0xff]  ;;  %v6404_v27 = vld [vmem:[#allocation132_spill] sm:$0xff] }
 0x3d5   :  { %2087 = vmatpush.msra.mxu0 %v6353_v29  ;;  %2244 = vmatpush.msrb.mxu1 %v6354_v30  ;;  %v6409_v29 = vld [vmem:[#allocation95_spill] sm:$0xff] }
 0x3d6   :  { %2048 = vmatpush.msra.mxu2 %v6351_v25  ;;  %2068 = vmatpush.msra.mxu3 %v6352_v28  ;;  %v6407_v25 = vld [vmem:[#allocation112_spill] sm:$0xff]  ;;  %v6408_v28 = vld [vmem:[#allocation193_spill] sm:$0xff]  ;;  %v6410_v30 = vld [vmem:[#allocation111_spill] sm:$0xff] }
 0x3d7   :  { %2088 = vmatpush.msra.mxu0 %v6357_v41  ;;  %2245 = vmatpush.msrb.mxu1 %v6358_v42  ;;  %v6413_v41 = vld [vmem:[#allocation94_spill] sm:$0xff] }
 0x3d8   :  { %2049 = vmatpush.msra.mxu2 %v6355_v31  ;;  %2069 = vmatpush.msra.mxu3 %v6356_v32  ;;  %v6411_v31 = vld [vmem:[#allocation131_spill] sm:$0xff]  ;;  %v6412_v32 = vld [vmem:[#allocation408_spill] sm:$0xff]  ;;  %v6414_v42 = vld [vmem:[#allocation110_spill] sm:$0xff] }
 0x3d9   :  { %2089 = vmatpush.msra.mxu0 %v6361_v45  ;;  %2246 = vmatpush.msrb.mxu1 %v6362_v46  ;;  %v6417_v45 = vld [vmem:[#allocation93_spill] sm:$0xff] }
 0x3da   :  { %2050 = vmatpush.msra.mxu2 %v6359_v43  ;;  %2070 = vmatpush.msra.mxu3 %v6360_v44  ;;  %v6415_v43 = vld [vmem:[#allocation130_spill] sm:$0xff]  ;;  %v6416_v44 = vld [vmem:[#allocation272_spill] sm:$0xff]  ;;  %v6419_v46 = vld [vmem:[#allocation129_spill] sm:$0xff] }
 0x3db   :  { %2090 = vmatpush.msra.mxu0 %v6365_v51  ;;  %2247 = vmatpush.msrb.mxu1 %v6366_v54  ;;  %v6422_v51 = vld [vmem:[#allocation108_spill] sm:$0xff] }
 0x3dc   :  { %2051 = vmatpush.msra.mxu2 %v6363_v47  ;;  %2071 = vmatpush.msra.mxu3 %v6364_v50  ;;  %v6420_v47 = vld [vmem:[#allocation271_spill] sm:$0xff]  ;;  %v6421_v50 = vld [vmem:[#allocation92_spill] sm:$0xff] }
 0x3dd   :  { %2091 = vmatpush.msra.mxu0 %v6369_v22  ;;  %2248 = vmatpush.msrb.mxu1 %v6370_v17  ;;  %v6423_v54 = vld [vmem:[#allocation128_spill] sm:$0xff]  ;;  %v6426_v22 = vld [vmem:[#allocation107_spill] sm:$0xff] }
 0x3de   :  { %2052 = vmatpush.msra.mxu2 %v6367_v61  ;;  %2072 = vmatpush.msra.mxu3 %v6368_v62  ;;  %v6424_v61 = vld [vmem:[#allocation270_spill] sm:$0xff]  ;;  %v6425_v62 = vld [vmem:[#allocation91_spill] sm:$0xff] }
 0x3df   :  { %2092 = vmatpush.msra.mxu0 %v6373_v40  ;;  %2249 = vmatpush.msrb.mxu1 %v6374_v24  ;;  %v6427_v17 = vld [vmem:[#allocation127_spill] sm:$0xff]  ;;  %v6430_v40 = vld [vmem:[#allocation106_spill] sm:$0xff] }
 0x3e0   :  { %2053 = vmatpush.msra.mxu2 %v6371_v60  ;;  %2073 = vmatpush.msra.mxu3 %v6372_v35  ;;  %v6428_v60 = vld [vmem:[#allocation269_spill] sm:$0xff]  ;;  %v6429_v35 = vld [vmem:[#allocation90_spill] sm:$0xff] }
 0x3e1   :  { %2093 = vmatpush.msra.mxu0 %v6377_v20  ;;  %2250 = vmatpush.msrb.mxu1 %v6378_v8  ;;  %v6431_v24 = vld [vmem:[#allocation126_spill] sm:$0xff]  ;;  %v6434_v20 = vld [vmem:[#allocation105_spill] sm:$0xff] }
 0x3e2   :  { %2054 = vmatpush.msra.mxu2 %v6375_v55  ;;  %2074 = vmatpush.msra.mxu3 %v6376_v2  ;;  %v6432_v55 = vld [vmem:[#allocation268_spill] sm:$0xff]  ;;  %v6433_v2 = vld [vmem:[#allocation89_spill] sm:$0xff] }
 0x3e3   :  { %2094 = vmatpush.msra.mxu0 %v6381_v39  ;;  %2251 = vmatpush.msrb.mxu1 %v6382_v33  ;;  %v6435_v8 = vld [vmem:[#allocation125_spill] sm:$0xff]  ;;  %v6438_v39 = vld [vmem:[#allocation104_spill] sm:$0xff] }
 0x3e4   :  { %2055 = vmatpush.msra.mxu2 %v6379_v48  ;;  %2075 = vmatpush.msra.mxu3 %v6380_v4  ;;  %v6436_v48 = vld [vmem:[#allocation267_spill] sm:$0xff]  ;;  %v6437_v4 = vld [vmem:[#allocation88_spill] sm:$0xff] }
 0x3e5   :  { %2095 = vmatpush.msra.mxu0 %v6387_v6  ;;  %2252 = vmatpush.msrb.mxu1 %v6393_v7  ;;  %v6439_v33 = vld [vmem:[#allocation124_spill] sm:$0xff]  ;;  %v6444_v6 = vld [vmem:[#allocation123_spill] sm:$0xff]  ;;  %v6450_v7 = vld [vmem:[#allocation265_spill] sm:$0xff] }
 0x3e6   :  { %2056 = vmatpush.msra.mxu2 %v6383_v58  ;;  %2076 = vmatpush.msra.mxu3 %v6384_v16  ;;  %v6440_v58 = vld [vmem:[#allocation266_spill] sm:$0xff]  ;;  %v6441_v16 = vld [vmem:[#allocation87_spill] sm:$0xff] }
 0x3e7   :  { %2057 = vmatmul.f32.vlgmr.msra.gmra.mxu2 %v5344_v38  ;;  %2037 = vmatmul.f32.vlgmr.msrb.gmra.mxu0 %v5347_v0  ;;  %v6395_v38 = vld [vmem:[#allocation115_spill] sm:$0xff]  ;;  %v6399_v0 = vld [vmem:[#allocation114_spill] sm:$0xff] }
 0x3e8   :  { %2101 = vmatpush.msrb.mxu2 %v6385_v1  ;;  %2121 = vmatpush.msrb.mxu3 %v6386_v19  ;;  %v6442_v1 = vld [vmem:[#allocation103_spill] sm:$0xff] }
 0x3e9   :  { %2077 = vmatmul.f32.vlgmr.msra.gmra.mxu3 %v5341_v21  ;;  %2096 = vmatpush.msra.mxu0 %v6392_v53  ;;  %v6400_v21 = vld [vmem:[#allocation133_spill] sm:$0xff]  ;;  %v6443_v19 = vld [vmem:[#allocation407_spill] sm:$0xff] }
 0x3ea   :  { %2102 = vmatpush.msrb.mxu2 %v6388_v34  ;;  %2122 = vmatpush.msrb.mxu3 %v6389_v3  ;;  %v6445_v34 = vld [vmem:[#allocation160_spill] sm:$0xff]  ;;  %v6446_v3 = vld [vmem:[#allocation406_spill] sm:$0xff]  ;;  %v6449_v53 = vld [vmem:[#allocation159_spill] sm:$0xff] }
 0x3eb   :  { %2141 = vmatpush.msrb.mxu0 %v6396_v12  ;;  %2253 = vmatpush.msrb.mxu1 %v6397_v13  ;;  %v6453_v12 = vld [vmem:[#allocation158_spill] sm:$0xff]  ;;  %v6454_v13 = vld [vmem:[#allocation264_spill] sm:$0xff] }
 0x3ec   :  { %2103 = vmatpush.msrb.mxu2 %v6390_v63  ;;  %2123 = vmatpush.msrb.mxu3 %v6391_v23  ;;  %v6447_v63 = vld [vmem:[#allocation176_spill] sm:$0xff]  ;;  %v6448_v23 = vld [vmem:[#allocation122_spill] sm:$0xff] }
 0x3ed   :  { %2142 = vmatpush.msrb.mxu0 %v6400_v21  ;;  %2254 = vmatpush.msrb.mxu1 %v6401_v10  ;;  %v6457_v21 = vld [vmem:[#allocation157_spill] sm:$0xff]  ;;  %v6458_v10 = vld [vmem:[#allocation263_spill] sm:$0xff] }
 0x3ee   :  { %2104 = vmatpush.msrb.mxu2 %v6394_v11  ;;  %2124 = vmatpush.msrb.mxu3 %v6395_v38  ;;  %v6451_v11 = vld [vmem:[#allocation175_spill] sm:$0xff]  ;;  %v6452_v38 = vld [vmem:[#allocation121_spill] sm:$0xff] }
 0x3ef   :  { %2143 = vmatpush.msrb.mxu0 %v6404_v27  ;;  %2255 = vmatpush.msrb.mxu1 %v6405_v37  ;;  %v6461_v27 = vld [vmem:[#allocation156_spill] sm:$0xff] }
 0x3f0   :  { %2105 = vmatpush.msrb.mxu2 %v6398_v14  ;;  %2125 = vmatpush.msrb.mxu3 %v6399_v0  ;;  %v6455_v14 = vld [vmem:[#allocation174_spill] sm:$0xff]  ;;  %v6456_v0 = vld [vmem:[#allocation120_spill] sm:$0xff] }
 0x3f1   :  { %2097 = vmatmul.f32.vlgmr.msra.gmra.mxu0 %v5338_v52  ;;  %2256 = vmatpush.msrb.mxu1 %v6408_v28  ;;  %v6418_v52 = vld [vmem:[#allocation109_spill] sm:$0xff]  ;;  %v6462_v37 = vld [vmem:[#allocation172_spill] sm:$0xff]  ;;  %v6465_v28 = vld [vmem:[#allocation262_spill] sm:$0xff] }
 0x3f2   :  { %2106 = vmatpush.msrb.mxu2 %v6402_v15  ;;  %2126 = vmatpush.msrb.mxu3 %v6403_v26  ;;  %v6459_v15 = vld [vmem:[#allocation173_spill] sm:$0xff]  ;;  %v6460_v26 = vld [vmem:[#allocation119_spill] sm:$0xff] }
 0x3f3   :  { %2144 = vmatpush.msrb.mxu0 %v6411_v31  ;;  %2257 = vmatmul.f32.vlgmr.msrb.gmra.mxu1 %v6412_v32  ;;  %v6468_v31 = vld [vmem:[#allocation154_spill] sm:$0xff]  ;;  %v6469_v32 = vld [vmem:[#allocation261_spill] sm:$0xff] }
 0x3f4   :  { %2107 = vmatpush.msrb.mxu2 %v6406_v9  ;;  %2127 = vmatpush.msrb.mxu3 %v6407_v25  ;;  %v6463_v9 = vld [vmem:[#allocation192_spill] sm:$0xff]  ;;  %v6464_v25 = vld [vmem:[#allocation155_spill] sm:$0xff] }
 0x3f5   :  { %2145 = vmatpush.msrb.mxu0 %v6415_v43  ;;  %2321 = vmatpush.msra.mxu1 %v6416_v44  ;;  %v6473_v43 = vld [vmem:[#allocation260_spill] sm:$0xff]  ;;  %v6474_v44 = vld [vmem:[#allocation169_spill] sm:$0xff] }
 0x3f6   :  { %2108 = vmatpush.msrb.mxu2 %v6409_v29  ;;  %2128 = vmatpush.msrb.mxu3 %v6410_v30  ;;  %v6466_v29 = vld [vmem:[#allocation171_spill] sm:$0xff] }
 0x3f7   :  { %2146 = vmatpush.msrb.mxu0 %v6419_v46  ;;  %2322 = vmatpush.msra.mxu1 %v6420_v47  ;;  %v6467_v30 = vld [vmem:[#allocation191_spill] sm:$0xff]  ;;  %v6478_v47 = vld [vmem:[#allocation168_spill] sm:$0xff] }
 0x3f8   :  { %2109 = vmatpush.msrb.mxu2 %v6413_v41  ;;  %2129 = vmatpush.msrb.mxu3 %v6414_v42  ;;  %v6470_v41 = vld [vmem:[#allocation170_spill] sm:$0xff]  ;;  %v6477_v46 = vld [vmem:[#allocation259_spill] sm:$0xff] }
 0x3f9   :  { %2147 = vmatpush.msrb.mxu0 %v6423_v54  ;;  %2323 = vmatpush.msra.mxu1 %v6424_v61  ;;  %v6471_v42 = vld [vmem:[#allocation190_spill] sm:$0xff]  ;;  %v6482_v61 = vld [vmem:[#allocation167_spill] sm:$0xff] }
 0x3fa   :  { %2110 = vmatpush.msrb.mxu2 %v6417_v45  ;;  %2130 = vmatpush.msrb.mxu3 %v6418_v52  ;;  %v6475_v45 = vld [vmem:[#allocation189_spill] sm:$0xff]  ;;  %v6476_v52 = vld [vmem:[#allocation152_spill] sm:$0xff]  ;;  %v6481_v54 = vld [vmem:[#allocation258_spill] sm:$0xff] }
 0x3fb   :  { %2148 = vmatpush.msrb.mxu0 %v6427_v17  ;;  %2324 = vmatpush.msra.mxu1 %v6428_v60  ;;  %v6485_v17 = vld [vmem:[#allocation257_spill] sm:$0xff]  ;;  %v6486_v60 = vld [vmem:[#allocation166_spill] sm:$0xff] }
 0x3fc   :  { %2111 = vmatpush.msrb.mxu2 %v6421_v50  ;;  %2131 = vmatpush.msrb.mxu3 %v6422_v51  ;;  %v6479_v50 = vld [vmem:[#allocation188_spill] sm:$0xff]  ;;  %v6480_v51 = vld [vmem:[#allocation151_spill] sm:$0xff] }
 0x3fd   :  { %2149 = vmatpush.msrb.mxu0 %v6431_v24  ;;  %2325 = vmatpush.msra.mxu1 %v6432_v55  ;;  %v6489_v24 = vld [vmem:[#allocation165_spill] sm:$0xff] }
 0x3fe   :  { %2112 = vmatpush.msrb.mxu2 %v6425_v62  ;;  %2132 = vmatpush.msrb.mxu3 %v6426_v22  ;;  %v6483_v62 = vld [vmem:[#allocation187_spill] sm:$0xff]  ;;  %v6484_v22 = vld [vmem:[#allocation150_spill] sm:$0xff]  ;;  %v6490_v55 = vld [vmem:[#allocation185_spill] sm:$0xff] }
 0x3ff   :  { %2150 = vmatpush.msrb.mxu0 %v6435_v8  ;;  %2326 = vmatpush.msra.mxu1 %v6436_v48  ;;  %v6493_v8 = vld [vmem:[#allocation184_spill] sm:$0xff]  ;;  %v6494_v48 = vld [vmem:[#allocation147_spill] sm:$0xff] }
 0x400   :  { %2113 = vmatpush.msrb.mxu2 %v6429_v35  ;;  %2133 = vmatpush.msrb.mxu3 %v6430_v40  ;;  %v6487_v35 = vld [vmem:[#allocation186_spill] sm:$0xff]  ;;  %v6488_v40 = vld [vmem:[#allocation149_spill] sm:$0xff] }
 0x401   :  { %2151 = vmatpush.msrb.mxu0 %v6439_v33  ;;  %2327 = vmatpush.msra.mxu1 %v6440_v58  ;;  %v6497_v33 = vld [vmem:[#allocation146_spill] sm:$0xff] }
 0x402   :  { %2114 = vmatpush.msrb.mxu2 %v6433_v2  ;;  %2134 = vmatpush.msrb.mxu3 %v6434_v20  ;;  %v6491_v2 = vld [vmem:[#allocation148_spill] sm:$0xff]  ;;  %v6498_v58 = vld [vmem:[#allocation162_spill] sm:$0xff] }
 0x403   :  { %2152 = vmatpush.msrb.mxu0 %v6444_v6  ;;  %2328 = vmatpush.msra.mxu1 %v6450_v7  ;;  %v6492_v20 = vld [vmem:[#allocation164_spill] sm:$0xff]  ;;  %v6503_v6 = vld [vmem:[#allocation181_spill] sm:$0xff]  ;;  %v6509_v7 = vld [vmem:[#allocation179_spill] sm:$0xff] }
 0x404   :  { %2115 = vmatpush.msrb.mxu2 %v6437_v4  ;;  %2135 = vmatpush.msrb.mxu3 %v6438_v39  ;;  %v6495_v4 = vld [vmem:[#allocation163_spill] sm:$0xff] }
 0x405   :  { %2153 = vmatpush.msrb.mxu0 %v6448_v23  ;;  %2329 = vmatpush.msra.mxu1 %v6454_v13  ;;  %v6496_v39 = vld [vmem:[#allocation183_spill] sm:$0xff]  ;;  %v6507_v23 = vld [vmem:[#allocation222_spill] sm:$0xff]  ;;  %v6515_v13 = vld [vmem:[#allocation177_spill] sm:$0xff] }
 0x406   :  { %2116 = vmatpush.msrb.mxu2 %v6441_v16  ;;  %2136 = vmatpush.msrb.mxu3 %v6442_v1  ;;  %v6500_v16 = vld [vmem:[#allocation145_spill] sm:$0xff] }
 0x407   :  { %2117 = vmatmul.f32.vlgmr.msrb.gmra.mxu2 %v6443_v19  ;;  %2137 = vmatmul.f32.vlgmr.msrb.gmra.mxu3 %v6446_v3  ;;  %v6501_v1 = vld [vmem:[#allocation161_spill] sm:$0xff]  ;;  %v6502_v19 = vld [vmem:[#allocation224_spill] sm:$0xff] }
 0x408   :  { %2181 = vmatpush.msra.mxu2 %v6445_v34  ;;  %2201 = vmatpush.msra.mxu3 %v6447_v63  ;;  %v6504_v34 = vld [vmem:[#allocation223_spill] sm:$0xff]  ;;  %v6505_v3 = vld [vmem:[#allocation240_spill] sm:$0xff] }
 0x409   :  { %2154 = vmatpush.msrb.mxu0 %v6452_v38  ;;  %2330 = vmatpush.msra.mxu1 %v6458_v10  ;;  %v6506_v63 = vld [vmem:[#allocation180_spill] sm:$0xff]  ;;  %v6512_v38 = vld [vmem:[#allocation178_spill] sm:$0xff] }
 0x40a   :  { %2182 = vmatpush.msra.mxu2 %v6449_v53  ;;  %2202 = vmatpush.msra.mxu3 %v6451_v11  ;;  %v6508_v53 = vld [vmem:[#allocation239_spill] sm:$0xff]  ;;  %v6511_v11 = vld [vmem:[#allocation238_spill] sm:$0xff]  ;;  %v6519_v10 = vld [vmem:[#allocation256_spill] sm:$0xff] }
 0x40b   :  { %2155 = vmatpush.msrb.mxu0 %v6456_v0  ;;  %2331 = vmatpush.msra.mxu1 %v6465_v28  ;;  %v6517_v0 = vld [vmem:[#allocation219_spill] sm:$0xff]  ;;  %v6526_v28 = vld [vmem:[#allocation216_spill] sm:$0xff] }
 0x40c   :  { %2183 = vmatpush.msra.mxu2 %v6453_v12  ;;  %2203 = vmatpush.msra.mxu3 %v6455_v14  ;;  %v6513_v12 = vld [vmem:[#allocation220_spill] sm:$0xff]  ;;  %v6516_v14 = vld [vmem:[#allocation409_spill] sm:$0xff] }
 0x40d   :  { %2156 = vmatpush.msrb.mxu0 %v6460_v26  ;;  %2332 = vmatpush.msra.mxu1 %v6469_v32  ;;  %v6521_v26 = vld [vmem:[#allocation235_spill] sm:$0xff]  ;;  %v6530_v32 = vld [vmem:[#allocation232_spill] sm:$0xff] }
 0x40e   :  { %2184 = vmatpush.msra.mxu2 %v6457_v21  ;;  %2204 = vmatpush.msra.mxu3 %v6459_v15  ;;  %v6518_v21 = vld [vmem:[#allocation236_spill] sm:$0xff]  ;;  %v6520_v15 = vld [vmem:[#allocation218_spill] sm:$0xff] }
 0x40f   :  { %2157 = vmatmul.f32.vlgmr.msrb.gmra.mxu0 %v5363_v36  ;;  %v6472_v36 = vld [vmem:[#allocation153_spill] sm:$0xff]  ;;  %2333 = vmatpush.msra.mxu1 %v6473_v43  ;;  %v6534_v43 = vld [vmem:[#allocation251_spill] sm:$0xff] }
 0x410   :  { %2185 = vmatpush.msra.mxu2 %v6461_v27  ;;  %2205 = vmatpush.msra.mxu3 %v6462_v37  ;;  %v6522_v27 = vld [vmem:[#allocation255_spill] sm:$0xff]  ;;  %v6523_v37 = vld [vmem:[#allocation217_spill] sm:$0xff] }
 0x411   :  { %2221 = vmatpush.msra.mxu0 %v6463_v9  ;;  %2334 = vmatpush.msra.mxu1 %v6477_v46  ;;  %v6524_v9 = vld [vmem:[#allocation234_spill] sm:$0xff]  ;;  %v6538_v46 = vld [vmem:[#allocation212_spill] sm:$0xff] }
 0x412   :  { %2186 = vmatpush.msra.mxu2 %v6464_v25  ;;  %2206 = vmatpush.msra.mxu3 %v6466_v29  ;;  %v6525_v25 = vld [vmem:[#allocation254_spill] sm:$0xff]  ;;  %v6527_v29 = vld [vmem:[#allocation233_spill] sm:$0xff] }
 0x413   :  { %2222 = vmatpush.msra.mxu0 %v6467_v30  ;;  %2335 = vmatpush.msra.mxu1 %v6481_v54  ;;  %v6528_v30 = vld [vmem:[#allocation253_spill] sm:$0xff]  ;;  %v6542_v54 = vld [vmem:[#allocation228_spill] sm:$0xff] }
 0x414   :  { %2187 = vmatpush.msra.mxu2 %v6468_v31  ;;  %2207 = vmatpush.msra.mxu3 %v6470_v41  ;;  %v6529_v31 = vld [vmem:[#allocation215_spill] sm:$0xff]  ;;  %v6531_v41 = vld [vmem:[#allocation252_spill] sm:$0xff] }
 0x415   :  { %2223 = vmatpush.msra.mxu0 %v6471_v42  ;;  %2336 = vmatpush.msra.mxu1 %v6485_v17  ;;  %v6532_v42 = vld [vmem:[#allocation214_spill] sm:$0xff]  ;;  %v6546_v17 = vld [vmem:[#allocation247_spill] sm:$0xff] }
 0x416   :  { %2188 = vmatpush.msra.mxu2 %v6472_v36  ;;  %2208 = vmatpush.msra.mxu3 %v6474_v44  ;;  %v6533_v36 = vld [vmem:[#allocation231_spill] sm:$0xff]  ;;  %v6535_v44 = vld [vmem:[#allocation213_spill] sm:$0xff] }
 0x417   :  { %2224 = vmatpush.msra.mxu0 %v6475_v45  ;;  %2337 = vmatmul.f32.vlgmr.msra.gmra.mxu1 %v5397_v5  ;;  %v6499_v5 = vld [vmem:[#allocation182_spill] sm:$0xff] }
 0x418   :  { %2189 = vmatpush.msra.mxu2 %v6476_v52  ;;  %2209 = vmatpush.msra.mxu3 %v6478_v47  ;;  %v6536_v45 = vld [vmem:[#allocation230_spill] sm:$0xff]  ;;  %v6539_v47 = vld [vmem:[#allocation229_spill] sm:$0xff] }
 0x419   :  { %2225 = vmatpush.msra.mxu0 %v6479_v50  ;;  %v6537_v52 = vld [vmem:[#allocation250_spill] sm:$0xff]  ;;  %v6540_v50 = vld [vmem:[#allocation249_spill] sm:$0xff] }
 0x41a   :  { %2190 = vmatpush.msra.mxu2 %v6480_v51  ;;  %2210 = vmatpush.msra.mxu3 %v6482_v61  ;;  %v6541_v51 = vld [vmem:[#allocation211_spill] sm:$0xff]  ;;  %v6543_v61 = vld [vmem:[#allocation248_spill] sm:$0xff] }
 0x41b   :  { %2226 = vmatpush.msra.mxu0 %v6483_v62  ;;  %v6544_v62 = vld [vmem:[#allocation210_spill] sm:$0xff] }
 0x41c   :  { %2191 = vmatpush.msra.mxu2 %v6484_v22  ;;  %2211 = vmatpush.msra.mxu3 %v6486_v60  ;;  %v6545_v22 = vld [vmem:[#allocation227_spill] sm:$0xff]  ;;  %v6547_v60 = vld [vmem:[#allocation209_spill] sm:$0xff] }
 0x41d   :  { %2227 = vmatpush.msra.mxu0 %v6487_v35  ;;  %v6548_v35 = vld [vmem:[#allocation226_spill] sm:$0xff] }
 0x41e   :  { %2192 = vmatpush.msra.mxu2 %v6488_v40  ;;  %2212 = vmatpush.msra.mxu3 %v6489_v24  ;;  %v6549_v40 = vld [vmem:[#allocation246_spill] sm:$0xff]  ;;  %v6550_v24 = vld [vmem:[#allocation225_spill] sm:$0xff] }
 0x41f   :  { %2228 = vmatpush.msra.mxu0 %v6490_v55  ;;  %v6551_v55 = vld [vmem:[#allocation245_spill] sm:$0xff] }
 0x420   :  { %2193 = vmatpush.msra.mxu2 %v6491_v2  ;;  %2213 = vmatpush.msra.mxu3 %v6492_v20  ;;  %v6552_v2 = vld [vmem:[#allocation244_spill] sm:$0xff]  ;;  %v6553_v20 = vld [vmem:[#allocation243_spill] sm:$0xff] }
 0x421   :  { %2229 = vmatpush.msra.mxu0 %v6493_v8  ;;  %v6554_v8 = vld [vmem:[#allocation242_spill] sm:$0xff] }
 0x422   :  { %2194 = vmatpush.msra.mxu2 %v6494_v48  ;;  %2214 = vmatpush.msra.mxu3 %v6495_v4  ;;  %v6555_v48 = vld [vmem:[#allocation241_spill] sm:$0xff] }
 0x423   :  { %2230 = vmatpush.msra.mxu0 %v6496_v39  ;;  %v6556_v4 = vld [vmem:[#allocation401_spill] sm:$0xff] }
 0x424   :  { %2195 = vmatpush.msra.mxu2 %v6497_v33  ;;  %2215 = vmatpush.msra.mxu3 %v6498_v58  ;;  %v1979_v39 = vperm.slane %v6556_v4, 0 }
 0x425   :  { %2231 = vmatpush.msra.mxu0 %v6499_v5 }
 0x426   :  { %2196 = vmatpush.msra.mxu2 %v6500_v16  ;;  %2216 = vmatpush.msra.mxu3 %v6501_v1 }
 0x427   :  { %2197 = vmatmul.f32.vlgmr.msra.gmra.mxu2 %v5379_v49  ;;  %2232 = vmatpush.msra.mxu0 %v6503_v6  ;;  %v6510_v49 = vld [vmem:[#allocation221_spill] sm:$0xff] }
 0x428   :  { %2261 = vmatpush.msrb.mxu2 %v6502_v19  ;;  %2217 = vmatmul.f32.vlgmr.msra.gmra.mxu3 %v5376_v57  ;;  %v6514_v57 = vld [vmem:[#allocation237_spill] sm:$0xff] }
 0x429   :  { %2281 = vmatpush.msrb.mxu3 %v6505_v3  ;;  %2233 = vmatpush.msra.mxu0 %v6506_v63 }
 0x42a   :  { %2262 = vmatpush.msrb.mxu2 %v6504_v34 }
 0x42b   :  { %2282 = vmatpush.msrb.mxu3 %v6508_v53  ;;  %2234 = vmatpush.msra.mxu0 %v6509_v7 }
 0x42c   :  { %2263 = vmatpush.msrb.mxu2 %v6507_v23 }
 0x42d   :  { %2283 = vmatpush.msrb.mxu3 %v6511_v11  ;;  %2235 = vmatpush.msra.mxu0 %v6512_v38 }
 0x42e   :  { %2264 = vmatpush.msrb.mxu2 %v6510_v49 }
 0x42f   :  { %2284 = vmatpush.msrb.mxu3 %v6514_v57  ;;  %2236 = vmatpush.msra.mxu0 %v6515_v13 }
 0x430   :  { %2265 = vmatpush.msrb.mxu2 %v6513_v12  ;;  %2237 = vmatmul.f32.vlgmr.msra.gmra.mxu0 %v6516_v14 }
 0x431   :  { %2285 = vmatpush.msrb.mxu3 %v6518_v21  ;;  %2301 = vmatpush.msrb.mxu0 %v6519_v10 }
 0x432   :  { %2266 = vmatpush.msrb.mxu2 %v6517_v0 }
 0x433   :  { %2286 = vmatpush.msrb.mxu3 %v6521_v26  ;;  %2302 = vmatpush.msrb.mxu0 %v6522_v27 }
 0x434   :  { %2267 = vmatpush.msrb.mxu2 %v6520_v15 }
 0x435   :  { %2287 = vmatpush.msrb.mxu3 %v6524_v9  ;;  %2303 = vmatpush.msrb.mxu0 %v6525_v25 }
 0x436   :  { %2268 = vmatpush.msrb.mxu2 %v6523_v37 }
 0x437   :  { %2288 = vmatpush.msrb.mxu3 %v6527_v29  ;;  %2304 = vmatpush.msrb.mxu0 %v6528_v30 }
 0x438   :  { %2269 = vmatpush.msrb.mxu2 %v6526_v28 }
 0x439   :  { %2289 = vmatpush.msrb.mxu3 %v6530_v32  ;;  %2305 = vmatpush.msrb.mxu0 %v6531_v41  ;;  %v6557_v41 = vld [vmem:[#allocation333_spill] sm:$0xff] }
 0x43a   :  { %2270 = vmatpush.msrb.mxu2 %v6529_v31 }
 0x43b   :  { %2290 = vmatpush.msrb.mxu3 %v6533_v36  ;;  %2306 = vmatpush.msrb.mxu0 %v6534_v43 }
 0x43c   :  { %2271 = vmatpush.msrb.mxu2 %v6532_v42  ;;  %v6558_v42 = vld [vmem:[#allocation334_spill] sm:$0xff] }
 0x43d   :  { %2291 = vmatpush.msrb.mxu3 %v6536_v45  ;;  %2307 = vmatpush.msrb.mxu0 %v6537_v52 }
 0x43e   :  { %2272 = vmatpush.msrb.mxu2 %v6535_v44 }
 0x43f   :  { %2292 = vmatpush.msrb.mxu3 %v6539_v47  ;;  %2308 = vmatpush.msrb.mxu0 %v6540_v50 }
 0x440   :  { %2273 = vmatpush.msrb.mxu2 %v6538_v46 }
 0x441   :  { %2293 = vmatpush.msrb.mxu3 %v6542_v54  ;;  %2309 = vmatpush.msrb.mxu0 %v6543_v61 }
 0x442   :  { %2274 = vmatpush.msrb.mxu2 %v6541_v51 }
 0x443   :  { %2294 = vmatpush.msrb.mxu3 %v6545_v22  ;;  %2310 = vmatpush.msrb.mxu0 %v6546_v17 }
 0x444   :  { %2275 = vmatpush.msrb.mxu2 %v6544_v62 }
 0x445   :  { %2295 = vmatpush.msrb.mxu3 %v6548_v35  ;;  %2311 = vmatpush.msrb.mxu0 %v6549_v40 }
 0x446   :  { %2276 = vmatpush.msrb.mxu2 %v6547_v60 }
 0x447   :  { %2277 = vmatmul.f32.vlgmr.msrb.gmra.mxu2 %v5407_v59  ;;  %2296 = vmatpush.msrb.mxu3 %v6550_v24 }
 0x448   :  { %2312 = vmatpush.msrb.mxu0 %v6551_v55  ;;  %2297 = vmatmul.f32.vlgmr.msrb.gmra.mxu3 %v5404_v18 }
 0x449   :  { %2420 = vmatpush.msra.mxu2 %v6557_v41  ;;  %2440 = vmatpush.msra.mxu3 %v6558_v42 }
 0x44a   :  { %2313 = vmatpush.msrb.mxu0 %v6552_v2  ;;  %v1998_v33 = vpop.f32.mrf.mxu2  ;;  %v2178_v38 = vpop.f32.mrf.mxu1 }
 0x44b   :  { %v1999_v59 = vadd.f32 %v1998_v33, %v1979_v39 }
 0x44c   :  { %2314 = vmatpush.msrb.mxu0 %v6553_v20  ;;  %v2018_v58 = vpop.f32.mrf.mxu3 }
 0x44d   :  { %v2019_v5 = vadd.f32 %v2018_v58, %v1999_v59 }
 0x44e   :  { %2315 = vmatpush.msrb.mxu0 %v6554_v8 }
 0x450   :  { %2316 = vmatpush.msrb.mxu0 %v6555_v48 }
 0x451   :  { %2317 = vmatmul.f32.vlgmr.msrb.gmra.mxu0 %v5401_v56 }
 0x464   :  { %v2038_v16 = vpop.f32.mrf.mxu0 }
 0x465   :  { %v2039_v1 = vadd.f32 %v2038_v16, %v2019_v5 }
 0x46a   :  { %v2058_v19 = vpop.f32.mrf.mxu2 }
 0x46b   :  { %v2059_v18 = vadd.f32 %v2058_v19, %v2039_v1 }
 0x46c   :  { %v2078_v6 = vpop.f32.mrf.mxu3 }
 0x46d   :  { %v2079_v34 = vadd.f32 %v2078_v6, %v2059_v18 }
 0x46e   :  { %v2098_v3 = vpop.f32.mrf.mxu0 }
 0x46f   :  { %v2099_v23 = vadd.f32 %v2098_v3, %v2079_v34 }
 0x470   :  { %v2258_v15 = vpop.f32.mrf.mxu1 }
 0x48a   :  { %v2118_v63 = vpop.f32.mrf.mxu2  ;;  %v2138_v7 = vpop.f32.mrf.mxu3 }
 0x48b   :  { %v2119_v53 = vadd.f32 %v2118_v63, %v2099_v23 }
 0x48c   :  { %v2158_v11 = vpop.f32.mrf.mxu0 }
 0x48d   :  { %v2139_v49 = vadd.f32 %v2138_v7, %v2119_v53 }
 0x48f   :  { %v2159_v56 = vadd.f32 %v2158_v11, %v2139_v49 }
 0x491   :  { %v2179_v57 = vadd.f32 %v2178_v38, %v2159_v56 }
 0x494   :  { %v2338_v29 = vpop.f32.mrf.mxu1 }
 0x4aa   :  { %v2198_v12 = vpop.f32.mrf.mxu2 }
 0x4ab   :  { %v2199_v13 = vadd.f32 %v2198_v12, %v2179_v57  ;;  %v2218_v14 = vpop.f32.mrf.mxu3 }
 0x4ad   :  { %v2219_v0 = vadd.f32 %v2218_v14, %v2199_v13  ;;  %v2238_v21 = vpop.f32.mrf.mxu0 }
 0x4af   :  { %v2239_v10 = vadd.f32 %v2238_v21, %v2219_v0 }
 0x4b1   :  { %v2259_v26 = vadd.f32 %v2258_v15, %v2239_v10 }
 0x4ca   :  { %v2278_v27 = vpop.f32.mrf.mxu2 }
 0x4cb   :  { %v2279_v37 = vadd.f32 %v2278_v27, %v2259_v26  ;;  %v2298_v9 = vpop.f32.mrf.mxu3 }
 0x4cd   :  { %v2299_v25 = vadd.f32 %v2298_v9, %v2279_v37 }
 0x4ce   :  { %v2318_v28 = vpop.f32.mrf.mxu0 }
 0x4cf   :  { %v2319_v30 = vadd.f32 %v2318_v28, %v2299_v25 }
 0x4d1   :  { %v2339_v31 = vadd.f32 %v2338_v29, %v2319_v30 }
 0x4d3   :  { %v5716_v32 = vmax.f32 %v2339_v31, 0.0 }
 0x4d4   :  { %2834 = dma.done.wait [#allocation5 + $0x1], 8192 }
 0x4d5   :  { %2835 = vsyncadd [#allocation5 + $0x1], 4294959104  ;;  %v6559_v36 = vld [vmem:[#allocation335_spill] sm:$0xff]  ;;  %v6560_v43 = vld [vmem:[#allocation336_spill] sm:$0xff] }
 0x4d6   :  { %2460 = vmatpush.msra.mxu0 %v6559_v36  ;;  %2480 = vmatpush.msrb.mxu1 %v6560_v43  ;;  %v6561_v44 = vld [vmem:[#allocation329_spill] sm:$0xff]  ;;  %v6562_v45 = vld [vmem:[#allocation330_spill] sm:$0xff]  ;;  %v6563_v52 = vld [vmem:[#allocation331_spill] sm:$0xff] }
 0x4d7   :  { %2421 = vmatpush.msra.mxu2 %v6561_v44  ;;  %2441 = vmatpush.msra.mxu3 %v6562_v45  ;;  %v6564_v46 = vld [vmem:[#allocation332_spill] sm:$0xff]  ;;  %v6565_v47 = vld [vmem:[#allocation325_spill] sm:$0xff]  ;;  %v6566_v50 = vld [vmem:[#allocation326_spill] sm:$0xff] }
 0x4d8   :  { %2461 = vmatpush.msra.mxu0 %v6563_v52  ;;  %2481 = vmatpush.msrb.mxu1 %v6564_v46  ;;  %v6567_v51 = vld [vmem:[#allocation327_spill] sm:$0xff]  ;;  %v6568_v54 = vld [vmem:[#allocation328_spill] sm:$0xff]  ;;  %v6569_v61 = vld [vmem:[#allocation321_spill] sm:$0xff] }
 0x4d9   :  { %2422 = vmatpush.msra.mxu2 %v6565_v47  ;;  %2442 = vmatpush.msra.mxu3 %v6566_v50  ;;  %v6570_v62 = vld [vmem:[#allocation322_spill] sm:$0xff]  ;;  %v6571_v22 = vld [vmem:[#allocation323_spill] sm:$0xff]  ;;  %v6572_v17 = vld [vmem:[#allocation324_spill] sm:$0xff] }
 0x4da   :  { %2462 = vmatpush.msra.mxu0 %v6567_v51  ;;  %2482 = vmatpush.msrb.mxu1 %v6568_v54  ;;  %v6573_v60 = vld [vmem:[#allocation317_spill] sm:$0xff]  ;;  %v6574_v35 = vld [vmem:[#allocation318_spill] sm:$0xff]  ;;  %v6575_v40 = vld [vmem:[#allocation319_spill] sm:$0xff] }
 0x4db   :  { %2423 = vmatpush.msra.mxu2 %v6569_v61  ;;  %2443 = vmatpush.msra.mxu3 %v6570_v62  ;;  %v6576_v24 = vld [vmem:[#allocation320_spill] sm:$0xff]  ;;  %v6577_v55 = vld [vmem:[#allocation313_spill] sm:$0xff]  ;;  %v6578_v2 = vld [vmem:[#allocation314_spill] sm:$0xff] }
 0x4dc   :  { %2463 = vmatpush.msra.mxu0 %v6571_v22  ;;  %2483 = vmatpush.msrb.mxu1 %v6572_v17  ;;  %v6579_v20 = vld [vmem:[#allocation315_spill] sm:$0xff]  ;;  %v6580_v8 = vld [vmem:[#allocation316_spill] sm:$0xff]  ;;  %v6581_v48 = vld [vmem:[#allocation309_spill] sm:$0xff] }
 0x4dd   :  { %2424 = vmatpush.msra.mxu2 %v6573_v60  ;;  %2444 = vmatpush.msra.mxu3 %v6574_v35  ;;  %v6582_v4 = vld [vmem:[#allocation310_spill] sm:$0xff]  ;;  %v6583_v39 = vld [vmem:[#allocation311_spill] sm:$0xff]  ;;  %v6584_v33 = vld [vmem:[#allocation312_spill] sm:$0xff] }
 0x4de   :  { %2464 = vmatpush.msra.mxu0 %v6575_v40  ;;  %2484 = vmatpush.msrb.mxu1 %v6576_v24  ;;  %v6585_v59 = vld [vmem:[#allocation305_spill] sm:$0xff]  ;;  %v6586_v58 = vld [vmem:[#allocation306_spill] sm:$0xff]  ;;  %v6587_v5 = vld [vmem:[#allocation307_spill] sm:$0xff] }
 0x4df   :  { %2425 = vmatpush.msra.mxu2 %v6577_v55  ;;  %2445 = vmatpush.msra.mxu3 %v6578_v2  ;;  %v6588_v16 = vld [vmem:[#allocation308_spill] sm:$0xff]  ;;  %v6589_v1 = vld [vmem:[#allocation301_spill] sm:$0xff]  ;;  %v6590_v19 = vld [vmem:[#allocation302_spill] sm:$0xff] }
 0x4e0   :  { %2465 = vmatpush.msra.mxu0 %v6579_v20  ;;  %2485 = vmatpush.msrb.mxu1 %v6580_v8  ;;  %v6591_v18 = vld [vmem:[#allocation303_spill] sm:$0xff]  ;;  %v6592_v6 = vld [vmem:[#allocation304_spill] sm:$0xff]  ;;  %v6593_v34 = vld [vmem:[#allocation297_spill] sm:$0xff] }
 0x4e1   :  { %2426 = vmatpush.msra.mxu2 %v6581_v48  ;;  %2446 = vmatpush.msra.mxu3 %v6582_v4  ;;  %v6594_v3 = vld [vmem:[#allocation298_spill] sm:$0xff]  ;;  %v6595_v63 = vld [vmem:[#allocation299_spill] sm:$0xff]  ;;  %v6596_v23 = vld [vmem:[#allocation300_spill] sm:$0xff] }
 0x4e2   :  { %2466 = vmatpush.msra.mxu0 %v6583_v39  ;;  %2486 = vmatpush.msrb.mxu1 %v6584_v33  ;;  %v6597_v53 = vld [vmem:[#allocation293_spill] sm:$0xff]  ;;  %v6598_v7 = vld [vmem:[#allocation294_spill] sm:$0xff]  ;;  %v6599_v49 = vld [vmem:[#allocation295_spill] sm:$0xff] }
 0x4e3   :  { %2427 = vmatpush.msra.mxu2 %v6585_v59  ;;  %2447 = vmatpush.msra.mxu3 %v6586_v58  ;;  %v6600_v11 = vld [vmem:[#allocation296_spill] sm:$0xff]  ;;  %v6601_v56 = vld [vmem:[#allocation289_spill] sm:$0xff]  ;;  %v6602_v38 = vld [vmem:[#allocation290_spill] sm:$0xff] }
 0x4e4   :  { %2467 = vmatpush.msra.mxu0 %v6587_v5  ;;  %2487 = vmatpush.msrb.mxu1 %v6588_v16  ;;  %v6603_v12 = vld [vmem:[#allocation291_spill] sm:$0xff]  ;;  %v6604_v57 = vld [vmem:[#allocation292_spill] sm:$0xff]  ;;  %v6605_v13 = vld [vmem:[#allocation285_spill] sm:$0xff] }
 0x4e5   :  { %2428 = vmatpush.msra.mxu2 %v6589_v1  ;;  %2448 = vmatpush.msra.mxu3 %v6590_v19  ;;  %v6606_v14 = vld [vmem:[#allocation286_spill] sm:$0xff]  ;;  %v6607_v0 = vld [vmem:[#allocation287_spill] sm:$0xff]  ;;  %v6608_v21 = vld [vmem:[#allocation288_spill] sm:$0xff] }
 0x4e6   :  { %2468 = vmatpush.msra.mxu0 %v6591_v18  ;;  %2488 = vmatpush.msrb.mxu1 %v6592_v6  ;;  %v6609_v10 = vld [vmem:[#allocation281_spill] sm:$0xff]  ;;  %v6610_v15 = vld [vmem:[#allocation282_spill] sm:$0xff]  ;;  %v6611_v26 = vld [vmem:[#allocation283_spill] sm:$0xff] }
 0x4e7   :  { %2429 = vmatpush.msra.mxu2 %v6593_v34  ;;  %2449 = vmatpush.msra.mxu3 %v6594_v3  ;;  %v6612_v27 = vld [vmem:[#allocation284_spill] sm:$0xff]  ;;  %v6613_v37 = vld [vmem:[#allocation277_spill] sm:$0xff]  ;;  %v6614_v9 = vld [vmem:[#allocation278_spill] sm:$0xff] }
 0x4e8   :  { %2469 = vmatpush.msra.mxu0 %v6595_v63  ;;  %2489 = vmatpush.msrb.mxu1 %v6596_v23  ;;  %v6615_v25 = vld [vmem:[#allocation279_spill] sm:$0xff]  ;;  %v6616_v28 = vld [vmem:[#allocation280_spill] sm:$0xff]  ;;  %v6617_v29 = vld [vmem:[#allocation273_spill] sm:$0xff] }
 0x4e9   :  { %2430 = vmatpush.msra.mxu2 %v6597_v53  ;;  %2450 = vmatpush.msra.mxu3 %v6598_v7  ;;  %v6618_v30 = vld [vmem:[#allocation274_spill] sm:$0xff]  ;;  %v6619_v31 = vld [vmem:[#allocation275_spill] sm:$0xff]  ;;  %v6620_v41 = vld [vmem:[#allocation276_spill] sm:$0xff] }
 0x4ea   :  { %2470 = vmatpush.msra.mxu0 %v6599_v49  ;;  %2490 = vmatpush.msrb.mxu1 %v6600_v11  ;;  %v6621_v42 = vld [vmem:[#allocation402_spill] sm:$0xff]  ;;  %v6622_v35 = vld [vmem:[#allocation352_spill] sm:$0xff] }
 0x4eb   :  { %2431 = vmatpush.msra.mxu2 %v6601_v56  ;;  %2451 = vmatpush.msra.mxu3 %v6602_v38  ;;  %v2414_v36 = vperm.slane %v6621_v42, 2  ;;  %v2415_v43 = vperm.slane %v6621_v42, 3  ;;  %v2412_v52 = vperm.slane %v6621_v42, 0  ;;  %v2413_v46 = vperm.slane %v6621_v42, 1  ;;  %v6623_v40 = vld [vmem:[#allocation368_spill] sm:$0xff] }
 0x4ec   :  { %2471 = vmatpush.msra.mxu0 %v6603_v12  ;;  %2491 = vmatpush.msrb.mxu1 %v6604_v57 }
 0x4ed   :  { %2432 = vmatpush.msra.mxu2 %v6605_v13  ;;  %2452 = vmatpush.msra.mxu3 %v6606_v14 }
 0x4ee   :  { %2472 = vmatpush.msra.mxu0 %v6607_v0  ;;  %2492 = vmatpush.msrb.mxu1 %v6608_v21 }
 0x4ef   :  { %2433 = vmatpush.msra.mxu2 %v6609_v10  ;;  %2453 = vmatpush.msra.mxu3 %v6610_v15 }
 0x4f0   :  { %2473 = vmatpush.msra.mxu0 %v6611_v26  ;;  %2493 = vmatpush.msrb.mxu1 %v6612_v27 }
 0x4f1   :  { %2434 = vmatpush.msra.mxu2 %v6613_v37  ;;  %2454 = vmatpush.msra.mxu3 %v6614_v9 }
 0x4f2   :  { %2474 = vmatpush.msra.mxu0 %v6615_v25  ;;  %2494 = vmatpush.msrb.mxu1 %v6616_v28 }
 0x4f3   :  { %2435 = vmatpush.msra.mxu2 %v6617_v29  ;;  %2455 = vmatpush.msra.mxu3 %v6618_v30 }
 0x4f4   :  { %2737 = vmatmul.msk.f32.vlgmr.msra.gmra.mxu2 %vm1178_vm2, %v5716_v32  ;;  %2738 = vmatmul.msk.f32.vlgmr.msra.gmra.mxu3 %vm1178_vm2, %v5716_v32 }
 0x4f5   :  { %2475 = vmatpush.msra.mxu0 %v6619_v31  ;;  %2495 = vmatpush.msrb.mxu1 %v6620_v41 }
 0x4f6   :  { %2739 = vmatmul.msk.f32.vlgmr.msra.gmra.mxu0 %vm1178_vm2, %v5716_v32  ;;  %2740 = vmatmul.msk.f32.vlgmr.msrb.gmra.mxu1 %vm1178_vm2, %v5716_v32 }
 0x4f7   :  { %2574 = vmatpush.msrb.mxu2 %v6622_v35  ;;  %2594 = vmatpush.msrb.mxu3 %v6623_v40 }
 0x573   :  { %v2477_v44 = vpop.f32.mrf.mxu0  ;;  %v2497_v45 = vpop.f32.mrf.mxu1 }
 0x574   :  { %v5794_v47 = vadd.f32 %v2477_v44, %v2414_v36  ;;  %v5796_v50 = vadd.f32 %v2497_v45, %v2415_v43 }
 0x576   :  { %v2502_v51 = vmax.f32 %v5794_v47, 0.0  ;;  %v2503_v54 = vmax.f32 %v5796_v50, 0.0 }
 0x577   :  { %v2437_v61 = vpop.f32.mrf.mxu2  ;;  %v2457_v32 = vpop.f32.mrf.mxu3 }
 0x578   :  { %v5800_v62 = vadd.f32 %v2437_v61, %v2412_v52  ;;  %v5802_v22 = vadd.f32 %v2457_v32, %v2413_v46 }
 0x57a   :  { %v2500_v17 = vmax.f32 %v5800_v62, 0.0  ;;  %v2501_v60 = vmax.f32 %v5802_v22, 0.0 }
 0x57b   :  { %2836 = dma.done.wait [#allocation5 + $0x2], 8192 }
 0x57c   :  { %2837 = vsyncadd [#allocation5 + $0x2], 4294959104  ;;  %v6624_v24 = vld [vmem:[#allocation384_spill] sm:$0xff]  ;;  %v6626_v2 = vld [vmem:[#allocation351_spill] sm:$0xff] }
 0x57d   :  { %2614 = vmatpush.msrb.mxu0 %v6624_v24  ;;  %v6625_v55 = vld [vmem:[#allocation400_spill] sm:$0xff]  ;;  %2575 = vmatpush.msrb.mxu2 %v6626_v2  ;;  %v6627_v20 = vld [vmem:[#allocation367_spill] sm:$0xff]  ;;  %v6630_v4 = vld [vmem:[#allocation350_spill] sm:$0xff] }
 0x57e   :  { %2634 = vmatpush.msra.mxu1 %v6625_v55  ;;  %2595 = vmatpush.msrb.mxu3 %v6627_v20  ;;  %v6628_v8 = vld [vmem:[#allocation383_spill] sm:$0xff]  ;;  %v6631_v39 = vld [vmem:[#allocation366_spill] sm:$0xff]  ;;  %v6634_v58 = vld [vmem:[#allocation349_spill] sm:$0xff] }
 0x57f   :  { %2615 = vmatpush.msrb.mxu0 %v6628_v8  ;;  %v6629_v48 = vld [vmem:[#allocation399_spill] sm:$0xff]  ;;  %2576 = vmatpush.msrb.mxu2 %v6630_v4  ;;  %v6632_v33 = vld [vmem:[#allocation382_spill] sm:$0xff]  ;;  %v6635_v5 = vld [vmem:[#allocation365_spill] sm:$0xff] }
 0x580   :  { %2635 = vmatpush.msra.mxu1 %v6629_v48  ;;  %2596 = vmatpush.msrb.mxu3 %v6631_v39  ;;  %v6633_v59 = vld [vmem:[#allocation398_spill] sm:$0xff]  ;;  %v6636_v16 = vld [vmem:[#allocation381_spill] sm:$0xff]  ;;  %v6638_v19 = vld [vmem:[#allocation348_spill] sm:$0xff] }
 0x581   :  { %2616 = vmatpush.msrb.mxu0 %v6632_v33  ;;  %2577 = vmatpush.msrb.mxu2 %v6634_v58  ;;  %v6637_v1 = vld [vmem:[#allocation397_spill] sm:$0xff]  ;;  %v6639_v18 = vld [vmem:[#allocation364_spill] sm:$0xff]  ;;  %v6642_v3 = vld [vmem:[#allocation347_spill] sm:$0xff] }
 0x582   :  { %2636 = vmatpush.msra.mxu1 %v6633_v59  ;;  %2597 = vmatpush.msrb.mxu3 %v6635_v5  ;;  %v6640_v6 = vld [vmem:[#allocation380_spill] sm:$0xff]  ;;  %v6643_v63 = vld [vmem:[#allocation363_spill] sm:$0xff]  ;;  %v6646_v7 = vld [vmem:[#allocation346_spill] sm:$0xff] }
 0x583   :  { %2617 = vmatpush.msrb.mxu0 %v6636_v16  ;;  %2578 = vmatpush.msrb.mxu2 %v6638_v19  ;;  %v6641_v34 = vld [vmem:[#allocation396_spill] sm:$0xff]  ;;  %v6644_v23 = vld [vmem:[#allocation379_spill] sm:$0xff]  ;;  %v6647_v49 = vld [vmem:[#allocation362_spill] sm:$0xff] }
 0x584   :  { %2637 = vmatpush.msra.mxu1 %v6637_v1  ;;  %2598 = vmatpush.msrb.mxu3 %v6639_v18  ;;  %v6645_v53 = vld [vmem:[#allocation395_spill] sm:$0xff]  ;;  %v6648_v11 = vld [vmem:[#allocation378_spill] sm:$0xff]  ;;  %v6650_v38 = vld [vmem:[#allocation345_spill] sm:$0xff] }
 0x585   :  { %2618 = vmatpush.msrb.mxu0 %v6640_v6  ;;  %2579 = vmatpush.msrb.mxu2 %v6642_v3  ;;  %v6649_v56 = vld [vmem:[#allocation394_spill] sm:$0xff]  ;;  %v6651_v12 = vld [vmem:[#allocation361_spill] sm:$0xff]  ;;  %v6654_v14 = vld [vmem:[#allocation344_spill] sm:$0xff] }
 0x586   :  { %2638 = vmatpush.msra.mxu1 %v6641_v34  ;;  %2599 = vmatpush.msrb.mxu3 %v6643_v63  ;;  %v6652_v57 = vld [vmem:[#allocation377_spill] sm:$0xff]  ;;  %v6655_v0 = vld [vmem:[#allocation360_spill] sm:$0xff]  ;;  %v6658_v15 = vld [vmem:[#allocation343_spill] sm:$0xff] }
 0x587   :  { %2619 = vmatpush.msrb.mxu0 %v6644_v23  ;;  %2580 = vmatpush.msrb.mxu2 %v6646_v7  ;;  %v6653_v13 = vld [vmem:[#allocation393_spill] sm:$0xff]  ;;  %v6656_v21 = vld [vmem:[#allocation376_spill] sm:$0xff]  ;;  %v6659_v26 = vld [vmem:[#allocation359_spill] sm:$0xff] }
 0x588   :  { %2639 = vmatpush.msra.mxu1 %v6645_v53  ;;  %2600 = vmatpush.msrb.mxu3 %v6647_v49  ;;  %v6657_v10 = vld [vmem:[#allocation392_spill] sm:$0xff]  ;;  %v6660_v27 = vld [vmem:[#allocation375_spill] sm:$0xff]  ;;  %v6662_v9 = vld [vmem:[#allocation342_spill] sm:$0xff] }
 0x589   :  { %2620 = vmatpush.msrb.mxu0 %v6648_v11  ;;  %2581 = vmatpush.msrb.mxu2 %v6650_v38  ;;  %v6661_v37 = vld [vmem:[#allocation391_spill] sm:$0xff]  ;;  %v6663_v25 = vld [vmem:[#allocation358_spill] sm:$0xff]  ;;  %v6666_v30 = vld [vmem:[#allocation341_spill] sm:$0xff] }
 0x58a   :  { %2640 = vmatpush.msra.mxu1 %v6649_v56  ;;  %2601 = vmatpush.msrb.mxu3 %v6651_v12  ;;  %v6664_v28 = vld [vmem:[#allocation374_spill] sm:$0xff]  ;;  %v6667_v31 = vld [vmem:[#allocation357_spill] sm:$0xff]  ;;  %v6670_v36 = vld [vmem:[#allocation340_spill] sm:$0xff] }
 0x58b   :  { %2621 = vmatpush.msrb.mxu0 %v6652_v57  ;;  %2582 = vmatpush.msrb.mxu2 %v6654_v14  ;;  %v6665_v29 = vld [vmem:[#allocation390_spill] sm:$0xff]  ;;  %v6668_v41 = vld [vmem:[#allocation373_spill] sm:$0xff]  ;;  %v6671_v43 = vld [vmem:[#allocation356_spill] sm:$0xff] }
 0x58c   :  { %2641 = vmatpush.msra.mxu1 %v6653_v13  ;;  %2602 = vmatpush.msrb.mxu3 %v6655_v0  ;;  %v6669_v42 = vld [vmem:[#allocation389_spill] sm:$0xff]  ;;  %v6672_v44 = vld [vmem:[#allocation372_spill] sm:$0xff]  ;;  %v6674_v52 = vld [vmem:[#allocation339_spill] sm:$0xff] }
 0x58d   :  { %2622 = vmatpush.msrb.mxu0 %v6656_v21  ;;  %2583 = vmatpush.msrb.mxu2 %v6658_v15  ;;  %v6673_v45 = vld [vmem:[#allocation388_spill] sm:$0xff]  ;;  %v6675_v46 = vld [vmem:[#allocation355_spill] sm:$0xff]  ;;  %v6678_v35 = vld [vmem:[#allocation338_spill] sm:$0xff] }
 0x58e   :  { %2642 = vmatpush.msra.mxu1 %v6657_v10  ;;  %2603 = vmatpush.msrb.mxu3 %v6659_v26  ;;  %v6676_v61 = vld [vmem:[#allocation371_spill] sm:$0xff]  ;;  %v6679_v40 = vld [vmem:[#allocation354_spill] sm:$0xff]  ;;  %v6682_v2 = vld [vmem:[#allocation337_spill] sm:$0xff] }
 0x58f   :  { %2623 = vmatpush.msrb.mxu0 %v6660_v27  ;;  %2584 = vmatpush.msrb.mxu2 %v6662_v9  ;;  %v6677_v32 = vld [vmem:[#allocation387_spill] sm:$0xff]  ;;  %v6680_v24 = vld [vmem:[#allocation370_spill] sm:$0xff]  ;;  %v6683_v20 = vld [vmem:[#allocation353_spill] sm:$0xff] }
 0x590   :  { %2643 = vmatpush.msra.mxu1 %v6661_v37  ;;  %2604 = vmatpush.msrb.mxu3 %v6663_v25  ;;  %v6681_v55 = vld [vmem:[#allocation386_spill] sm:$0xff]  ;;  %v6684_v8 = vld [vmem:[#allocation369_spill] sm:$0xff]  ;;  %v6686_v4 = vld [vmem:[#allocation403_spill] sm:$0xff] }
 0x591   :  { %2624 = vmatpush.msrb.mxu0 %v6664_v28  ;;  %2585 = vmatpush.msrb.mxu2 %v6666_v30  ;;  %v6685_v48 = vld [vmem:[#allocation385_spill] sm:$0xff]  ;;  %v2572_v39 = vperm.slane %v6686_v4, 0 }
 0x592   :  { %2644 = vmatpush.msra.mxu1 %v6665_v29  ;;  %2605 = vmatpush.msrb.mxu3 %v6667_v31 }
 0x593   :  { %2625 = vmatpush.msrb.mxu0 %v6668_v41  ;;  %2586 = vmatpush.msrb.mxu2 %v6670_v36 }
 0x594   :  { %2645 = vmatpush.msra.mxu1 %v6669_v42  ;;  %2606 = vmatpush.msrb.mxu3 %v6671_v43 }
 0x595   :  { %2626 = vmatpush.msrb.mxu0 %v6672_v44  ;;  %2587 = vmatpush.msrb.mxu2 %v6674_v52 }
 0x596   :  { %2646 = vmatpush.msra.mxu1 %v6673_v45  ;;  %2607 = vmatpush.msrb.mxu3 %v6675_v46 }
 0x597   :  { %2627 = vmatpush.msrb.mxu0 %v6676_v61  ;;  %2588 = vmatpush.msrb.mxu2 %v6678_v35 }
 0x598   :  { %2647 = vmatpush.msra.mxu1 %v6677_v32  ;;  %2608 = vmatpush.msrb.mxu3 %v6679_v40 }
 0x599   :  { %2628 = vmatpush.msrb.mxu0 %v6680_v24  ;;  %2589 = vmatpush.msrb.mxu2 %v6682_v2 }
 0x59a   :  { %2648 = vmatpush.msra.mxu1 %v6681_v55  ;;  %2609 = vmatpush.msrb.mxu3 %v6683_v20 }
 0x59b   :  { %2590 = vmatmul.f32.vlgmr.msrb.gmra.mxu2 %v2500_v17  ;;  %2610 = vmatmul.f32.vlgmr.msrb.gmra.mxu3 %v2501_v60 }
 0x59c   :  { %2629 = vmatpush.msrb.mxu0 %v6684_v8  ;;  %2649 = vmatpush.msra.mxu1 %v6685_v48 }
 0x59d   :  { %2630 = vmatmul.f32.vlgmr.msrb.gmra.mxu0 %v2502_v51  ;;  %2650 = vmatmul.f32.vlgmr.msra.gmra.mxu1 %v2503_v54 }
 0x61a   :  { %v2631_v62 = vpop.f32.mrf.mxu0  ;;  %v2651_v5 = vpop.f32.mrf.mxu1 }
 0x61e   :  { %v2591_v33 = vpop.f32.mrf.mxu2  ;;  %v2611_v59 = vpop.f32.mrf.mxu3 }
 0x61f   :  { %v2592_v58 = vadd.f32 %v2591_v33, %v2572_v39 }
 0x621   :  { %v2612_v17 = vadd.f32 %v2611_v59, %v2592_v58 }
 0x623   :  { %v2632_v22 = vadd.f32 %v2631_v62, %v2612_v17 }
 0x625   :  { %v2652_v60 = vadd.f32 %v2651_v5, %v2632_v22 }
 0x627   :  { %2654 = vst [vmem:[%s5889_s7] sm:$0xff] %v2652_v60 }
 0x628   :  { %2659 = vsyncmov [#allocation5] }
 0x62b   :  { %s2660_s26 = vpop.sfrf %2659 }
 0x62c   :  { %p2741_p0 = scmp.ne.s32.totalorder %s2660_s26, 0 }
 0x62e   :  { %2664 = shalt.err (%p2741_p0)  }
 0x62f   :  { %2666 = vsyncmov [#allocation5 + $0x1] }
 0x632   :  { %s2667_s0 = vpop.sfrf %2666 }
 0x633   :  { %p2742_p1 = scmp.ne.s32.totalorder %s2667_s0, 0 }
 0x635   :  { %2671 = shalt.err (%p2742_p1)  }
 0x636   :  { %2673 = vsyncmov [#allocation5 + $0x2] }
 0x639   :  { %s2674_s27 = vpop.sfrf %2673 }
 0x63a   :  { %p2743_p2 = scmp.ne.s32.totalorder %s2674_s27, 0 }
 0x63c   :  { %2678 = shalt.err (%p2743_p2)  }

</bundles_post_ra>
